<compile_context>
chip_gen: v7x
topology: tpu7x:2x2x1
jax: 0.10.0
libtpu: 0.0.40
codegen_flags: <defaults>
</compile_context>

<pallas_src>
import functools

import numpy as np
import jax
import jax.numpy as jnp
from jax import lax
from jax.experimental import pallas as pl
from jax.experimental.pallas import tpu as pltpu

EPS = 1e-5


def _erf(x):
    # Abramowitz & Stegun 7.1.26 rational approximation (|err| < 1.5e-7).
    # Exact divide (tiny tensors) to keep the GELU numerically tight.
    p = 0.3275911
    a1, a2, a3, a4, a5 = 0.254829592, -0.284496736, 1.421413741, -1.453152027, 1.061405429
    z = jnp.abs(x)
    t = 1.0 / (1.0 + p * z)
    poly = ((((a5 * t + a4) * t + a3) * t + a2) * t + a1) * t
    y = 1.0 - poly * jnp.exp(-(z * z))
    return jnp.where(x >= 0, y, -y)


def _gelu(x):
    # exact (erf-based) GELU, matching torch.nn.GELU() default
    return 0.5 * x * (1.0 + _erf(x * 0.7071067811865476))


def waveblock_kernel(
    x_ref,                                            # (C, HW) f32
    scale1_ref, shift1_ref,                           # (C, 1)  norm1 folded BN
    wth_h0_ref, wth_h1_ref, bth_h0_ref, bth_h1_ref,   # theta_h conv (BN folded, bank-permuted)
    wth_w0_ref, wth_w1_ref, bth_w0_ref, bth_w1_ref,   # theta_w conv
    wfc_h0_ref, wfc_h1_ref, wfc_w0_ref, wfc_w1_ref, wfc_c_ref,   # (C, C) 1x1 convs (permuted)
    cmask0_ref, cmask1_ref,                           # (C, 1)  1 -> cos half, 0 -> sin half
    wt_h0_ref, wt_h1_ref, wt_w0_ref, wt_w1_ref,       # (C, 7)  depthwise tap weights
    maskw_ref, maskh_ref,                             # (7, HW) boundary masks for the taps
    wr1_ref, br1_ref,                                 # reweight MLP fc1
    wr2_0_ref, wr2_1_ref, wr2_2_ref,                  # reweight fc2 (softmax extraction folded)
    br2_0_ref, br2_1_ref, br2_2_ref,                  # (C, 1)
    wproj_ref, bproj_ref,                             # (C, C), (C, 1)
    scale2_ref, shift2_ref,                           # (C, 1)  norm2 folded BN
    wm1_ref, bm1_ref, wm2_ref, bm2_ref,               # block MLP
    out_ref,                                          # (C, HW) f32
    *, width, matmul_dtype,
):
    _, HW = x_ref.shape
    mdt = matmul_dtype

    xf = x_ref[...]

    # ---------- norm1 (BatchNorm2d, inference, folded) ----------
    x1 = xf * scale1_ref[...] + shift1_ref[...]
    x1m = x1.astype(mdt)                       # cast once; feeds 9 MXU matmuls

    def dotx(w_ref):                           # (Cout, C) @ (C, HW) -> f32
        return jnp.dot(w_ref[...], x1m, preferred_element_type=jnp.float32)

    cm0 = cmask0_ref[...]
    sm0 = 1.0 - cm0
    cm1 = cmask1_ref[...]
    sm1 = 1.0 - cm1

    # One PATM spatial branch (tfc_h shifts along W: unit=1; tfc_w along H:
    # unit=width).  theta/fc weights were row-permuted offline so row o already
    # holds the source channel of grouped-conv input channel 2o+j; cos-vs-sin
    # is a per-row 0/1 blend.  The 7-tap depthwise conv is 6 lane rolls +
    # boundary masks -- no (HW,HW) shift matmuls.
    def spatial_mix(wth0_ref, bth0_ref, wfc0_ref,
                    wth1_ref, bth1_ref, wfc1_ref,
                    wt0_ref, wt1_ref, mask_ref, unit):
        th0 = jnp.maximum(dotx(wth0_ref) + bth0_ref[...], 0.0)
        a0 = dotx(wfc0_ref) * (cm0 * jnp.cos(th0) + sm0 * jnp.sin(th0))
        th1 = jnp.maximum(dotx(wth1_ref) + bth1_ref[...], 0.0)
        a1 = dotx(wfc1_ref) * (cm1 * jnp.cos(th1) + sm1 * jnp.sin(th1))
        wt0 = wt0_ref[...]
        wt1 = wt1_ref[...]
        acc = wt0[:, 3:4] * a0 + wt1[:, 3:4] * a1           # centre tap (d = 0)
        for k in (0, 1, 2, 4, 5, 6):                         # static unroll
            d = k - 3
            s = (-d * unit) % HW                             # row f reads f + d*unit
            u = wt0[:, k:k + 1] * pltpu.roll(a0, shift=s, axis=1) \
                + wt1[:, k:k + 1] * pltpu.roll(a1, shift=s, axis=1)
            acc = acc + u * mask_ref[pl.ds(k, 1), :]
        return acc

    # finish the h branch before starting the w branch (fewer live (C,HW) slabs)
    h_out = spatial_mix(wth_h0_ref, bth_h0_ref, wfc_h0_ref,
                        wth_h1_ref, bth_h1_ref, wfc_h1_ref,
                        wt_h0_ref, wt_h1_ref, maskw_ref, 1)
    w_out = spatial_mix(wth_w0_ref, bth_w0_ref, wfc_w0_ref,
                        wth_w1_ref, bth_w1_ref, wfc_w1_ref,
                        wt_w0_ref, wt_w1_ref, maskh_ref, width)
    c_b = dotx(wfc_c_ref)

    # adaptive_avg_pool2d(1) -> reweight MLP -> softmax over the 3 branches
    pool = jnp.mean(h_out + w_out + c_b, axis=1, keepdims=True)          # (C, 1)
    r = _gelu(jnp.dot(wr1_ref[...], pool.astype(mdt),
                      preferred_element_type=jnp.float32) + br1_ref[...])
    rm = r.astype(mdt)

    def logits(w_ref, b_ref):                                            # (C, 1)
        return jnp.dot(w_ref[...], rm, preferred_element_type=jnp.float32) + b_ref[...]

    l0 = logits(wr2_0_ref, br2_0_ref)
    l1 = logits(wr2_1_ref, br2_1_ref)
    l2 = logits(wr2_2_ref, br2_2_ref)
    m = jnp.maximum(jnp.maximum(l0, l1), l2)
    z0, z1, z2 = jnp.exp(l0 - m), jnp.exp(l1 - m), jnp.exp(l2 - m)
    inv = pl.reciprocal(z0 + z1 + z2, approx=True)                       # EUP divide

    attn = h_out * (z0 * inv) + w_out * (z1 * inv) + c_b * (z2 * inv)
    attn = jnp.dot(wproj_ref[...], attn.astype(mdt),
                   preferred_element_type=jnp.float32) + bproj_ref[...]

    y1 = xf + attn                                                       # residual 1

    # ---------- MLP branch ----------
    x2 = y1 * scale2_ref[...] + shift2_ref[...]                          # norm2 folded
    hmid = _gelu(jnp.dot(wm1_ref[...], x2.astype(mdt),
                         preferred_element_type=jnp.float32) + bm1_ref[...])
    y2 = y1 + jnp.dot(wm2_ref[...], hmid.astype(mdt),
                      preferred_element_type=jnp.float32) + bm2_ref[...]

    out_ref[...] = y2                                                    # single lane-dense store


# ----------------------------------------------------------------------------
# parameter preparation (glue, plain JAX / numpy, done once outside the kernel)
# ----------------------------------------------------------------------------
def _fold_bn(gamma, beta, mean, var, eps=EPS):
    s = gamma / jnp.sqrt(var + eps)
    return s, beta - mean * s


def _prepare_kernel_params(p, C, H, W, matmul_dtype):
    HW = H * W
    f32 = jnp.float32

    def as_w(a):    # MXU matmul operands (bf16 by default): halves DMA/VMEM
        return jnp.asarray(a, matmul_dtype)

    def as_f(a):    # elementwise operands stay f32
        return jnp.asarray(a, f32)

    s1, b1 = _fold_bn(*p['norm1'])
    s2, b2 = _fold_bn(*p['norm2'])

    # theta convs: 1x1 conv (+bias) with the following BN folded in
    def theta_fold(w, b, bn):
        s, sh = _fold_bn(*bn)
        w2 = w[:, :, 0, 0]                      # (Cout, Cin)
        return w2 * s[:, None], b * s + sh

    Wth_h, bth_h = theta_fold(p['th_h_w'], p['th_h_b'], p['th_h_bn'])
    Wth_w, bth_w = theta_fold(p['th_w_w'], p['th_w_b'], p['th_w_bn'])

    Wfc_h = p['fc_h_w'][:, :, 0, 0]
    Wfc_w = p['fc_w_w'][:, :, 0, 0]
    Wfc_c = p['fc_c_w'][:, :, 0, 0]

    # Grouped (2C -> C, groups=C) conv: bank j of group o reads cat-channel
    # m = 2o + j, i.e. source channel m (cos half) if m < C else m - C (sin
    # half).  Fold this gather offline into row-permuted theta/fc weights and
    # keep a per-row cos/sin selector mask (replaces 8 one-hot matmuls).
    m0 = 2 * np.arange(C)
    m1 = 2 * np.arange(C) + 1
    src0 = np.where(m0 < C, m0, m0 - C)
    src1 = np.where(m1 < C, m1, m1 - C)
    cmask0 = (m0 < C).astype(np.float32)[:, None]
    cmask1 = (m1 < C).astype(np.float32)[:, None]

    # boundary masks for the 7-tap lane shifts on the flattened (h*W + w) axis
    wc = np.arange(HW) % W
    hc = np.arange(HW) // W
    maskw = np.stack([((wc + k - 3 >= 0) & (wc + k - 3 < W)) for k in range(7)]).astype(np.float32)
    maskh = np.stack([((hc + k - 3 >= 0) & (hc + k - 3 < H)) for k in range(7)]).astype(np.float32)

    # reweight MLP; fold the softmax lane extraction (reshape(B, C, 3)) into
    # fc2: branch-k logits for channel c live at output row 3c + k.
    Wr1, br1 = p['rw1_w'][:, :, 0, 0], p['rw1_b']
    Wr2, br2 = p['rw2_w'][:, :, 0, 0], p['rw2_b']

    kp = [
        as_f(s1[:, None]), as_f(b1[:, None]),
        as_w(Wth_h[src0]), as_w(Wth_h[src1]),
        as_f(bth_h[src0][:, None]), as_f(bth_h[src1][:, None]),
        as_w(Wth_w[src0]), as_w(Wth_w[src1]),
        as_f(bth_w[src0][:, None]), as_f(bth_w[src1][:, None]),
        as_w(Wfc_h[src0]), as_w(Wfc_h[src1]),
        as_w(Wfc_w[src0]), as_w(Wfc_w[src1]),
        as_w(Wfc_c),
        as_f(cmask0), as_f(cmask1),
        as_f(p['tfc_h_w'][:, 0, 0, :]), as_f(p['tfc_h_w'][:, 1, 0, :]),
        as_f(p['tfc_w_w'][:, 0, :, 0]), as_f(p['tfc_w_w'][:, 1, :, 0]),
        as_f(maskw), as_f(maskh),
        as_w(Wr1), as_f(br1[:, None]),
        as_w(Wr2[0::3, :]), as_w(Wr2[1::3, :]), as_w(Wr2[2::3, :]),
        as_f(br2[0::3][:, None]), as_f(br2[1::3][:, None]), as_f(br2[2::3][:, None]),
        as_w(p['proj_w'][:, :, 0, 0]), as_f(p['proj_b'][:, None]),
        as_f(s2[:, None]), as_f(b2[:, None]),
        as_w(p['m1_w'][:, :, 0, 0]), as_f(p['m1_b'][:, None]),
        as_w(p['m2_w'][:, :, 0, 0]), as_f(p['m2_b'][:, None]),
    ]
    return kp


def waveblock_pallas(x_nchw, params, *, matmul_dtype=jnp.bfloat16):
    B, C, H, W = x_nchw.shape
    HW = H * W
    # NCHW -> (B, C, H*W): channels on sublanes, spatial on lanes.  No
    # transpose needed; output last dim (HW) is lane-dense.
    x = x_nchw.reshape(B, C, HW).astype(jnp.float32)
    kp = _prepare_kernel_params(params, C, H, W, matmul_dtype)

    # every folded parameter is 2-D and grid-invariant (same block each step)
    def const_spec(a):
        assert a.ndim == 2
        return pl.BlockSpec(a.shape, lambda b: (0, 0))

    kernel = functools.partial(waveblock_kernel, width=W, matmul_dtype=matmul_dtype)

    out = pl.pallas_call(
        kernel,
        out_shape=jax.ShapeDtypeStruct((B, C, HW), jnp.float32),
        grid=(B,),
        in_specs=[pl.BlockSpec((None, C, HW), lambda b: (b, 0, 0))]
                 + [const_spec(a) for a in kp],
        out_specs=pl.BlockSpec((None, C, HW), lambda b: (b, 0, 0)),
        compiler_params=pltpu.CompilerParams(dimension_semantics=("parallel",)),
    )(x, *kp)

    return out.reshape(B, C, H, W)


# ----------------------------------------------------------------------------
# deterministic parameter init (shapes follow the PyTorch module __init__)
# ----------------------------------------------------------------------------
def init_params(key, C, mlp_ratio=4.0):
    Cq = C // 4
    Ch = int(C * mlp_ratio)
    ks = iter(jax.random.split(key, 40))
    nrm = lambda shape, s=0.1: s * jax.random.normal(next(ks), shape, jnp.float32)

    def bn_params(c):
        return (1.0 + 0.1 * jax.random.normal(next(ks), (c,), jnp.float32),   # gamma
                0.1 * jax.random.normal(next(ks), (c,), jnp.float32),         # beta
                0.1 * jax.random.normal(next(ks), (c,), jnp.float32),         # running_mean
                jax.random.uniform(next(ks), (c,), jnp.float32, 0.5, 1.5))    # running_var

    return {
        'norm1': bn_params(C),
        'norm2': bn_params(C),
        'th_h_w': nrm((C, C, 1, 1), 0.5), 'th_h_b': nrm((C,)), 'th_h_bn': bn_params(C),
        'th_w_w': nrm((C, C, 1, 1), 0.5), 'th_w_b': nrm((C,)), 'th_w_bn': bn_params(C),
        'fc_h_w': nrm((C, C, 1, 1)), 'fc_w_w': nrm((C, C, 1, 1)), 'fc_c_w': nrm((C, C, 1, 1)),
        'tfc_h_w': nrm((C, 2, 1, 7)), 'tfc_w_w': nrm((C, 2, 7, 1)),
        'rw1_w': nrm((Cq, C, 1, 1)), 'rw1_b': nrm((Cq,)),
        'rw2_w': nrm((3 * C, Cq, 1, 1)), 'rw2_b': nrm((3 * C,)),
        'proj_w': nrm((C, C, 1, 1)), 'proj_b': nrm((C,)),
        'm1_w': nrm((Ch, C, 1, 1)), 'm1_b': nrm((Ch,)),
        'm2_w': nrm((C, Ch, 1, 1)), 'm2_b': nrm((C,)),
    }


# ----------------------------------------------------------------------------
# pure-JAX reference (mirrors the PyTorch forward in NCHW, BN in eval mode)
# ----------------------------------------------------------------------------
def waveblock_ref(x, p):
    B, C, H, W = x.shape
    hp = 'highest'

    def conv1x1(v, w, b=None):
        y = jnp.einsum('bihw,oi->bohw', v, w[:, :, 0, 0], precision=hp)
        if b is not None:
            y = y + b[None, :, None, None]
        return y

    def bn(v, stats):
        g, be, mu, var = stats
        s = g / jnp.sqrt(var + EPS)
        return (v - mu[None, :, None, None]) * s[None, :, None, None] + be[None, :, None, None]

    dn = ('NCHW', 'OIHW', 'NCHW')

    x1 = bn(x, p['norm1'])
    th_h = jax.nn.relu(bn(conv1x1(x1, p['th_h_w'], p['th_h_b']), p['th_h_bn']))
    th_w = jax.nn.relu(bn(conv1x1(x1, p['th_w_w'], p['th_w_b']), p['th_w_bn']))
    x_h = conv1x1(x1, p['fc_h_w'])
    x_w = conv1x1(x1, p['fc_w_w'])
    cat_h = jnp.concatenate([x_h * jnp.cos(th_h), x_h * jnp.sin(th_h)], axis=1)
    cat_w = jnp.concatenate([x_w * jnp.cos(th_w), x_w * jnp.sin(th_w)], axis=1)
    h = lax.conv_general_dilated(cat_h, p['tfc_h_w'], (1, 1), ((0, 0), (3, 3)),
                                 feature_group_count=C, dimension_numbers=dn, precision=hp)
    w = lax.conv_general_dilated(cat_w, p['tfc_w_w'], (1, 1), ((3, 3), (0, 0)),
                                 feature_group_count=C, dimension_numbers=dn, precision=hp)
    c = conv1x1(x1, p['fc_c_w'])
    a = jnp.mean(h + w + c, axis=(2, 3), keepdims=True)
    a = conv1x1(a, p['rw1_w'], p['rw1_b'])
    a = jax.nn.gelu(a, approximate=False)
    a = conv1x1(a, p['rw2_w'], p['rw2_b'])
    a = a.reshape(B, C, 3).transpose(2, 0, 1)
    a = jax.nn.softmax(a, axis=0)[..., None, None]
    xa = h * a[0] + w * a[1] + c * a[2]
    xa = conv1x1(xa, p['proj_w'], p['proj_b'])
    y1 = x + xa
    x2 = bn(y1, p['norm2'])
    m = conv1x1(x2, p['m1_w'], p['m1_b'])
    m = jax.nn.gelu(m, approximate=False)
    m = conv1x1(m, p['m2_w'], p['m2_b'])
    return y1 + m


if __name__ == "__main__":
    B, C, H, W = 2, 8, 16, 16     # dim=8 -> mlp hidden=32, reweight hidden=dim//4=2
    key = jax.random.PRNGKey(0)
    kx, kparam = jax.random.split(key)
    x = jax.random.normal(kx, (B, C, H, W), jnp.float32)
    params = init_params(kparam, C)

    ref = waveblock_ref(x, params)
    ref_scale = float(jnp.max(jnp.abs(ref))) + 1e-6

    # f32 MXU path: check that the restructured math (rolls, folded gathers,
    # folded softmax extraction, folded BN) matches the reference.
    out_f32 = jax.block_until_ready(waveblock_pallas(x, params, matmul_dtype=jnp.float32))
    assert out_f32.shape == (B, C, H, W)
    err_f32 = float(jnp.max(jnp.abs(out_f32 - ref))) / ref_scale
    assert err_f32 < 2e-2, f"f32 kernel/reference mismatch, rel err = {err_f32}"

    # bf16 MXU path (production default): looser tolerance for the reduced
    # matmul precision.
    out_bf16 = jax.block_until_ready(waveblock_pallas(x, params))  # bf16 default
    err_bf16 = float(jnp.max(jnp.abs(out_bf16 - ref))) / ref_scale
    assert err_bf16 < 5e-2, f"bf16 kernel/reference mismatch, rel err = {err_bf16}"

    print("KERNEL_OK")
</pallas_src>

<mosaic_0001>
module attributes {stable_mosaic.version = 11 : i64} {
  func.func @waveblock_kernel(%arg0: i32, %arg1: memref<1x8x256xf32, #tpu.memory_space<vmem>>, %arg2: memref<8x1xf32, #tpu.memory_space<vmem>>, %arg3: memref<8x1xf32, #tpu.memory_space<vmem>>, %arg4: memref<8x8xf32, #tpu.memory_space<vmem>>, %arg5: memref<8x8xf32, #tpu.memory_space<vmem>>, %arg6: memref<8x1xf32, #tpu.memory_space<vmem>>, %arg7: memref<8x1xf32, #tpu.memory_space<vmem>>, %arg8: memref<8x8xf32, #tpu.memory_space<vmem>>, %arg9: memref<8x8xf32, #tpu.memory_space<vmem>>, %arg10: memref<8x1xf32, #tpu.memory_space<vmem>>, %arg11: memref<8x1xf32, #tpu.memory_space<vmem>>, %arg12: memref<8x8xf32, #tpu.memory_space<vmem>>, %arg13: memref<8x8xf32, #tpu.memory_space<vmem>>, %arg14: memref<8x8xf32, #tpu.memory_space<vmem>>, %arg15: memref<8x8xf32, #tpu.memory_space<vmem>>, %arg16: memref<8x8xf32, #tpu.memory_space<vmem>>, %arg17: memref<8x1xf32, #tpu.memory_space<vmem>>, %arg18: memref<8x1xf32, #tpu.memory_space<vmem>>, %arg19: memref<8x7xf32, #tpu.memory_space<vmem>>, %arg20: memref<8x7xf32, #tpu.memory_space<vmem>>, %arg21: memref<8x7xf32, #tpu.memory_space<vmem>>, %arg22: memref<8x7xf32, #tpu.memory_space<vmem>>, %arg23: memref<7x256xf32, #tpu.memory_space<vmem>>, %arg24: memref<7x256xf32, #tpu.memory_space<vmem>>, %arg25: memref<2x8xf32, #tpu.memory_space<vmem>>, %arg26: memref<2x1xf32, #tpu.memory_space<vmem>>, %arg27: memref<8x2xf32, #tpu.memory_space<vmem>>, %arg28: memref<8x2xf32, #tpu.memory_space<vmem>>, %arg29: memref<8x2xf32, #tpu.memory_space<vmem>>, %arg30: memref<8x1xf32, #tpu.memory_space<vmem>>, %arg31: memref<8x1xf32, #tpu.memory_space<vmem>>, %arg32: memref<8x1xf32, #tpu.memory_space<vmem>>, %arg33: memref<8x8xf32, #tpu.memory_space<vmem>>, %arg34: memref<8x1xf32, #tpu.memory_space<vmem>>, %arg35: memref<8x1xf32, #tpu.memory_space<vmem>>, %arg36: memref<8x1xf32, #tpu.memory_space<vmem>>, %arg37: memref<32x8xf32, #tpu.memory_space<vmem>>, %arg38: memref<32x1xf32, #tpu.memory_space<vmem>>, %arg39: memref<8x32xf32, #tpu.memory_space<vmem>>, %arg40: memref<8x1xf32, #tpu.memory_space<vmem>>, %arg41: memref<1x8x256xf32, #tpu.memory_space<vmem>>) attributes {dimension_semantics = [#tpu.dimension_semantics<parallel>], iteration_bounds = array<i64: 2>, scalar_prefetch = 0 : i64, scratch_operands = 0 : i64, tpu.core_type = #tpu.core_type<tc>, window_params = [{transform_indices = @transform_0, window_bounds = array<i64: 1, 8, 256>}, {pipeline_mode = #tpu.pipeline_mode<synchronous>, transform_indices = @transform_1, window_bounds = array<i64: 8, 1>}, {pipeline_mode = #tpu.pipeline_mode<synchronous>, transform_indices = @transform_2, window_bounds = array<i64: 8, 1>}, {pipeline_mode = #tpu.pipeline_mode<synchronous>, transform_indices = @transform_3, window_bounds = array<i64: 8, 8>}, {pipeline_mode = #tpu.pipeline_mode<synchronous>, transform_indices = @transform_4, window_bounds = array<i64: 8, 8>}, {pipeline_mode = #tpu.pipeline_mode<synchronous>, transform_indices = @transform_5, window_bounds = array<i64: 8, 1>}, {pipeline_mode = #tpu.pipeline_mode<synchronous>, transform_indices = @transform_6, window_bounds = array<i64: 8, 1>}, {pipeline_mode = #tpu.pipeline_mode<synchronous>, transform_indices = @transform_7, window_bounds = array<i64: 8, 8>}, {pipeline_mode = #tpu.pipeline_mode<synchronous>, transform_indices = @transform_8, window_bounds = array<i64: 8, 8>}, {pipeline_mode = #tpu.pipeline_mode<synchronous>, transform_indices = @transform_9, window_bounds = array<i64: 8, 1>}, {pipeline_mode = #tpu.pipeline_mode<synchronous>, transform_indices = @transform_10, window_bounds = array<i64: 8, 1>}, {pipeline_mode = #tpu.pipeline_mode<synchronous>, transform_indices = @transform_11, window_bounds = array<i64: 8, 8>}, {pipeline_mode = #tpu.pipeline_mode<synchronous>, transform_indices = @transform_12, window_bounds = array<i64: 8, 8>}, {pipeline_mode = #tpu.pipeline_mode<synchronous>, transform_indices = @transform_13, window_bounds = array<i64: 8, 8>}, {pipeline_mode = #tpu.pipeline_mode<synchronous>, transform_indices = @transform_14, window_bounds = array<i64: 8, 8>}, {pipeline_mode = #tpu.pipeline_mode<synchronous>, transform_indices = @transform_15, window_bounds = array<i64: 8, 8>}, {pipeline_mode = #tpu.pipeline_mode<synchronous>, transform_indices = @transform_16, window_bounds = array<i64: 8, 1>}, {pipeline_mode = #tpu.pipeline_mode<synchronous>, transform_indices = @transform_17, window_bounds = array<i64: 8, 1>}, {pipeline_mode = #tpu.pipeline_mode<synchronous>, transform_indices = @transform_18, window_bounds = array<i64: 8, 7>}, {pipeline_mode = #tpu.pipeline_mode<synchronous>, transform_indices = @transform_19, window_bounds = array<i64: 8, 7>}, {pipeline_mode = #tpu.pipeline_mode<synchronous>, transform_indices = @transform_20, window_bounds = array<i64: 8, 7>}, {pipeline_mode = #tpu.pipeline_mode<synchronous>, transform_indices = @transform_21, window_bounds = array<i64: 8, 7>}, {pipeline_mode = #tpu.pipeline_mode<synchronous>, transform_indices = @transform_22, window_bounds = array<i64: 7, 256>}, {pipeline_mode = #tpu.pipeline_mode<synchronous>, transform_indices = @transform_23, window_bounds = array<i64: 7, 256>}, {pipeline_mode = #tpu.pipeline_mode<synchronous>, transform_indices = @transform_24, window_bounds = array<i64: 2, 8>}, {pipeline_mode = #tpu.pipeline_mode<synchronous>, transform_indices = @transform_25, window_bounds = array<i64: 2, 1>}, {pipeline_mode = #tpu.pipeline_mode<synchronous>, transform_indices = @transform_26, window_bounds = array<i64: 8, 2>}, {pipeline_mode = #tpu.pipeline_mode<synchronous>, transform_indices = @transform_27, window_bounds = array<i64: 8, 2>}, {pipeline_mode = #tpu.pipeline_mode<synchronous>, transform_indices = @transform_28, window_bounds = array<i64: 8, 2>}, {pipeline_mode = #tpu.pipeline_mode<synchronous>, transform_indices = @transform_29, window_bounds = array<i64: 8, 1>}, {pipeline_mode = #tpu.pipeline_mode<synchronous>, transform_indices = @transform_30, window_bounds = array<i64: 8, 1>}, {pipeline_mode = #tpu.pipeline_mode<synchronous>, transform_indices = @transform_31, window_bounds = array<i64: 8, 1>}, {pipeline_mode = #tpu.pipeline_mode<synchronous>, transform_indices = @transform_32, window_bounds = array<i64: 8, 8>}, {pipeline_mode = #tpu.pipeline_mode<synchronous>, transform_indices = @transform_33, window_bounds = array<i64: 8, 1>}, {pipeline_mode = #tpu.pipeline_mode<synchronous>, transform_indices = @transform_34, window_bounds = array<i64: 8, 1>}, {pipeline_mode = #tpu.pipeline_mode<synchronous>, transform_indices = @transform_35, window_bounds = array<i64: 8, 1>}, {pipeline_mode = #tpu.pipeline_mode<synchronous>, transform_indices = @transform_36, window_bounds = array<i64: 32, 8>}, {pipeline_mode = #tpu.pipeline_mode<synchronous>, transform_indices = @transform_37, window_bounds = array<i64: 32, 1>}, {pipeline_mode = #tpu.pipeline_mode<synchronous>, transform_indices = @transform_38, window_bounds = array<i64: 8, 32>}, {pipeline_mode = #tpu.pipeline_mode<synchronous>, transform_indices = @transform_39, window_bounds = array<i64: 8, 1>}, {transform_indices = @transform_40, window_bounds = array<i64: 1, 8, 256>}]} {
    %c0 = arith.constant 0 : index
    %c0_0 = arith.constant 0 : index
    %c0_1 = arith.constant 0 : index
    %0 = vector.load %arg1[%c0, %c0_0, %c0_1] : memref<1x8x256xf32, #tpu.memory_space<vmem>>, vector<1x8x256xf32>
    %1 = vector.shape_cast %0 : vector<1x8x256xf32> to vector<8x256xf32>
    %c0_2 = arith.constant 0 : index
    %c0_3 = arith.constant 0 : index
    %2 = vector.load %arg2[%c0_2, %c0_3] : memref<8x1xf32, #tpu.memory_space<vmem>>, vector<8x1xf32>
    %3 = vector.broadcast %2 : vector<8x1xf32> to vector<8x256xf32>
    %4 = arith.mulf %1, %3 : vector<8x256xf32>
    %c0_4 = arith.constant 0 : index
    %c0_5 = arith.constant 0 : index
    %5 = vector.load %arg3[%c0_4, %c0_5] : memref<8x1xf32, #tpu.memory_space<vmem>>, vector<8x1xf32>
    %6 = vector.broadcast %5 : vector<8x1xf32> to vector<8x256xf32>
    %7 = arith.addf %4, %6 : vector<8x256xf32>
    %c0_6 = arith.constant 0 : index
    %c0_7 = arith.constant 0 : index
    %8 = vector.load %arg17[%c0_6, %c0_7] : memref<8x1xf32, #tpu.memory_space<vmem>>, vector<8x1xf32>
    %cst = arith.constant 1.000000e+00 : f32
    %9 = vector.broadcast %cst : f32 to vector<8x1xf32>
    %10 = arith.subf %9, %8 : vector<8x1xf32>
    %c0_8 = arith.constant 0 : index
    %c0_9 = arith.constant 0 : index
    %11 = vector.load %arg18[%c0_8, %c0_9] : memref<8x1xf32, #tpu.memory_space<vmem>>, vector<8x1xf32>
    %cst_10 = arith.constant 1.000000e+00 : f32
    %12 = vector.broadcast %cst_10 : f32 to vector<8x1xf32>
    %13 = arith.subf %12, %11 : vector<8x1xf32>
    %c0_11 = arith.constant 0 : index
    %c0_12 = arith.constant 0 : index
    %14 = vector.load %arg4[%c0_11, %c0_12] : memref<8x8xf32, #tpu.memory_space<vmem>>, vector<8x8xf32>
    %cst_13 = arith.constant dense<0.000000e+00> : vector<8x256xf32>
    %15 = tpu.matmul %14, %7, %cst_13 {dimension_numbers = #tpu.dot_dimension_numbers<[1], [0], [0], [1], [0, 0, 1, 1], [], []>} : vector<8x8xf32>, vector<8x256xf32>, vector<8x256xf32> -> vector<8x256xf32>
    %c0_14 = arith.constant 0 : index
    %c0_15 = arith.constant 0 : index
    %16 = vector.load %arg6[%c0_14, %c0_15] : memref<8x1xf32, #tpu.memory_space<vmem>>, vector<8x1xf32>
    %17 = vector.broadcast %16 : vector<8x1xf32> to vector<8x256xf32>
    %18 = arith.addf %15, %17 : vector<8x256xf32>
    %cst_16 = arith.constant 0.000000e+00 : f32
    %19 = vector.broadcast %cst_16 : f32 to vector<8x256xf32>
    %20 = arith.maximumf %18, %19 : vector<8x256xf32>
    %c0_17 = arith.constant 0 : index
    %c0_18 = arith.constant 0 : index
    %21 = vector.load %arg12[%c0_17, %c0_18] : memref<8x8xf32, #tpu.memory_space<vmem>>, vector<8x8xf32>
    %cst_19 = arith.constant dense<0.000000e+00> : vector<8x256xf32>
    %22 = tpu.matmul %21, %7, %cst_19 {dimension_numbers = #tpu.dot_dimension_numbers<[1], [0], [0], [1], [0, 0, 1, 1], [], []>} : vector<8x8xf32>, vector<8x256xf32>, vector<8x256xf32> -> vector<8x256xf32>
    %23 = math.cos %20 : vector<8x256xf32>
    %24 = vector.broadcast %8 : vector<8x1xf32> to vector<8x256xf32>
    %25 = arith.mulf %24, %23 : vector<8x256xf32>
    %26 = math.sin %20 : vector<8x256xf32>
    %27 = vector.broadcast %10 : vector<8x1xf32> to vector<8x256xf32>
    %28 = arith.mulf %27, %26 : vector<8x256xf32>
    %29 = arith.addf %25, %28 : vector<8x256xf32>
    %30 = arith.mulf %22, %29 : vector<8x256xf32>
    %c0_20 = arith.constant 0 : index
    %c0_21 = arith.constant 0 : index
    %31 = vector.load %arg5[%c0_20, %c0_21] : memref<8x8xf32, #tpu.memory_space<vmem>>, vector<8x8xf32>
    %cst_22 = arith.constant dense<0.000000e+00> : vector<8x256xf32>
    %32 = tpu.matmul %31, %7, %cst_22 {dimension_numbers = #tpu.dot_dimension_numbers<[1], [0], [0], [1], [0, 0, 1, 1], [], []>} : vector<8x8xf32>, vector<8x256xf32>, vector<8x256xf32> -> vector<8x256xf32>
    %c0_23 = arith.constant 0 : index
    %c0_24 = arith.constant 0 : index
    %33 = vector.load %arg7[%c0_23, %c0_24] : memref<8x1xf32, #tpu.memory_space<vmem>>, vector<8x1xf32>
    %34 = vector.broadcast %33 : vector<8x1xf32> to vector<8x256xf32>
    %35 = arith.addf %32, %34 : vector<8x256xf32>
    %cst_25 = arith.constant 0.000000e+00 : f32
    %36 = vector.broadcast %cst_25 : f32 to vector<8x256xf32>
    %37 = arith.maximumf %35, %36 : vector<8x256xf32>
    %c0_26 = arith.constant 0 : index
    %c0_27 = arith.constant 0 : index
    %38 = vector.load %arg13[%c0_26, %c0_27] : memref<8x8xf32, #tpu.memory_space<vmem>>, vector<8x8xf32>
    %cst_28 = arith.constant dense<0.000000e+00> : vector<8x256xf32>
    %39 = tpu.matmul %38, %7, %cst_28 {dimension_numbers = #tpu.dot_dimension_numbers<[1], [0], [0], [1], [0, 0, 1, 1], [], []>} : vector<8x8xf32>, vector<8x256xf32>, vector<8x256xf32> -> vector<8x256xf32>
    %40 = math.cos %37 : vector<8x256xf32>
    %41 = vector.broadcast %11 : vector<8x1xf32> to vector<8x256xf32>
    %42 = arith.mulf %41, %40 : vector<8x256xf32>
    %43 = math.sin %37 : vector<8x256xf32>
    %44 = vector.broadcast %13 : vector<8x1xf32> to vector<8x256xf32>
    %45 = arith.mulf %44, %43 : vector<8x256xf32>
    %46 = arith.addf %42, %45 : vector<8x256xf32>
    %47 = arith.mulf %39, %46 : vector<8x256xf32>
    %c0_29 = arith.constant 0 : index
    %c0_30 = arith.constant 0 : index
    %48 = vector.load %arg19[%c0_29, %c0_30] : memref<8x7xf32, #tpu.memory_space<vmem>>, vector<8x7xf32>
    %c0_31 = arith.constant 0 : index
    %c0_32 = arith.constant 0 : index
    %49 = vector.load %arg20[%c0_31, %c0_32] : memref<8x7xf32, #tpu.memory_space<vmem>>, vector<8x7xf32>
    %50 = vector.extract_strided_slice %48 {offsets = [0, 3], sizes = [8, 1], strides = [1, 1]} : vector<8x7xf32> to vector<8x1xf32>
    %51 = vector.broadcast %50 : vector<8x1xf32> to vector<8x256xf32>
    %52 = arith.mulf %51, %30 : vector<8x256xf32>
    %53 = vector.extract_strided_slice %49 {offsets = [0, 3], sizes = [8, 1], strides = [1, 1]} : vector<8x7xf32> to vector<8x1xf32>
    %54 = vector.broadcast %53 : vector<8x1xf32> to vector<8x256xf32>
    %55 = arith.mulf %54, %47 : vector<8x256xf32>
    %56 = arith.addf %52, %55 : vector<8x256xf32>
    %57 = vector.extract_strided_slice %48 {offsets = [0, 0], sizes = [8, 1], strides = [1, 1]} : vector<8x7xf32> to vector<8x1xf32>
    %c3_i32 = arith.constant 3 : i32
    %58 = tpu.dynamic_rotate %30 by %c3_i32 dim 1 : vector<8x256xf32>, i32 -> vector<8x256xf32>
    %59 = vector.broadcast %57 : vector<8x1xf32> to vector<8x256xf32>
    %60 = arith.mulf %59, %58 : vector<8x256xf32>
    %61 = vector.extract_strided_slice %49 {offsets = [0, 0], sizes = [8, 1], strides = [1, 1]} : vector<8x7xf32> to vector<8x1xf32>
    %c3_i32_33 = arith.constant 3 : i32
    %62 = tpu.dynamic_rotate %47 by %c3_i32_33 dim 1 : vector<8x256xf32>, i32 -> vector<8x256xf32>
    %63 = vector.broadcast %61 : vector<8x1xf32> to vector<8x256xf32>
    %64 = arith.mulf %63, %62 : vector<8x256xf32>
    %65 = arith.addf %60, %64 : vector<8x256xf32>
    %c0_34 = arith.constant 0 : index
    %c0_35 = arith.constant 0 : index
    %66 = vector.load %arg23[%c0_34, %c0_35] : memref<7x256xf32, #tpu.memory_space<vmem>>, vector<1x256xf32>
    %67 = vector.broadcast %66 : vector<1x256xf32> to vector<8x256xf32>
    %68 = arith.mulf %65, %67 : vector<8x256xf32>
    %69 = arith.addf %56, %68 : vector<8x256xf32>
    %70 = vector.extract_strided_slice %48 {offsets = [0, 1], sizes = [8, 1], strides = [1, 1]} : vector<8x7xf32> to vector<8x1xf32>
    %c2_i32 = arith.constant 2 : i32
    %71 = tpu.dynamic_rotate %30 by %c2_i32 dim 1 : vector<8x256xf32>, i32 -> vector<8x256xf32>
    %72 = vector.broadcast %70 : vector<8x1xf32> to vector<8x256xf32>
    %73 = arith.mulf %72, %71 : vector<8x256xf32>
    %74 = vector.extract_strided_slice %49 {offsets = [0, 1], sizes = [8, 1], strides = [1, 1]} : vector<8x7xf32> to vector<8x1xf32>
    %c2_i32_36 = arith.constant 2 : i32
    %75 = tpu.dynamic_rotate %47 by %c2_i32_36 dim 1 : vector<8x256xf32>, i32 -> vector<8x256xf32>
    %76 = vector.broadcast %74 : vector<8x1xf32> to vector<8x256xf32>
    %77 = arith.mulf %76, %75 : vector<8x256xf32>
    %78 = arith.addf %73, %77 : vector<8x256xf32>
    %c1 = arith.constant 1 : index
    %c0_37 = arith.constant 0 : index
    %79 = vector.load %arg23[%c1, %c0_37] : memref<7x256xf32, #tpu.memory_space<vmem>>, vector<1x256xf32>
    %80 = vector.broadcast %79 : vector<1x256xf32> to vector<8x256xf32>
    %81 = arith.mulf %78, %80 : vector<8x256xf32>
    %82 = arith.addf %69, %81 : vector<8x256xf32>
    %83 = vector.extract_strided_slice %48 {offsets = [0, 2], sizes = [8, 1], strides = [1, 1]} : vector<8x7xf32> to vector<8x1xf32>
    %c1_i32 = arith.constant 1 : i32
    %84 = tpu.dynamic_rotate %30 by %c1_i32 dim 1 : vector<8x256xf32>, i32 -> vector<8x256xf32>
    %85 = vector.broadcast %83 : vector<8x1xf32> to vector<8x256xf32>
    %86 = arith.mulf %85, %84 : vector<8x256xf32>
    %87 = vector.extract_strided_slice %49 {offsets = [0, 2], sizes = [8, 1], strides = [1, 1]} : vector<8x7xf32> to vector<8x1xf32>
    %c1_i32_38 = arith.constant 1 : i32
    %88 = tpu.dynamic_rotate %47 by %c1_i32_38 dim 1 : vector<8x256xf32>, i32 -> vector<8x256xf32>
    %89 = vector.broadcast %87 : vector<8x1xf32> to vector<8x256xf32>
    %90 = arith.mulf %89, %88 : vector<8x256xf32>
    %91 = arith.addf %86, %90 : vector<8x256xf32>
    %c2 = arith.constant 2 : index
    %c0_39 = arith.constant 0 : index
    %92 = vector.load %arg23[%c2, %c0_39] : memref<7x256xf32, #tpu.memory_space<vmem>>, vector<1x256xf32>
    %93 = vector.broadcast %92 : vector<1x256xf32> to vector<8x256xf32>
    %94 = arith.mulf %91, %93 : vector<8x256xf32>
    %95 = arith.addf %82, %94 : vector<8x256xf32>
    %96 = vector.extract_strided_slice %48 {offsets = [0, 4], sizes = [8, 1], strides = [1, 1]} : vector<8x7xf32> to vector<8x1xf32>
    %c255_i32 = arith.constant 255 : i32
    %97 = tpu.dynamic_rotate %30 by %c255_i32 dim 1 : vector<8x256xf32>, i32 -> vector<8x256xf32>
    %98 = vector.broadcast %96 : vector<8x1xf32> to vector<8x256xf32>
    %99 = arith.mulf %98, %97 : vector<8x256xf32>
    %100 = vector.extract_strided_slice %49 {offsets = [0, 4], sizes = [8, 1], strides = [1, 1]} : vector<8x7xf32> to vector<8x1xf32>
    %c255_i32_40 = arith.constant 255 : i32
    %101 = tpu.dynamic_rotate %47 by %c255_i32_40 dim 1 : vector<8x256xf32>, i32 -> vector<8x256xf32>
    %102 = vector.broadcast %100 : vector<8x1xf32> to vector<8x256xf32>
    %103 = arith.mulf %102, %101 : vector<8x256xf32>
    %104 = arith.addf %99, %103 : vector<8x256xf32>
    %c4 = arith.constant 4 : index
    %c0_41 = arith.constant 0 : index
    %105 = vector.load %arg23[%c4, %c0_41] : memref<7x256xf32, #tpu.memory_space<vmem>>, vector<1x256xf32>
    %106 = vector.broadcast %105 : vector<1x256xf32> to vector<8x256xf32>
    %107 = arith.mulf %104, %106 : vector<8x256xf32>
    %108 = arith.addf %95, %107 : vector<8x256xf32>
    %109 = vector.extract_strided_slice %48 {offsets = [0, 5], sizes = [8, 1], strides = [1, 1]} : vector<8x7xf32> to vector<8x1xf32>
    %c254_i32 = arith.constant 254 : i32
    %110 = tpu.dynamic_rotate %30 by %c254_i32 dim 1 : vector<8x256xf32>, i32 -> vector<8x256xf32>
    %111 = vector.broadcast %109 : vector<8x1xf32> to vector<8x256xf32>
    %112 = arith.mulf %111, %110 : vector<8x256xf32>
    %113 = vector.extract_strided_slice %49 {offsets = [0, 5], sizes = [8, 1], strides = [1, 1]} : vector<8x7xf32> to vector<8x1xf32>
    %c254_i32_42 = arith.constant 254 : i32
    %114 = tpu.dynamic_rotate %47 by %c254_i32_42 dim 1 : vector<8x256xf32>, i32 -> vector<8x256xf32>
    %115 = vector.broadcast %113 : vector<8x1xf32> to vector<8x256xf32>
    %116 = arith.mulf %115, %114 : vector<8x256xf32>
    %117 = arith.addf %112, %116 : vector<8x256xf32>
    %c5 = arith.constant 5 : index
    %c0_43 = arith.constant 0 : index
    %118 = vector.load %arg23[%c5, %c0_43] : memref<7x256xf32, #tpu.memory_space<vmem>>, vector<1x256xf32>
    %119 = vector.broadcast %118 : vector<1x256xf32> to vector<8x256xf32>
    %120 = arith.mulf %117, %119 : vector<8x256xf32>
    %121 = arith.addf %108, %120 : vector<8x256xf32>
    %122 = vector.extract_strided_slice %48 {offsets = [0, 6], sizes = [8, 1], strides = [1, 1]} : vector<8x7xf32> to vector<8x1xf32>
    %c253_i32 = arith.constant 253 : i32
    %123 = tpu.dynamic_rotate %30 by %c253_i32 dim 1 : vector<8x256xf32>, i32 -> vector<8x256xf32>
    %124 = vector.broadcast %122 : vector<8x1xf32> to vector<8x256xf32>
    %125 = arith.mulf %124, %123 : vector<8x256xf32>
    %126 = vector.extract_strided_slice %49 {offsets = [0, 6], sizes = [8, 1], strides = [1, 1]} : vector<8x7xf32> to vector<8x1xf32>
    %c253_i32_44 = arith.constant 253 : i32
    %127 = tpu.dynamic_rotate %47 by %c253_i32_44 dim 1 : vector<8x256xf32>, i32 -> vector<8x256xf32>
    %128 = vector.broadcast %126 : vector<8x1xf32> to vector<8x256xf32>
    %129 = arith.mulf %128, %127 : vector<8x256xf32>
    %130 = arith.addf %125, %129 : vector<8x256xf32>
    %c6 = arith.constant 6 : index
    %c0_45 = arith.constant 0 : index
    %131 = vector.load %arg23[%c6, %c0_45] : memref<7x256xf32, #tpu.memory_space<vmem>>, vector<1x256xf32>
    %132 = vector.broadcast %131 : vector<1x256xf32> to vector<8x256xf32>
    %133 = arith.mulf %130, %132 : vector<8x256xf32>
    %134 = arith.addf %121, %133 : vector<8x256xf32>
    %c0_46 = arith.constant 0 : index
    %c0_47 = arith.constant 0 : index
    %135 = vector.load %arg8[%c0_46, %c0_47] : memref<8x8xf32, #tpu.memory_space<vmem>>, vector<8x8xf32>
    %cst_48 = arith.constant dense<0.000000e+00> : vector<8x256xf32>
    %136 = tpu.matmul %135, %7, %cst_48 {dimension_numbers = #tpu.dot_dimension_numbers<[1], [0], [0], [1], [0, 0, 1, 1], [], []>} : vector<8x8xf32>, vector<8x256xf32>, vector<8x256xf32> -> vector<8x256xf32>
    %c0_49 = arith.constant 0 : index
    %c0_50 = arith.constant 0 : index
    %137 = vector.load %arg10[%c0_49, %c0_50] : memref<8x1xf32, #tpu.memory_space<vmem>>, vector<8x1xf32>
    %138 = vector.broadcast %137 : vector<8x1xf32> to vector<8x256xf32>
    %139 = arith.addf %136, %138 : vector<8x256xf32>
    %cst_51 = arith.constant 0.000000e+00 : f32
    %140 = vector.broadcast %cst_51 : f32 to vector<8x256xf32>
    %141 = arith.maximumf %139, %140 : vector<8x256xf32>
    %c0_52 = arith.constant 0 : index
    %c0_53 = arith.constant 0 : index
    %142 = vector.load %arg14[%c0_52, %c0_53] : memref<8x8xf32, #tpu.memory_space<vmem>>, vector<8x8xf32>
    %cst_54 = arith.constant dense<0.000000e+00> : vector<8x256xf32>
    %143 = tpu.matmul %142, %7, %cst_54 {dimension_numbers = #tpu.dot_dimension_numbers<[1], [0], [0], [1], [0, 0, 1, 1], [], []>} : vector<8x8xf32>, vector<8x256xf32>, vector<8x256xf32> -> vector<8x256xf32>
    %144 = math.cos %141 : vector<8x256xf32>
    %145 = vector.broadcast %8 : vector<8x1xf32> to vector<8x256xf32>
    %146 = arith.mulf %145, %144 : vector<8x256xf32>
    %147 = math.sin %141 : vector<8x256xf32>
    %148 = vector.broadcast %10 : vector<8x1xf32> to vector<8x256xf32>
    %149 = arith.mulf %148, %147 : vector<8x256xf32>
    %150 = arith.addf %146, %149 : vector<8x256xf32>
    %151 = arith.mulf %143, %150 : vector<8x256xf32>
    %c0_55 = arith.constant 0 : index
    %c0_56 = arith.constant 0 : index
    %152 = vector.load %arg9[%c0_55, %c0_56] : memref<8x8xf32, #tpu.memory_space<vmem>>, vector<8x8xf32>
    %cst_57 = arith.constant dense<0.000000e+00> : vector<8x256xf32>
    %153 = tpu.matmul %152, %7, %cst_57 {dimension_numbers = #tpu.dot_dimension_numbers<[1], [0], [0], [1], [0, 0, 1, 1], [], []>} : vector<8x8xf32>, vector<8x256xf32>, vector<8x256xf32> -> vector<8x256xf32>
    %c0_58 = arith.constant 0 : index
    %c0_59 = arith.constant 0 : index
    %154 = vector.load %arg11[%c0_58, %c0_59] : memref<8x1xf32, #tpu.memory_space<vmem>>, vector<8x1xf32>
    %155 = vector.broadcast %154 : vector<8x1xf32> to vector<8x256xf32>
    %156 = arith.addf %153, %155 : vector<8x256xf32>
    %cst_60 = arith.constant 0.000000e+00 : f32
    %157 = vector.broadcast %cst_60 : f32 to vector<8x256xf32>
    %158 = arith.maximumf %156, %157 : vector<8x256xf32>
    %c0_61 = arith.constant 0 : index
    %c0_62 = arith.constant 0 : index
    %159 = vector.load %arg15[%c0_61, %c0_62] : memref<8x8xf32, #tpu.memory_space<vmem>>, vector<8x8xf32>
    %cst_63 = arith.constant dense<0.000000e+00> : vector<8x256xf32>
    %160 = tpu.matmul %159, %7, %cst_63 {dimension_numbers = #tpu.dot_dimension_numbers<[1], [0], [0], [1], [0, 0, 1, 1], [], []>} : vector<8x8xf32>, vector<8x256xf32>, vector<8x256xf32> -> vector<8x256xf32>
    %161 = math.cos %158 : vector<8x256xf32>
    %162 = vector.broadcast %11 : vector<8x1xf32> to vector<8x256xf32>
    %163 = arith.mulf %162, %161 : vector<8x256xf32>
    %164 = math.sin %158 : vector<8x256xf32>
    %165 = vector.broadcast %13 : vector<8x1xf32> to vector<8x256xf32>
    %166 = arith.mulf %165, %164 : vector<8x256xf32>
    %167 = arith.addf %163, %166 : vector<8x256xf32>
    %168 = arith.mulf %160, %167 : vector<8x256xf32>
    %c0_64 = arith.constant 0 : index
    %c0_65 = arith.constant 0 : index
    %169 = vector.load %arg21[%c0_64, %c0_65] : memref<8x7xf32, #tpu.memory_space<vmem>>, vector<8x7xf32>
    %c0_66 = arith.constant 0 : index
    %c0_67 = arith.constant 0 : index
    %170 = vector.load %arg22[%c0_66, %c0_67] : memref<8x7xf32, #tpu.memory_space<vmem>>, vector<8x7xf32>
    %171 = vector.extract_strided_slice %169 {offsets = [0, 3], sizes = [8, 1], strides = [1, 1]} : vector<8x7xf32> to vector<8x1xf32>
    %172 = vector.broadcast %171 : vector<8x1xf32> to vector<8x256xf32>
    %173 = arith.mulf %172, %151 : vector<8x256xf32>
    %174 = vector.extract_strided_slice %170 {offsets = [0, 3], sizes = [8, 1], strides = [1, 1]} : vector<8x7xf32> to vector<8x1xf32>
    %175 = vector.broadcast %174 : vector<8x1xf32> to vector<8x256xf32>
    %176 = arith.mulf %175, %168 : vector<8x256xf32>
    %177 = arith.addf %173, %176 : vector<8x256xf32>
    %178 = vector.extract_strided_slice %169 {offsets = [0, 0], sizes = [8, 1], strides = [1, 1]} : vector<8x7xf32> to vector<8x1xf32>
    %c48_i32 = arith.constant 48 : i32
    %179 = tpu.dynamic_rotate %151 by %c48_i32 dim 1 : vector<8x256xf32>, i32 -> vector<8x256xf32>
    %180 = vector.broadcast %178 : vector<8x1xf32> to vector<8x256xf32>
    %181 = arith.mulf %180, %179 : vector<8x256xf32>
    %182 = vector.extract_strided_slice %170 {offsets = [0, 0], sizes = [8, 1], strides = [1, 1]} : vector<8x7xf32> to vector<8x1xf32>
    %c48_i32_68 = arith.constant 48 : i32
    %183 = tpu.dynamic_rotate %168 by %c48_i32_68 dim 1 : vector<8x256xf32>, i32 -> vector<8x256xf32>
    %184 = vector.broadcast %182 : vector<8x1xf32> to vector<8x256xf32>
    %185 = arith.mulf %184, %183 : vector<8x256xf32>
    %186 = arith.addf %181, %185 : vector<8x256xf32>
    %c0_69 = arith.constant 0 : index
    %c0_70 = arith.constant 0 : index
    %187 = vector.load %arg24[%c0_69, %c0_70] : memref<7x256xf32, #tpu.memory_space<vmem>>, vector<1x256xf32>
    %188 = vector.broadcast %187 : vector<1x256xf32> to vector<8x256xf32>
    %189 = arith.mulf %186, %188 : vector<8x256xf32>
    %190 = arith.addf %177, %189 : vector<8x256xf32>
    %191 = vector.extract_strided_slice %169 {offsets = [0, 1], sizes = [8, 1], strides = [1, 1]} : vector<8x7xf32> to vector<8x1xf32>
    %c32_i32 = arith.constant 32 : i32
    %192 = tpu.dynamic_rotate %151 by %c32_i32 dim 1 : vector<8x256xf32>, i32 -> vector<8x256xf32>
    %193 = vector.broadcast %191 : vector<8x1xf32> to vector<8x256xf32>
    %194 = arith.mulf %193, %192 : vector<8x256xf32>
    %195 = vector.extract_strided_slice %170 {offsets = [0, 1], sizes = [8, 1], strides = [1, 1]} : vector<8x7xf32> to vector<8x1xf32>
    %c32_i32_71 = arith.constant 32 : i32
    %196 = tpu.dynamic_rotate %168 by %c32_i32_71 dim 1 : vector<8x256xf32>, i32 -> vector<8x256xf32>
    %197 = vector.broadcast %195 : vector<8x1xf32> to vector<8x256xf32>
    %198 = arith.mulf %197, %196 : vector<8x256xf32>
    %199 = arith.addf %194, %198 : vector<8x256xf32>
    %c1_72 = arith.constant 1 : index
    %c0_73 = arith.constant 0 : index
    %200 = vector.load %arg24[%c1_72, %c0_73] : memref<7x256xf32, #tpu.memory_space<vmem>>, vector<1x256xf32>
    %201 = vector.broadcast %200 : vector<1x256xf32> to vector<8x256xf32>
    %202 = arith.mulf %199, %201 : vector<8x256xf32>
    %203 = arith.addf %190, %202 : vector<8x256xf32>
    %204 = vector.extract_strided_slice %169 {offsets = [0, 2], sizes = [8, 1], strides = [1, 1]} : vector<8x7xf32> to vector<8x1xf32>
    %c16_i32 = arith.constant 16 : i32
    %205 = tpu.dynamic_rotate %151 by %c16_i32 dim 1 : vector<8x256xf32>, i32 -> vector<8x256xf32>
    %206 = vector.broadcast %204 : vector<8x1xf32> to vector<8x256xf32>
    %207 = arith.mulf %206, %205 : vector<8x256xf32>
    %208 = vector.extract_strided_slice %170 {offsets = [0, 2], sizes = [8, 1], strides = [1, 1]} : vector<8x7xf32> to vector<8x1xf32>
    %c16_i32_74 = arith.constant 16 : i32
    %209 = tpu.dynamic_rotate %168 by %c16_i32_74 dim 1 : vector<8x256xf32>, i32 -> vector<8x256xf32>
    %210 = vector.broadcast %208 : vector<8x1xf32> to vector<8x256xf32>
    %211 = arith.mulf %210, %209 : vector<8x256xf32>
    %212 = arith.addf %207, %211 : vector<8x256xf32>
    %c2_75 = arith.constant 2 : index
    %c0_76 = arith.constant 0 : index
    %213 = vector.load %arg24[%c2_75, %c0_76] : memref<7x256xf32, #tpu.memory_space<vmem>>, vector<1x256xf32>
    %214 = vector.broadcast %213 : vector<1x256xf32> to vector<8x256xf32>
    %215 = arith.mulf %212, %214 : vector<8x256xf32>
    %216 = arith.addf %203, %215 : vector<8x256xf32>
    %217 = vector.extract_strided_slice %169 {offsets = [0, 4], sizes = [8, 1], strides = [1, 1]} : vector<8x7xf32> to vector<8x1xf32>
    %c240_i32 = arith.constant 240 : i32
    %218 = tpu.dynamic_rotate %151 by %c240_i32 dim 1 : vector<8x256xf32>, i32 -> vector<8x256xf32>
    %219 = vector.broadcast %217 : vector<8x1xf32> to vector<8x256xf32>
    %220 = arith.mulf %219, %218 : vector<8x256xf32>
    %221 = vector.extract_strided_slice %170 {offsets = [0, 4], sizes = [8, 1], strides = [1, 1]} : vector<8x7xf32> to vector<8x1xf32>
    %c240_i32_77 = arith.constant 240 : i32
    %222 = tpu.dynamic_rotate %168 by %c240_i32_77 dim 1 : vector<8x256xf32>, i32 -> vector<8x256xf32>
    %223 = vector.broadcast %221 : vector<8x1xf32> to vector<8x256xf32>
    %224 = arith.mulf %223, %222 : vector<8x256xf32>
    %225 = arith.addf %220, %224 : vector<8x256xf32>
    %c4_78 = arith.constant 4 : index
    %c0_79 = arith.constant 0 : index
    %226 = vector.load %arg24[%c4_78, %c0_79] : memref<7x256xf32, #tpu.memory_space<vmem>>, vector<1x256xf32>
    %227 = vector.broadcast %226 : vector<1x256xf32> to vector<8x256xf32>
    %228 = arith.mulf %225, %227 : vector<8x256xf32>
    %229 = arith.addf %216, %228 : vector<8x256xf32>
    %230 = vector.extract_strided_slice %169 {offsets = [0, 5], sizes = [8, 1], strides = [1, 1]} : vector<8x7xf32> to vector<8x1xf32>
    %c224_i32 = arith.constant 224 : i32
    %231 = tpu.dynamic_rotate %151 by %c224_i32 dim 1 : vector<8x256xf32>, i32 -> vector<8x256xf32>
    %232 = vector.broadcast %230 : vector<8x1xf32> to vector<8x256xf32>
    %233 = arith.mulf %232, %231 : vector<8x256xf32>
    %234 = vector.extract_strided_slice %170 {offsets = [0, 5], sizes = [8, 1], strides = [1, 1]} : vector<8x7xf32> to vector<8x1xf32>
    %c224_i32_80 = arith.constant 224 : i32
    %235 = tpu.dynamic_rotate %168 by %c224_i32_80 dim 1 : vector<8x256xf32>, i32 -> vector<8x256xf32>
    %236 = vector.broadcast %234 : vector<8x1xf32> to vector<8x256xf32>
    %237 = arith.mulf %236, %235 : vector<8x256xf32>
    %238 = arith.addf %233, %237 : vector<8x256xf32>
    %c5_81 = arith.constant 5 : index
    %c0_82 = arith.constant 0 : index
    %239 = vector.load %arg24[%c5_81, %c0_82] : memref<7x256xf32, #tpu.memory_space<vmem>>, vector<1x256xf32>
    %240 = vector.broadcast %239 : vector<1x256xf32> to vector<8x256xf32>
    %241 = arith.mulf %238, %240 : vector<8x256xf32>
    %242 = arith.addf %229, %241 : vector<8x256xf32>
    %243 = vector.extract_strided_slice %169 {offsets = [0, 6], sizes = [8, 1], strides = [1, 1]} : vector<8x7xf32> to vector<8x1xf32>
    %c208_i32 = arith.constant 208 : i32
    %244 = tpu.dynamic_rotate %151 by %c208_i32 dim 1 : vector<8x256xf32>, i32 -> vector<8x256xf32>
    %245 = vector.broadcast %243 : vector<8x1xf32> to vector<8x256xf32>
    %246 = arith.mulf %245, %244 : vector<8x256xf32>
    %247 = vector.extract_strided_slice %170 {offsets = [0, 6], sizes = [8, 1], strides = [1, 1]} : vector<8x7xf32> to vector<8x1xf32>
    %c208_i32_83 = arith.constant 208 : i32
    %248 = tpu.dynamic_rotate %168 by %c208_i32_83 dim 1 : vector<8x256xf32>, i32 -> vector<8x256xf32>
    %249 = vector.broadcast %247 : vector<8x1xf32> to vector<8x256xf32>
    %250 = arith.mulf %249, %248 : vector<8x256xf32>
    %251 = arith.addf %246, %250 : vector<8x256xf32>
    %c6_84 = arith.constant 6 : index
    %c0_85 = arith.constant 0 : index
    %252 = vector.load %arg24[%c6_84, %c0_85] : memref<7x256xf32, #tpu.memory_space<vmem>>, vector<1x256xf32>
    %253 = vector.broadcast %252 : vector<1x256xf32> to vector<8x256xf32>
    %254 = arith.mulf %251, %253 : vector<8x256xf32>
    %255 = arith.addf %242, %254 : vector<8x256xf32>
    %c0_86 = arith.constant 0 : index
    %c0_87 = arith.constant 0 : index
    %256 = vector.load %arg16[%c0_86, %c0_87] : memref<8x8xf32, #tpu.memory_space<vmem>>, vector<8x8xf32>
    %cst_88 = arith.constant dense<0.000000e+00> : vector<8x256xf32>
    %257 = tpu.matmul %256, %7, %cst_88 {dimension_numbers = #tpu.dot_dimension_numbers<[1], [0], [0], [1], [0, 0, 1, 1], [], []>} : vector<8x8xf32>, vector<8x256xf32>, vector<8x256xf32> -> vector<8x256xf32>
    %258 = arith.addf %134, %255 : vector<8x256xf32>
    %259 = arith.addf %258, %257 : vector<8x256xf32>
    %cst_89 = arith.constant dense<0.000000e+00> : vector<8xf32>
    %260 = vector.multi_reduction <add>, %259, %cst_89 [1] : vector<8x256xf32> to vector<8xf32>
    %261 = vector.shape_cast %260 : vector<8xf32> to vector<8x1xf32>
    %cst_90 = arith.constant 2.560000e+02 : f32
    %262 = vector.broadcast %cst_90 : f32 to vector<8x1xf32>
    %263 = arith.divf %261, %262 : vector<8x1xf32>
    %c0_91 = arith.constant 0 : index
    %c0_92 = arith.constant 0 : index
    %264 = vector.load %arg25[%c0_91, %c0_92] : memref<2x8xf32, #tpu.memory_space<vmem>>, vector<2x8xf32>
    %cst_93 = arith.constant dense<0.000000e+00> : vector<2x1xf32>
    %265 = tpu.matmul %264, %263, %cst_93 {dimension_numbers = #tpu.dot_dimension_numbers<[1], [0], [0], [1], [0, 0, 1, 1], [], []>} : vector<2x8xf32>, vector<8x1xf32>, vector<2x1xf32> -> vector<2x1xf32>
    %c0_94 = arith.constant 0 : index
    %c0_95 = arith.constant 0 : index
    %266 = vector.load %arg26[%c0_94, %c0_95] : memref<2x1xf32, #tpu.memory_space<vmem>>, vector<2x1xf32>
    %267 = arith.addf %265, %266 : vector<2x1xf32>
    %cst_96 = arith.constant 5.000000e-01 : f32
    %268 = vector.broadcast %cst_96 : f32 to vector<2x1xf32>
    %269 = arith.mulf %268, %267 : vector<2x1xf32>
    %cst_97 = arith.constant 0.707106769 : f32
    %270 = vector.broadcast %cst_97 : f32 to vector<2x1xf32>
    %271 = arith.mulf %267, %270 : vector<2x1xf32>
    %272 = math.absf %271 : vector<2x1xf32>
    %cst_98 = arith.constant 0.327591091 : f32
    %273 = vector.broadcast %cst_98 : f32 to vector<2x1xf32>
    %274 = arith.mulf %273, %272 : vector<2x1xf32>
    %cst_99 = arith.constant 1.000000e+00 : f32
    %275 = vector.broadcast %cst_99 : f32 to vector<2x1xf32>
    %276 = arith.addf %275, %274 : vector<2x1xf32>
    %cst_100 = arith.constant 1.000000e+00 : f32
    %277 = vector.broadcast %cst_100 : f32 to vector<2x1xf32>
    %278 = arith.divf %277, %276 : vector<2x1xf32>
    %cst_101 = arith.constant 1.06140542 : f32
    %279 = vector.broadcast %cst_101 : f32 to vector<2x1xf32>
    %280 = arith.mulf %279, %278 : vector<2x1xf32>
    %cst_102 = arith.constant -1.45315206 : f32
    %281 = vector.broadcast %cst_102 : f32 to vector<2x1xf32>
    %282 = arith.addf %280, %281 : vector<2x1xf32>
    %283 = arith.mulf %282, %278 : vector<2x1xf32>
    %cst_103 = arith.constant 1.42141378 : f32
    %284 = vector.broadcast %cst_103 : f32 to vector<2x1xf32>
    %285 = arith.addf %283, %284 : vector<2x1xf32>
    %286 = arith.mulf %285, %278 : vector<2x1xf32>
    %cst_104 = arith.constant -0.284496725 : f32
    %287 = vector.broadcast %cst_104 : f32 to vector<2x1xf32>
    %288 = arith.addf %286, %287 : vector<2x1xf32>
    %289 = arith.mulf %288, %278 : vector<2x1xf32>
    %cst_105 = arith.constant 0.254829586 : f32
    %290 = vector.broadcast %cst_105 : f32 to vector<2x1xf32>
    %291 = arith.addf %289, %290 : vector<2x1xf32>
    %292 = arith.mulf %291, %278 : vector<2x1xf32>
    %293 = arith.mulf %272, %272 : vector<2x1xf32>
    %cst_106 = arith.constant 0.000000e+00 : f32
    %294 = vector.broadcast %cst_106 : f32 to vector<2x1xf32>
    %295 = arith.subf %294, %293 : vector<2x1xf32>
    %296 = math.exp %295 : vector<2x1xf32>
    %297 = arith.mulf %292, %296 : vector<2x1xf32>
    %cst_107 = arith.constant 1.000000e+00 : f32
    %298 = vector.broadcast %cst_107 : f32 to vector<2x1xf32>
    %299 = arith.subf %298, %297 : vector<2x1xf32>
    %cst_108 = arith.constant 0.000000e+00 : f32
    %300 = vector.broadcast %cst_108 : f32 to vector<2x1xf32>
    %301 = arith.cmpf oge, %271, %300 : vector<2x1xf32>
    %cst_109 = arith.constant 0.000000e+00 : f32
    %302 = vector.broadcast %cst_109 : f32 to vector<2x1xf32>
    %303 = arith.subf %302, %299 : vector<2x1xf32>
    %304 = arith.select %301, %299, %303 : vector<2x1xi1>, vector<2x1xf32>
    %cst_110 = arith.constant 1.000000e+00 : f32
    %305 = vector.broadcast %cst_110 : f32 to vector<2x1xf32>
    %306 = arith.addf %305, %304 : vector<2x1xf32>
    %307 = arith.mulf %269, %306 : vector<2x1xf32>
    %c0_111 = arith.constant 0 : index
    %c0_112 = arith.constant 0 : index
    %308 = vector.load %arg27[%c0_111, %c0_112] : memref<8x2xf32, #tpu.memory_space<vmem>>, vector<8x2xf32>
    %cst_113 = arith.constant dense<0.000000e+00> : vector<8x1xf32>
    %309 = tpu.matmul %308, %307, %cst_113 {dimension_numbers = #tpu.dot_dimension_numbers<[1], [0], [0], [1], [0, 0, 1, 1], [], []>} : vector<8x2xf32>, vector<2x1xf32>, vector<8x1xf32> -> vector<8x1xf32>
    %c0_114 = arith.constant 0 : index
    %c0_115 = arith.constant 0 : index
    %310 = vector.load %arg30[%c0_114, %c0_115] : memref<8x1xf32, #tpu.memory_space<vmem>>, vector<8x1xf32>
    %311 = arith.addf %309, %310 : vector<8x1xf32>
    %c0_116 = arith.constant 0 : index
    %c0_117 = arith.constant 0 : index
    %312 = vector.load %arg28[%c0_116, %c0_117] : memref<8x2xf32, #tpu.memory_space<vmem>>, vector<8x2xf32>
    %cst_118 = arith.constant dense<0.000000e+00> : vector<8x1xf32>
    %313 = tpu.matmul %312, %307, %cst_118 {dimension_numbers = #tpu.dot_dimension_numbers<[1], [0], [0], [1], [0, 0, 1, 1], [], []>} : vector<8x2xf32>, vector<2x1xf32>, vector<8x1xf32> -> vector<8x1xf32>
    %c0_119 = arith.constant 0 : index
    %c0_120 = arith.constant 0 : index
    %314 = vector.load %arg31[%c0_119, %c0_120] : memref<8x1xf32, #tpu.memory_space<vmem>>, vector<8x1xf32>
    %315 = arith.addf %313, %314 : vector<8x1xf32>
    %c0_121 = arith.constant 0 : index
    %c0_122 = arith.constant 0 : index
    %316 = vector.load %arg29[%c0_121, %c0_122] : memref<8x2xf32, #tpu.memory_space<vmem>>, vector<8x2xf32>
    %cst_123 = arith.constant dense<0.000000e+00> : vector<8x1xf32>
    %317 = tpu.matmul %316, %307, %cst_123 {dimension_numbers = #tpu.dot_dimension_numbers<[1], [0], [0], [1], [0, 0, 1, 1], [], []>} : vector<8x2xf32>, vector<2x1xf32>, vector<8x1xf32> -> vector<8x1xf32>
    %c0_124 = arith.constant 0 : index
    %c0_125 = arith.constant 0 : index
    %318 = vector.load %arg32[%c0_124, %c0_125] : memref<8x1xf32, #tpu.memory_space<vmem>>, vector<8x1xf32>
    %319 = arith.addf %317, %318 : vector<8x1xf32>
    %320 = arith.maximumf %311, %315 : vector<8x1xf32>
    %321 = arith.maximumf %320, %319 : vector<8x1xf32>
    %322 = arith.subf %311, %321 : vector<8x1xf32>
    %323 = math.exp %322 : vector<8x1xf32>
    %324 = arith.subf %315, %321 : vector<8x1xf32>
    %325 = math.exp %324 : vector<8x1xf32>
    %326 = arith.subf %319, %321 : vector<8x1xf32>
    %327 = math.exp %326 : vector<8x1xf32>
    %328 = arith.addf %323, %325 : vector<8x1xf32>
    %329 = arith.addf %328, %327 : vector<8x1xf32>
    %330 = tpu.reciprocal %329 {approx = true} : vector<8x1xf32> -> vector<8x1xf32>
    %331 = arith.mulf %323, %330 : vector<8x1xf32>
    %332 = vector.broadcast %331 : vector<8x1xf32> to vector<8x256xf32>
    %333 = arith.mulf %134, %332 : vector<8x256xf32>
    %334 = arith.mulf %325, %330 : vector<8x1xf32>
    %335 = vector.broadcast %334 : vector<8x1xf32> to vector<8x256xf32>
    %336 = arith.mulf %255, %335 : vector<8x256xf32>
    %337 = arith.addf %333, %336 : vector<8x256xf32>
    %338 = arith.mulf %327, %330 : vector<8x1xf32>
    %339 = vector.broadcast %338 : vector<8x1xf32> to vector<8x256xf32>
    %340 = arith.mulf %257, %339 : vector<8x256xf32>
    %341 = arith.addf %337, %340 : vector<8x256xf32>
    %c0_126 = arith.constant 0 : index
    %c0_127 = arith.constant 0 : index
    %342 = vector.load %arg33[%c0_126, %c0_127] : memref<8x8xf32, #tpu.memory_space<vmem>>, vector<8x8xf32>
    %cst_128 = arith.constant dense<0.000000e+00> : vector<8x256xf32>
    %343 = tpu.matmul %342, %341, %cst_128 {dimension_numbers = #tpu.dot_dimension_numbers<[1], [0], [0], [1], [0, 0, 1, 1], [], []>} : vector<8x8xf32>, vector<8x256xf32>, vector<8x256xf32> -> vector<8x256xf32>
    %c0_129 = arith.constant 0 : index
    %c0_130 = arith.constant 0 : index
    %344 = vector.load %arg34[%c0_129, %c0_130] : memref<8x1xf32, #tpu.memory_space<vmem>>, vector<8x1xf32>
    %345 = vector.broadcast %344 : vector<8x1xf32> to vector<8x256xf32>
    %346 = arith.addf %343, %345 : vector<8x256xf32>
    %347 = arith.addf %1, %346 : vector<8x256xf32>
    %c0_131 = arith.constant 0 : index
    %c0_132 = arith.constant 0 : index
    %348 = vector.load %arg35[%c0_131, %c0_132] : memref<8x1xf32, #tpu.memory_space<vmem>>, vector<8x1xf32>
    %349 = vector.broadcast %348 : vector<8x1xf32> to vector<8x256xf32>
    %350 = arith.mulf %347, %349 : vector<8x256xf32>
    %c0_133 = arith.constant 0 : index
    %c0_134 = arith.constant 0 : index
    %351 = vector.load %arg36[%c0_133, %c0_134] : memref<8x1xf32, #tpu.memory_space<vmem>>, vector<8x1xf32>
    %352 = vector.broadcast %351 : vector<8x1xf32> to vector<8x256xf32>
    %353 = arith.addf %350, %352 : vector<8x256xf32>
    %c0_135 = arith.constant 0 : index
    %c0_136 = arith.constant 0 : index
    %354 = vector.load %arg37[%c0_135, %c0_136] : memref<32x8xf32, #tpu.memory_space<vmem>>, vector<32x8xf32>
    %cst_137 = arith.constant dense<0.000000e+00> : vector<32x256xf32>
    %355 = tpu.matmul %354, %353, %cst_137 {dimension_numbers = #tpu.dot_dimension_numbers<[1], [0], [0], [1], [0, 0, 1, 1], [], []>} : vector<32x8xf32>, vector<8x256xf32>, vector<32x256xf32> -> vector<32x256xf32>
    %c0_138 = arith.constant 0 : index
    %c0_139 = arith.constant 0 : index
    %356 = vector.load %arg38[%c0_138, %c0_139] : memref<32x1xf32, #tpu.memory_space<vmem>>, vector<32x1xf32>
    %357 = vector.broadcast %356 : vector<32x1xf32> to vector<32x256xf32>
    %358 = arith.addf %355, %357 : vector<32x256xf32>
    %cst_140 = arith.constant 5.000000e-01 : f32
    %359 = vector.broadcast %cst_140 : f32 to vector<32x256xf32>
    %360 = arith.mulf %359, %358 : vector<32x256xf32>
    %cst_141 = arith.constant 0.707106769 : f32
    %361 = vector.broadcast %cst_141 : f32 to vector<32x256xf32>
    %362 = arith.mulf %358, %361 : vector<32x256xf32>
    %363 = math.absf %362 : vector<32x256xf32>
    %cst_142 = arith.constant 0.327591091 : f32
    %364 = vector.broadcast %cst_142 : f32 to vector<32x256xf32>
    %365 = arith.mulf %364, %363 : vector<32x256xf32>
    %cst_143 = arith.constant 1.000000e+00 : f32
    %366 = vector.broadcast %cst_143 : f32 to vector<32x256xf32>
    %367 = arith.addf %366, %365 : vector<32x256xf32>
    %cst_144 = arith.constant 1.000000e+00 : f32
    %368 = vector.broadcast %cst_144 : f32 to vector<32x256xf32>
    %369 = arith.divf %368, %367 : vector<32x256xf32>
    %cst_145 = arith.constant 1.06140542 : f32
    %370 = vector.broadcast %cst_145 : f32 to vector<32x256xf32>
    %371 = arith.mulf %370, %369 : vector<32x256xf32>
    %cst_146 = arith.constant -1.45315206 : f32
    %372 = vector.broadcast %cst_146 : f32 to vector<32x256xf32>
    %373 = arith.addf %371, %372 : vector<32x256xf32>
    %374 = arith.mulf %373, %369 : vector<32x256xf32>
    %cst_147 = arith.constant 1.42141378 : f32
    %375 = vector.broadcast %cst_147 : f32 to vector<32x256xf32>
    %376 = arith.addf %374, %375 : vector<32x256xf32>
    %377 = arith.mulf %376, %369 : vector<32x256xf32>
    %cst_148 = arith.constant -0.284496725 : f32
    %378 = vector.broadcast %cst_148 : f32 to vector<32x256xf32>
    %379 = arith.addf %377, %378 : vector<32x256xf32>
    %380 = arith.mulf %379, %369 : vector<32x256xf32>
    %cst_149 = arith.constant 0.254829586 : f32
    %381 = vector.broadcast %cst_149 : f32 to vector<32x256xf32>
    %382 = arith.addf %380, %381 : vector<32x256xf32>
    %383 = arith.mulf %382, %369 : vector<32x256xf32>
    %384 = arith.mulf %363, %363 : vector<32x256xf32>
    %cst_150 = arith.constant 0.000000e+00 : f32
    %385 = vector.broadcast %cst_150 : f32 to vector<32x256xf32>
    %386 = arith.subf %385, %384 : vector<32x256xf32>
    %387 = math.exp %386 : vector<32x256xf32>
    %388 = arith.mulf %383, %387 : vector<32x256xf32>
    %cst_151 = arith.constant 1.000000e+00 : f32
    %389 = vector.broadcast %cst_151 : f32 to vector<32x256xf32>
    %390 = arith.subf %389, %388 : vector<32x256xf32>
    %cst_152 = arith.constant 0.000000e+00 : f32
    %391 = vector.broadcast %cst_152 : f32 to vector<32x256xf32>
    %392 = arith.cmpf oge, %362, %391 : vector<32x256xf32>
    %cst_153 = arith.constant 0.000000e+00 : f32
    %393 = vector.broadcast %cst_153 : f32 to vector<32x256xf32>
    %394 = arith.subf %393, %390 : vector<32x256xf32>
    %395 = arith.select %392, %390, %394 : vector<32x256xi1>, vector<32x256xf32>
    %cst_154 = arith.constant 1.000000e+00 : f32
    %396 = vector.broadcast %cst_154 : f32 to vector<32x256xf32>
    %397 = arith.addf %396, %395 : vector<32x256xf32>
    %398 = arith.mulf %360, %397 : vector<32x256xf32>
    %c0_155 = arith.constant 0 : index
    %c0_156 = arith.constant 0 : index
    %399 = vector.load %arg39[%c0_155, %c0_156] : memref<8x32xf32, #tpu.memory_space<vmem>>, vector<8x32xf32>
    %cst_157 = arith.constant dense<0.000000e+00> : vector<8x256xf32>
    %400 = tpu.matmul %399, %398, %cst_157 {dimension_numbers = #tpu.dot_dimension_numbers<[1], [0], [0], [1], [0, 0, 1, 1], [], []>} : vector<8x32xf32>, vector<32x256xf32>, vector<8x256xf32> -> vector<8x256xf32>
    %401 = arith.addf %347, %400 : vector<8x256xf32>
    %c0_158 = arith.constant 0 : index
    %c0_159 = arith.constant 0 : index
    %402 = vector.load %arg40[%c0_158, %c0_159] : memref<8x1xf32, #tpu.memory_space<vmem>>, vector<8x1xf32>
    %403 = vector.broadcast %402 : vector<8x1xf32> to vector<8x256xf32>
    %404 = arith.addf %401, %403 : vector<8x256xf32>
    %c0_160 = arith.constant 0 : index
    %c0_161 = arith.constant 0 : index
    %c0_162 = arith.constant 0 : index
    %405 = vector.load %arg41[%c0_160, %c0_161, %c0_162] : memref<1x8x256xf32, #tpu.memory_space<vmem>>, vector<1x8x256xf32>
    %406 = vector.shape_cast %405 : vector<1x8x256xf32> to vector<8x256xf32>
    %407 = vector.shape_cast %404 : vector<8x256xf32> to vector<1x8x256xf32>
    tpu.vector_store %arg41[%c0_160, %c0_161, %c0_162], %407 {strides = array<i32>} : memref<1x8x256xf32, #tpu.memory_space<vmem>>, vector<1x8x256xf32>,
    return
  }
  func.func @transform_0(%arg0: i32) -> (i32, i32, i32) {
    %c0_i32 = arith.constant 0 : i32
    %c0_i32_0 = arith.constant 0 : i32
    %c0_i32_1 = arith.constant 0 : i32
    return %arg0, %c0_i32, %c0_i32_0 : i32, i32, i32
  }
  func.func @transform_1(%arg0: i32) -> (i32, i32) {
    %c0_i32 = arith.constant 0 : i32
    %c0_i32_0 = arith.constant 0 : i32
    %c0_i32_1 = arith.constant 0 : i32
    return %c0_i32, %c0_i32_0 : i32, i32
  }
  func.func @transform_2(%arg0: i32) -> (i32, i32) {
    %c0_i32 = arith.constant 0 : i32
    %c0_i32_0 = arith.constant 0 : i32
    %c0_i32_1 = arith.constant 0 : i32
    return %c0_i32, %c0_i32_0 : i32, i32
  }
  func.func @transform_3(%arg0: i32) -> (i32, i32) {
    %c0_i32 = arith.constant 0 : i32
    %c0_i32_0 = arith.constant 0 : i32
    %c0_i32_1 = arith.constant 0 : i32
    return %c0_i32, %c0_i32_0 : i32, i32
  }
  func.func @transform_4(%arg0: i32) -> (i32, i32) {
    %c0_i32 = arith.constant 0 : i32
    %c0_i32_0 = arith.constant 0 : i32
    %c0_i32_1 = arith.constant 0 : i32
    return %c0_i32, %c0_i32_0 : i32, i32
  }
  func.func @transform_5(%arg0: i32) -> (i32, i32) {
    %c0_i32 = arith.constant 0 : i32
    %c0_i32_0 = arith.constant 0 : i32
    %c0_i32_1 = arith.constant 0 : i32
    return %c0_i32, %c0_i32_0 : i32, i32
  }
  func.func @transform_6(%arg0: i32) -> (i32, i32) {
    %c0_i32 = arith.constant 0 : i32
    %c0_i32_0 = arith.constant 0 : i32
    %c0_i32_1 = arith.constant 0 : i32
    return %c0_i32, %c0_i32_0 : i32, i32
  }
  func.func @transform_7(%arg0: i32) -> (i32, i32) {
    %c0_i32 = arith.constant 0 : i32
    %c0_i32_0 = arith.constant 0 : i32
    %c0_i32_1 = arith.constant 0 : i32
    return %c0_i32, %c0_i32_0 : i32, i32
  }
  func.func @transform_8(%arg0: i32) -> (i32, i32) {
    %c0_i32 = arith.constant 0 : i32
    %c0_i32_0 = arith.constant 0 : i32
    %c0_i32_1 = arith.constant 0 : i32
    return %c0_i32, %c0_i32_0 : i32, i32
  }
  func.func @transform_9(%arg0: i32) -> (i32, i32) {
    %c0_i32 = arith.constant 0 : i32
    %c0_i32_0 = arith.constant 0 : i32
    %c0_i32_1 = arith.constant 0 : i32
    return %c0_i32, %c0_i32_0 : i32, i32
  }
  func.func @transform_10(%arg0: i32) -> (i32, i32) {
    %c0_i32 = arith.constant 0 : i32
    %c0_i32_0 = arith.constant 0 : i32
    %c0_i32_1 = arith.constant 0 : i32
    return %c0_i32, %c0_i32_0 : i32, i32
  }
  func.func @transform_11(%arg0: i32) -> (i32, i32) {
    %c0_i32 = arith.constant 0 : i32
    %c0_i32_0 = arith.constant 0 : i32
    %c0_i32_1 = arith.constant 0 : i32
    return %c0_i32, %c0_i32_0 : i32, i32
  }
  func.func @transform_12(%arg0: i32) -> (i32, i32) {
    %c0_i32 = arith.constant 0 : i32
    %c0_i32_0 = arith.constant 0 : i32
    %c0_i32_1 = arith.constant 0 : i32
    return %c0_i32, %c0_i32_0 : i32, i32
  }
  func.func @transform_13(%arg0: i32) -> (i32, i32) {
    %c0_i32 = arith.constant 0 : i32
    %c0_i32_0 = arith.constant 0 : i32
    %c0_i32_1 = arith.constant 0 : i32
    return %c0_i32, %c0_i32_0 : i32, i32
  }
  func.func @transform_14(%arg0: i32) -> (i32, i32) {
    %c0_i32 = arith.constant 0 : i32
    %c0_i32_0 = arith.constant 0 : i32
    %c0_i32_1 = arith.constant 0 : i32
    return %c0_i32, %c0_i32_0 : i32, i32
  }
  func.func @transform_15(%arg0: i32) -> (i32, i32) {
    %c0_i32 = arith.constant 0 : i32
    %c0_i32_0 = arith.constant 0 : i32
    %c0_i32_1 = arith.constant 0 : i32
    return %c0_i32, %c0_i32_0 : i32, i32
  }
  func.func @transform_16(%arg0: i32) -> (i32, i32) {
    %c0_i32 = arith.constant 0 : i32
    %c0_i32_0 = arith.constant 0 : i32
    %c0_i32_1 = arith.constant 0 : i32
    return %c0_i32, %c0_i32_0 : i32, i32
  }
  func.func @transform_17(%arg0: i32) -> (i32, i32) {
    %c0_i32 = arith.constant 0 : i32
    %c0_i32_0 = arith.constant 0 : i32
    %c0_i32_1 = arith.constant 0 : i32
    return %c0_i32, %c0_i32_0 : i32, i32
  }
  func.func @transform_18(%arg0: i32) -> (i32, i32) {
    %c0_i32 = arith.constant 0 : i32
    %c0_i32_0 = arith.constant 0 : i32
    %c0_i32_1 = arith.constant 0 : i32
    return %c0_i32, %c0_i32_0 : i32, i32
  }
  func.func @transform_19(%arg0: i32) -> (i32, i32) {
    %c0_i32 = arith.constant 0 : i32
    %c0_i32_0 = arith.constant 0 : i32
    %c0_i32_1 = arith.constant 0 : i32
    return %c0_i32, %c0_i32_0 : i32, i32
  }
  func.func @transform_20(%arg0: i32) -> (i32, i32) {
    %c0_i32 = arith.constant 0 : i32
    %c0_i32_0 = arith.constant 0 : i32
    %c0_i32_1 = arith.constant 0 : i32
    return %c0_i32, %c0_i32_0 : i32, i32
  }
  func.func @transform_21(%arg0: i32) -> (i32, i32) {
    %c0_i32 = arith.constant 0 : i32
    %c0_i32_0 = arith.constant 0 : i32
    %c0_i32_1 = arith.constant 0 : i32
    return %c0_i32, %c0_i32_0 : i32, i32
  }
  func.func @transform_22(%arg0: i32) -> (i32, i32) {
    %c0_i32 = arith.constant 0 : i32
    %c0_i32_0 = arith.constant 0 : i32
    %c0_i32_1 = arith.constant 0 : i32
    return %c0_i32, %c0_i32_0 : i32, i32
  }
  func.func @transform_23(%arg0: i32) -> (i32, i32) {
    %c0_i32 = arith.constant 0 : i32
    %c0_i32_0 = arith.constant 0 : i32
    %c0_i32_1 = arith.constant 0 : i32
    return %c0_i32, %c0_i32_0 : i32, i32
  }
  func.func @transform_24(%arg0: i32) -> (i32, i32) {
    %c0_i32 = arith.constant 0 : i32
    %c0_i32_0 = arith.constant 0 : i32
    %c0_i32_1 = arith.constant 0 : i32
    return %c0_i32, %c0_i32_0 : i32, i32
  }
  func.func @transform_25(%arg0: i32) -> (i32, i32) {
    %c0_i32 = arith.constant 0 : i32
    %c0_i32_0 = arith.constant 0 : i32
    %c0_i32_1 = arith.constant 0 : i32
    return %c0_i32, %c0_i32_0 : i32, i32
  }
  func.func @transform_26(%arg0: i32) -> (i32, i32) {
    %c0_i32 = arith.constant 0 : i32
    %c0_i32_0 = arith.constant 0 : i32
    %c0_i32_1 = arith.constant 0 : i32
    return %c0_i32, %c0_i32_0 : i32, i32
  }
  func.func @transform_27(%arg0: i32) -> (i32, i32) {
    %c0_i32 = arith.constant 0 : i32
    %c0_i32_0 = arith.constant 0 : i32
    %c0_i32_1 = arith.constant 0 : i32
    return %c0_i32, %c0_i32_0 : i32, i32
  }
  func.func @transform_28(%arg0: i32) -> (i32, i32) {
    %c0_i32 = arith.constant 0 : i32
    %c0_i32_0 = arith.constant 0 : i32
    %c0_i32_1 = arith.constant 0 : i32
    return %c0_i32, %c0_i32_0 : i32, i32
  }
  func.func @transform_29(%arg0: i32) -> (i32, i32) {
    %c0_i32 = arith.constant 0 : i32
    %c0_i32_0 = arith.constant 0 : i32
    %c0_i32_1 = arith.constant 0 : i32
    return %c0_i32, %c0_i32_0 : i32, i32
  }
  func.func @transform_30(%arg0: i32) -> (i32, i32) {
    %c0_i32 = arith.constant 0 : i32
    %c0_i32_0 = arith.constant 0 : i32
    %c0_i32_1 = arith.constant 0 : i32
    return %c0_i32, %c0_i32_0 : i32, i32
  }
  func.func @transform_31(%arg0: i32) -> (i32, i32) {
    %c0_i32 = arith.constant 0 : i32
    %c0_i32_0 = arith.constant 0 : i32
    %c0_i32_1 = arith.constant 0 : i32
    return %c0_i32, %c0_i32_0 : i32, i32
  }
  func.func @transform_32(%arg0: i32) -> (i32, i32) {
    %c0_i32 = arith.constant 0 : i32
    %c0_i32_0 = arith.constant 0 : i32
    %c0_i32_1 = arith.constant 0 : i32
    return %c0_i32, %c0_i32_0 : i32, i32
  }
  func.func @transform_33(%arg0: i32) -> (i32, i32) {
    %c0_i32 = arith.constant 0 : i32
    %c0_i32_0 = arith.constant 0 : i32
    %c0_i32_1 = arith.constant 0 : i32
    return %c0_i32, %c0_i32_0 : i32, i32
  }
  func.func @transform_34(%arg0: i32) -> (i32, i32) {
    %c0_i32 = arith.constant 0 : i32
    %c0_i32_0 = arith.constant 0 : i32
    %c0_i32_1 = arith.constant 0 : i32
    return %c0_i32, %c0_i32_0 : i32, i32
  }
  func.func @transform_35(%arg0: i32) -> (i32, i32) {
    %c0_i32 = arith.constant 0 : i32
    %c0_i32_0 = arith.constant 0 : i32
    %c0_i32_1 = arith.constant 0 : i32
    return %c0_i32, %c0_i32_0 : i32, i32
  }
  func.func @transform_36(%arg0: i32) -> (i32, i32) {
    %c0_i32 = arith.constant 0 : i32
    %c0_i32_0 = arith.constant 0 : i32
    %c0_i32_1 = arith.constant 0 : i32
    return %c0_i32, %c0_i32_0 : i32, i32
  }
  func.func @transform_37(%arg0: i32) -> (i32, i32) {
    %c0_i32 = arith.constant 0 : i32
    %c0_i32_0 = arith.constant 0 : i32
    %c0_i32_1 = arith.constant 0 : i32
    return %c0_i32, %c0_i32_0 : i32, i32
  }
  func.func @transform_38(%arg0: i32) -> (i32, i32) {
    %c0_i32 = arith.constant 0 : i32
    %c0_i32_0 = arith.constant 0 : i32
    %c0_i32_1 = arith.constant 0 : i32
    return %c0_i32, %c0_i32_0 : i32, i32
  }
  func.func @transform_39(%arg0: i32) -> (i32, i32) {
    %c0_i32 = arith.constant 0 : i32
    %c0_i32_0 = arith.constant 0 : i32
    %c0_i32_1 = arith.constant 0 : i32
    return %c0_i32, %c0_i32_0 : i32, i32
  }
  func.func @transform_40(%arg0: i32) -> (i32, i32, i32) {
    %c0_i32 = arith.constant 0 : i32
    %c0_i32_0 = arith.constant 0 : i32
    %c0_i32_1 = arith.constant 0 : i32
    return %arg0, %c0_i32, %c0_i32_0 : i32, i32, i32
  }
}

</mosaic_0001>

<bundles_post_ra>
// kernel: tpu_custom_call.1
= control target key start
LH: loop header
LB: loop body
LE: loop exit
PB: predicated region body
PF: predicated region fallthrough
CT: control target
= control target key end

     0   :  { %s5684_s6 = smov 1   ;;  %s5685_s10 = smov 2   ;;  %s7594_s0 = inlined_call_operand.smem [shape: u32[41], index: -1, kind: input, shape index: {}] }
   0x1   :  { %s5760_s5 = sld [smem:[%s7594_s0]]   ;;  %s5686_s14 = smov 3  }
   0x2   :  { %s5765_s9 = sld [smem:[%s7594_s0 + %s5684_s6]]   ;;  %s5687_s18 = smov 4  }
   0x3   :  { %s5770_s13 = sld [smem:[%s7594_s0 + %s5685_s10]]   ;;  %s5688_s22 = smov 5  }
   0x4   :  { %s5775_s17 = sld [smem:[%s7594_s0 + %s5686_s14]]   ;;  %s5689_s26 = smov 6  }
   0x5   :  { %s5780_s21 = sld [smem:[%s7594_s0 + %s5687_s18]]   ;;  %s5690_s30 = smov 7  }
   0x6   :  { %s5785_s25 = sld [smem:[%s7594_s0 + %s5688_s22]]   ;;  %s5691_s4 = smov 8  }
   0x7   :  { %7626 = sst [smem:[#allocation5_spill]] %s5760_s5  ;;  %s5692_s10 = smov 9  }
   0x8   :  { %s5790_s29 = sld [smem:[%s7594_s0 + %s5689_s26]]   ;;  %s5693_s15 = smov 10  }
   0x9   :  { %s5795_s3 = sld [smem:[%s7594_s0 + %s5690_s30]]   ;;  %s5694_s20 = smov 11  }
   0xa   :  { %s5800_s8 = sld [smem:[%s7594_s0 + %s5691_s4]]   ;;  %s5695_s26 = smov 12  }
   0xb   :  { %7627 = sst [smem:[#allocation6_spill]] %s5780_s21  ;;  %s5696_s1 = smov 13  }
   0xc   :  { %s5805_s14 = sld [smem:[%s7594_s0 + %s5692_s10]]   ;;  %s5697_s7 = smov 14  }
   0xd   :  { %s5810_s19 = sld [smem:[%s7594_s0 + %s5693_s15]]   ;;  %s5698_s15 = smov 15  }
   0xe   :  { %s5815_s24 = sld [smem:[%s7594_s0 + %s5694_s20]]   ;;  %s5699_s22 = smov 16  }
   0xf   :  { %7628 = sst [smem:[#allocation7_spill]] %s5795_s3  ;;  %s5700_s28 = smov 17  }
  0x10   :  { %7629 = sst [smem:[#allocation8_spill]] %s5800_s8 }
  0x11   :  { %s5820_s30 = sld [smem:[%s7594_s0 + %s5695_s26]]  }
  0x12   :  { %s5825_s6 = sld [smem:[%s7594_s0 + %s5696_s1]]  }
  0x13   :  { %s5830_s12 = sld [smem:[%s7594_s0 + %s5697_s7]]   ;;  %s5701_s7 = smov 18  }
  0x14   :  { %7630 = sst [smem:[#allocation9_spill]] %s5815_s24 }
  0x15   :  { %s5835_s20 = sld [smem:[%s7594_s0 + %s5698_s15]]   ;;  %s5702_s15 = smov 19  }
  0x16   :  { %s5840_s27 = sld [smem:[%s7594_s0 + %s5699_s22]]   ;;  %s5703_s22 = smov 20  }
  0x17   :  { %7631 = sst [smem:[#allocation10_spill]] %s5820_s30 }
  0x18   :  { %7632 = sst [smem:[#allocation11_spill]] %s5825_s6 }
  0x19   :  { %7633 = sst [smem:[#allocation12_spill]] %s5830_s12 }
  0x1a   :  { %s5845_s4 = sld [smem:[%s7594_s0 + %s5700_s28]]   ;;  %s5704_s28 = smov 21  }
  0x1b   :  { %7634 = sst [smem:[#allocation13_spill]] %s5835_s20 }
  0x1c   :  { %s5850_s12 = sld [smem:[%s7594_s0 + %s5701_s7]]   ;;  %s5705_s7 = smov 22  }
  0x1d   :  { %s5855_s20 = sld [smem:[%s7594_s0 + %s5702_s15]]   ;;  %s5706_s15 = smov 23  }
  0x1e   :  { %s5860_s6 = sld [smem:[%s7594_s0 + %s5703_s22]]   ;;  %s5707_s22 = smov 24  }
  0x1f   :  { %s5865_s8 = sld [smem:[%s7594_s0 + %s5704_s28]]   ;;  %s5708_s28 = smov 25  }
  0x20   :  { %7635 = sst [smem:[#allocation14_spill]] %s5845_s4 }
  0x21   :  { %s5870_s30 = sld [smem:[%s7594_s0 + %s5705_s7]]   ;;  %s5709_s7 = smov 26  }
  0x22   :  { %s5875_s3 = sld [smem:[%s7594_s0 + %s5706_s15]]   ;;  %s5710_s15 = smov 27  }
  0x23   :  { %s5880_s24 = sld [smem:[%s7594_s0 + %s5707_s22]]   ;;  %s5711_s22 = smov 28  }
  0x24   :  { %7636 = sst [smem:[#allocation15_spill]] %s5860_s6 }
  0x25   :  { %7637 = sst [smem:[#allocation16_spill]] %s5865_s8 }
  0x26   :  { %s5885_s21 = sld [smem:[%s7594_s0 + %s5708_s28]]   ;;  %s5712_s28 = smov 29  }
  0x27   :  { %7638 = sst [smem:[#allocation17_spill]] %s5870_s30 }
  0x28   :  { %7639 = sst [smem:[#allocation18_spill]] %s5875_s3 }
  0x29   :  { %7640 = sst [smem:[#allocation19_spill]] %s5880_s24 }
  0x2a   :  { %s5890_s30 = sld [smem:[%s7594_s0 + %s5709_s7]]   ;;  %s5713_s7 = smov 30  }
  0x2b   :  { %s5895_s3 = sld [smem:[%s7594_s0 + %s5710_s15]]   ;;  %s5714_s15 = smov 31  }
  0x2c   :  { %7641 = sst [smem:[#allocation20_spill]] %s5885_s21 }
  0x2d   :  { %s5900_s24 = sld [smem:[%s7594_s0 + %s5711_s22]]   ;;  %s5715_s22 = smov 32  }
  0x2e   :  { %s5905_s21 = sld [smem:[%s7594_s0 + %s5712_s28]]   ;;  %s5716_s28 = smov 33  }
  0x30   :  { %7642 = sst [smem:[#allocation21_spill]] %s5890_s30 }
  0x31   :  { %7643 = sst [smem:[#allocation22_spill]] %s5895_s3 }
  0x32   :  { %s5910_s30 = sld [smem:[%s7594_s0 + %s5713_s7]]   ;;  %s5717_s7 = smov 34  }
  0x33   :  { %7644 = sst [smem:[#allocation23_spill]] %s5900_s24 }
  0x34   :  { %7645 = sst [smem:[#allocation24_spill]] %s5905_s21 }
  0x35   :  { %s5915_s3 = sld [smem:[%s7594_s0 + %s5714_s15]]   ;;  %s5718_s15 = smov 35  }
  0x36   :  { %s5920_s24 = sld [smem:[%s7594_s0 + %s5715_s22]]   ;;  %s5719_s22 = smov 36  }
  0x37   :  { %s5925_s21 = sld [smem:[%s7594_s0 + %s5716_s28]]   ;;  %s5720_s28 = smov 37  }
  0x38   :  { %7646 = sst [smem:[#allocation25_spill]] %s5910_s30 }
  0x39   :  { %s5930_s30 = sld [smem:[%s7594_s0 + %s5717_s7]]   ;;  %s5721_s7 = smov 38  }
  0x3b   :  { %7647 = sst [smem:[#allocation26_spill]] %s5915_s3 }
  0x3c   :  { %7648 = sst [smem:[#allocation27_spill]] %s5920_s24 }
  0x3d   :  { %7649 = sst [smem:[#allocation28_spill]] %s5925_s21 }
  0x3e   :  { %s5935_s3 = sld [smem:[%s7594_s0 + %s5718_s15]]   ;;  %s5722_s15 = smov 39  }
  0x3f   :  { %7650 = sst [smem:[#allocation29_spill]] %s5930_s30 }
  0x40   :  { %s5940_s24 = sld [smem:[%s7594_s0 + %s5719_s22]]   ;;  %s5723_s22 = smov 40  }
  0x41   :  { %s5945_s21 = sld [smem:[%s7594_s0 + %s5720_s28]]  }
  0x42   :  { %s5950_s30 = sld [smem:[%s7594_s0 + %s5721_s7]]  }
  0x44   :  { %7651 = sst [smem:[#allocation30_spill]] %s5935_s3 }
  0x45   :  { %s5955_s3 = sld [smem:[%s7594_s0 + %s5722_s15]]  }
  0x46   :  { %7652 = sst [smem:[#allocation31_spill]] %s5940_s24 }
  0x47   :  { %s5960_s24 = sld [smem:[%s7594_s0 + %s5723_s22]]  }
  0x4b   :  { %7653 = sst [smem:[#allocation32_spill]] %s5955_s3 }
  0x4c   :  { %86 = vsyncpa [#allocation3], 0 }
  0x4d   :  { %88 = vsyncpa [#allocation3 + $0x1], 0  ;;  %s5962_s28 = smov 0   ;;  %s5964_s1 = smov 0  }
  0x4e   :  { %s5966_s2 = smov 0   ;;  %s5968_s7 = smov 0  }
  0x4f LB: > { %s5983_s0 = sadd.s32 4294967295, %s5682_s7   ;;  %s5240_s10 = sadd.s32 4294967294, %s5682_s7   ;;  %s5682_s7 = sphi %s5968_s7, %s7760_s7   ;;  %s5678_s2 = sphi %s5966_s2, %s7759_s2   ;;  %s5674_s1 = sphi %s5964_s1, %s7758_s1   ;;  %s5670_s28 = sphi %s5962_s28, %s7757_s28  }
  0x50   : > { %s5987_s11 = sadd.s32 1, %s5682_s7   ;;  %s946_s15 = sadd.s32 1, %s5678_s2 }
  0x51   : > { %s943_s16 = ssub.s32 %s5682_s7, %s5987_s11  ;;  %p956_p0 = scmp.ne.s32.totalorder %s5678_s2, %s5674_s1 }
  0x52   : > { %p944_p1 = scmp.eq.s32.totalorder %s943_s16, 0  ;;  %p957_p2 = scmp.eq.s32.totalorder %s5983_s0, 1 }
  0x53   : > { %p962_p3 = scmp.ne.s32.totalorder %s5674_s1, %s5670_s28  ;;  %p963_p4 = scmp.eq.s32.totalorder %s5240_s10, 1 }
  0x54   : > { %s5998_s18 = scalar_select %p944_p1, %s5678_s2, %s946_s15  }
  0x55   : > { %p6000_p5 = por %p957_p2, %p956_p0  ;;  %p6004_p6 = por %p963_p4, %p962_p3 }
  0x56   : > { %p5243_p7 = scmp.ge.s32.totalorder %s5682_s7, 1  ;;  %p1106_p8 = scmp.lt.s32.totalorder %s5682_s7, 3 }
  0x58   : > { %p1107_p9 = pnand %p5243_p7, %p1106_p8 }
  0x5a   : > { %1110 = sbr.rel (%p1107_p9) target bundleno = 2420 (0x974), region = 180 }
  0x61   : > { %v1211_v0 = vld [vmem:[%s5765_s9] sm:$0xff]  ;;  %v5724_v1 = vmov 0   ;;  %v7598_v4 = vmov 0.0   ;;  %s7656_s4 = sld [smem:[#allocation14_spill]]  ;;  %s7657_s6 = sld [smem:[#allocation15_spill]]  ;;  %v5726_v8 = vmov 3  }
  0x62   : > { %5524 = vset.pattern.permute.xlu0 %v5724_v1  ;;  %5525 = vset.pattern.permute.xlu1 %v5724_v1  ;;  %v1219_v2 = vld [vmem:[%s5770_s13] sm:$0xff]  ;;  %s7658_s8 = sld [smem:[#allocation16_spill]]  ;;  %v5727_v13 = vmov 1   ;;  %v5728_v17 = vmov 2   ;;  %v5729_v19 = vmov 4   ;;  %v5730_v20 = vmov 5  }
  0x63   : > { %1214 = vperm.xlu0 %5524, %v1211_v0   ;;  %v2696_v3 = vld [vmem:[%s5805_s14] sm:$0xff]  ;;  %1306 = vmatprep.mubr.f32.mxu1 %v7598_v4  ;;  %v5731_v21 = vmov 6   ;;  %s7659_s5 = sld [smem:[#allocation5_spill]]  ;;  %p1204_p10 = scmp.lt.s32.totalorder %s5983_s0, 1  ;;  %vm7621_vm0 = vcmask 64512  }
  0x64   : > { %1896 = vmatprep.mubr.f32.mxu0 %v7598_v4  ;;  %v1232_v5 = vld [vmem:[%s5785_s25] sm:$0xff]  ;;  %s7660_s26 = sld [smem:[#allocation6_spill]]  ;;  %s7749_s3 = sld [smem:[#allocation32_spill]] }
  0x65   : > { %1235 = vperm.xlu1 %5525, %v1232_v5   ;;  %v1823_v6 = vld [vmem:[%s5790_s29] sm:$0xff]  ;;  %s1205_s10 = scalar_select %p1204_p10, %s5983_s0, 1 }
  0x66   : > { %v2412_v7 = vld [vmem:[%s5850_s12] sm:$0xff] }
  0x67   : > { %1222 = vperm.xlu0 %5524, %v1219_v2   ;;  %v3276_v9 = vld [vmem:[%s5810_s19] sm:$0xff]  ;;  %s5348_s15 = sshll.u32 %s1205_s10, 4  ;;  %s7663_s10 = sld [smem:[#allocation10_spill]] }
  0x68   : > { %v1227_v10 = vld [vmem:[%s5840_s27] sm:$0xff] }
  0x69   : > { %1826 = vperm.xlu1 %5525, %v1823_v6   ;;  %v1228_v11 = vsub.f32 1.0, %v1227_v10  ;;  %v2413_v12 = vld [vmem:[%s5855_s20] sm:$0xff]  ;;  %s6031_s16 = scalar_lea.vmem %s7659_s5, %s5348_s15  ;;  %s7664_s15 = sld [smem:[#allocation8_spill]] }
  0x6a   : > { %v1229_v14 = vld [vmem:[%s7656_s4] sm:$0xff]  ;;  %v1210_v24 = vld [vmem:[%s6031_s16 + $0x8] sm:$0xff]  ;;  %s7661_s4 = sld [smem:[#allocation9_spill]]  ;;  %s7666_s5 = sld [smem:[#allocation12_spill]] }
  0x6b   : > { %2699 = vperm.xlu0 %5524, %v2696_v3   ;;  %v3855_v15 = vld [vmem:[%s7657_s6] sm:$0xff]  ;;  %v1230_v16 = vsub.f32 1.0, %v1229_v14  ;;  %s7662_s6 = sld [smem:[#allocation7_spill]] }
  0x6c   : > { %v3856_v18 = vld [vmem:[%s7658_s8] sm:$0xff]  ;;  %s5748_s8 = smov 16  }
  0x6d   : > { %3279 = vperm.xlu1 %5525, %v3276_v9   ;;  %v1209_v23 = vld [vmem:[%s6031_s16] sm:$0xff] }
  0x6e   : > { %v1231_v30 = vld [vmem:[%s5775_s17] sm:$0xff] }
  0x6f   : > { %5526 = vset.pattern.permute.xlu0 %v5726_v8  ;;  %v1822_v31 = vld [vmem:[%s7660_s26] sm:$0xff]  ;;  %s7665_s26 = sld [smem:[#allocation11_spill]] }
  0x70   : > { %2416 = vperm.xlu0 %5526, %v2412_v7   ;;  %v1315_v32 = vld [vmem:[%s7661_s4] sm:$0xff]  ;;  %s5739_s4 = smov 3  }
  0x71   : > { %1813 = vperm.xlu1 %5525, %v1228_v11   ;;  %v2695_v33 = vld [vmem:[%s7662_s6] sm:$0xff]  ;;  %s5738_s6 = smov 2  }
  0x72   : > { %v1905_v34 = vld [vmem:[%s7663_s10] sm:$0xff]  ;;  %s5740_s10 = smov 127  }
  0x73   : > { %v3275_v35 = vld [vmem:[%s7664_s15] sm:$0xff]  ;;  %s5741_s15 = smov 1  }
  0x74   : > { %5529 = vset.pattern.permute.xlu0 %v5727_v13  ;;  %v3358_v37 = vld [vmem:[%s7666_s5] sm:$0xff]  ;;  %s7682_s5 = sld [smem:[#allocation13_spill]] }
  0x75   : > { %2495 = vperm.xlu0 %5529, %v2413_v12   ;;  %2403 = vperm.xlu1 %5525, %v1230_v16   ;;  %v2778_v36 = vld [vmem:[%s7665_s26] sm:$0xff]  ;;  %s5742_s26 = smov 126  }
  0x79   : > { %3924 = vperm.xlu0 %5529, %v3855_v15   ;;  %2452 = vperm.xlu1 %5525, %v2413_v12  }
  0x7d   : > { %5532 = vset.pattern.permute.xlu0 %v5728_v17  ;;  %3893 = vperm.xlu1 %5525, %v3856_v18  }
  0x7e   : > { %2527 = vperm.xlu0 %5532, %v2412_v7  }
  0x81   : > { %5527 = vset.pattern.permute.xlu1 %v5726_v8 }
  0x82   : > { %3980 = vperm.xlu0 %5532, %v3856_v18   ;;  %2423 = vperm.xlu1 %5527, %v2413_v12  }
  0x86   : > { %5535 = vset.pattern.permute.xlu0 %v5729_v19  ;;  %5528 = vset.pattern.permute.xlu1 %v5727_v13 }
  0x87   : > { %2583 = vperm.xlu0 %5535, %v2413_v12   ;;  %2483 = vperm.xlu1 %5528, %v2412_v7  }
  0x8b   : > { %4012 = vperm.xlu0 %5535, %v3855_v15   ;;  %5530 = vset.pattern.permute.xlu1 %v5726_v8 }
  0x8c   : > { %3859 = vperm.xlu1 %5530, %v3855_v15  }
  0x8f   : > { %5536 = vset.pattern.permute.xlu0 %v5730_v20 }
  0x90   : > { %2615 = vperm.xlu0 %5536, %v2412_v7   ;;  %3866 = vperm.xlu1 %5530, %v3856_v18  }
  0x94   : > { %4068 = vperm.xlu0 %5536, %v3856_v18   ;;  %5531 = vset.pattern.permute.xlu1 %v5727_v13 }
  0x95   : > { %3936 = vperm.xlu1 %5531, %v3856_v18  }
  0x98   : > { %5539 = vset.pattern.permute.xlu0 %v5731_v21 }
  0x99   : > { %2671 = vperm.xlu0 %5539, %v2413_v12   ;;  %5533 = vset.pattern.permute.xlu1 %v5728_v17 }
  0x9a   : > { %2539 = vperm.xlu1 %5533, %v2413_v12  }
  0x9d   : > { %4100 = vperm.xlu0 %5539, %v3855_v15  }
  0x9e   : > { %3968 = vperm.xlu1 %5533, %v3855_v15  }
  0xa1   : > { %5540 = vset.pattern.permute.xlu0 %v5724_v1 }
  0xa2   : > { %1598 = vperm.xlu0 %5540, %v1227_v10   ;;  %5534 = vset.pattern.permute.xlu1 %v5729_v19 }
  0xa3   : > { %2571 = vperm.xlu1 %5534, %v2412_v7  }
  0xa6   : > { %2188 = vperm.xlu0 %5540, %v1229_v14  }
  0xa7   : > { %4024 = vperm.xlu1 %5534, %v3856_v18  }
  0xaa   : > { %2440 = vperm.xlu0 %5540, %v2412_v7  }
  0xab   : > { %5537 = vset.pattern.permute.xlu1 %v5730_v20 }
  0xac   : > { %2627 = vperm.xlu1 %5537, %v2413_v12  }
  0xae   : > { %3881 = vperm.xlu0 %5540, %v3855_v15  }
  0xb0   : > { %4056 = vperm.xlu1 %5537, %v3855_v15  }
  0xb4   : > { %5538 = vset.pattern.permute.xlu1 %v5731_v21 }
  0xb5   : > { %2659 = vperm.xlu1 %5538, %v2412_v7  }
  0xb9   : > { %4112 = vperm.xlu1 %5538, %v3856_v18  }
  0xbd   : > { %5541 = vset.pattern.permute.xlu1 %v5724_v1 }
  0xe2   : > { %v1215_v22 = vpop.permute.xlu0 %1214 }
  0xe3   : > { %v1217_v25 = vmul.f32 %v1215_v22, %v1209_v23  ;;  %v1218_v26 = vmul.f32 %v1215_v22, %v1210_v24 }
  0xe4   : > { %v1236_v38 = vpop.permute.xlu1 %1235 }
  0xe6   : > { %v1223_v27 = vpop.permute.xlu0 %1222 }
  0xe7   : > { %v1225_v28 = vadd.f32 %v1223_v27, %v1217_v25  ;;  %v1226_v29 = vadd.f32 %v1223_v27, %v1218_v26  ;;  %v7612_v25 = vmov 683565275   ;;  %v7608_v27 = vmov 2475754826  }
  0xe8   : > { %v1827_v39 = vpop.permute.xlu1 %1826 }
  0xe9   : > { %1242 = vmatprep.subr.mxu1 %v1226_v29  ;;  %1832 = vmatprep.subr.mxu0 %v1226_v29 }
  0xea   : > { %1243 = vmatpush1.msra.mxu1 %v1225_v28  ;;  %1833 = vmatpush1.msra.mxu0 %v1225_v28 }
  0xeb   : > { %5247 = vmatmul.mubr.msk.f32.vlgmr.msra.gmra.mrb[0].mxu1 %vm7621_vm0, %v1231_v30  ;;  %1319 = vmatprep.subr.mxu1 %v1226_v29  ;;  %v7610_v30 = vmov 2131351028  }
  0xec   : > { %5265 = vmatmul.mubr.msk.f32.vlgmr.msra.gmra.mrb[0].mxu0 %vm7621_vm0, %v1822_v31  ;;  %2705 = vmatprep.subr.mxu0 %v1226_v29 }
  0xed   : > { %1320 = vmatpush1.msra.mxu1 %v1225_v28  ;;  %2706 = vmatpush1.msra.mxu0 %v1225_v28 }
  0xee   : > { %1909 = vmatprep.subr.mxu1 %v1226_v29  ;;  %3285 = vmatprep.subr.mxu0 %v1226_v29 }
  0xef   : > { %1383 = vmatprep.mubr.f32.mxu1 %v7598_v4  ;;  %2769 = vmatprep.mubr.f32.mxu0 %v7598_v4 }
  0xf0   : > { %5248 = vmatmul.mubr.msk.f32.vlgmr.msra.gmra.mrb[2].mxu1 %vm7621_vm0, %v1315_v32  ;;  %5288 = vmatmul.mubr.msk.f32.vlgmr.msra.gmra.mrb[2].mxu0 %vm7621_vm0, %v2695_v33  ;;  %v7615_v32 = vmov 2102212464  }
  0xf1   : > { %1910 = vmatpush1.msra.mxu1 %v1225_v28  ;;  %3286 = vmatpush1.msra.mxu0 %v1225_v28 }
  0xf2   : > { %2782 = vmatprep.subr.mxu1 %v1226_v29  ;;  %4140 = vmatprep.subr.mxu0 %v1226_v29 }
  0xf3   : > { %1973 = vmatprep.mubr.f32.mxu1 %v7598_v4  ;;  %3349 = vmatprep.mubr.f32.mxu0 %v7598_v4 }
  0xf4   : > { %5266 = vmatmul.mubr.msk.f32.vlgmr.msra.gmra.mrb[4].mxu1 %vm7621_vm0, %v1905_v34  ;;  %5306 = vmatmul.mubr.msk.f32.vlgmr.msra.gmra.mrb[4].mxu0 %vm7621_vm0, %v3275_v35  ;;  %v7605_v34 = vmov 920167782  }
  0xf5   : > { %2783 = vmatpush1.msra.mxu1 %v1225_v28  ;;  %4141 = vmatpush1.msra.mxu0 %v1225_v28 }
  0xf6   : > { %3362 = vmatprep.subr.mxu1 %v1226_v29  ;;  %2846 = vmatprep.mubr.f32.mxu1 %v7598_v4 }
  0xf7   : > { %4204 = vmatprep.mubr.f32.mxu0 %v7598_v4  ;;  %5363 = vmatprep.subr.mxu0 %v7598_v4 }
  0xf8   : > { %5289 = vmatmul.mubr.msk.f32.vlgmr.msra.gmra.mrb[6].mxu1 %vm7621_vm0, %v2778_v36 }
  0xf9   : > { %3363 = vmatpush1.msra.mxu1 %v1225_v28  ;;  %3426 = vmatprep.mubr.f32.mxu1 %v7598_v4 }
  0xfa   : > { %5358 = vmatprep.subr.mxu1 %v7598_v4 }
  0xfc   : > { %5307 = vmatmul.mubr.msk.f32.vlgmr.msra.gmra.mrb[8].mxu1 %vm7621_vm0, %v3358_v37 }
 0x1be   : > { %v1308_v40 = vpop.f32.mrb[0].mxu1 }
 0x1bf   : > { %v1309_v41 = vadd.f32 %v1308_v40, %v1236_v38  ;;  %v1898_v42 = vpop.f32.mrb[0].mxu0  ;;  %v1310_v43 = vpop.f32.mrb[1].mxu1 }
 0x1c0   : > { %v1899_v44 = vadd.f32 %v1898_v42, %v1827_v39  ;;  %v1311_v45 = vadd.f32 %v1310_v43, %v1236_v38  ;;  %v1900_v46 = vpop.f32.mrb[1].mxu0 }
 0x1c1   : > { %v6060_v47 = vmax.f32 %v1309_v41, 0.0  ;;  %v1901_v52 = vadd.f32 %v1900_v46, %v1827_v39  ;;  %v7603_v41 = vmov 1326507024  }
 0x1c2   : > { %v6062_v48 = vmax.f32 %v1899_v44, 0.0  ;;  %v6064_v49 = vmax.f32 %v1311_v45, 0.0 }
 0x1c3   : > { %v1390_v50 = vand.u32 2147483647, %v6060_v47  ;;  %v1393_v51 = vand.u32 2139095040, %v6060_v47  ;;  %v6068_v53 = vpop.f32.mrb[2].mxu0  ;;  %v6078_v63 = vmax.f32 %v1901_v52, 0.0 }
 0x1c4   : > { %v1980_v54 = vand.u32 2147483647, %v6062_v48  ;;  %v1983_v55 = vand.u32 2139095040, %v6062_v48  ;;  %v1493_v58 = vand.u32 2147483647, %v6064_v49  ;;  %v1496_v61 = vand.u32 2139095040, %v6064_v49 }
 0x1c5   : > { %v1394_v56 = vshrl.u32 %v1393_v51, 23  ;;  %v1397_v57 = vand.u32 8388607, %v1390_v50  ;;  %v6080_v3 = vpop.f32.mrb[3].mxu0  ;;  %v2086_v12 = vand.u32 2139095040, %v6078_v63 }
 0x1c6   : > { %v1984_v59 = vshrl.u32 %v1983_v55, 23  ;;  %v1987_v60 = vand.u32 8388607, %v1980_v54  ;;  %v1497_v2 = vshrl.u32 %v1496_v61, 23  ;;  %v6084_v6 = vand.u32 8388607, %v1493_v58 }
 0x1c7   : > { %v5249_v62 = vadd.s32 4294967169, %v1394_v56  ;;  %v1398_v0 = vor.u32 8388608, %v1397_v57  ;;  %v6086_v7 = vpop.f32.mrb[4].mxu0  ;;  %v7602_v15 = vand.u32 2147483647, %v6078_v63  ;;  %v6101_v23 = vshrl.u32 %v2086_v12, 23 }
 0x1c8   : > { %v5267_v1 = vadd.s32 4294967169, %v1984_v59  ;;  %v1988_v8 = vor.u32 8388608, %v1987_v60  ;;  %v5253_v10 = vadd.s32 4294967169, %v1497_v2  ;;  %v6088_v11 = vpop.f32.mrb[5].mxu0  ;;  %v1501_v19 = vor.u32 8388608, %v6084_v6 }
 0x1c9   : > { %v1400_v5 = vadd.s32 1, %v5249_v62  ;;  %v6091_v14 = vshll.u32 %v1398_v0, 8 }
 0x1ca   : > { %v1990_v9 = vadd.s32 1, %v5267_v1  ;;  %v6097_v21 = vshll.u32 %v1988_v8, 8  ;;  %v6099_v22 = vadd.s32 1, %v5253_v10 }
 0x1cb   : > { %vm1401_vm1 = vcmp.gt.s32.totalorder %v1400_v5, 0 }
 0x1cc   : > { %v1402_v13 = vsel %vm1401_vm1, %v1400_v5, 0  ;;  %vm1991_vm2 = vcmp.gt.s32.totalorder %v1990_v9, 0  ;;  %vm1504_vm7 = vcmp.gt.s32.totalorder %v6099_v22, 0 }
 0x1cd   : > { %v1403_v16 = vshrl.u32 %v1402_v13, 5  ;;  %v1404_v17 = vand.u32 31, %v1402_v13  ;;  %v1992_v18 = vsel %vm1991_vm2, %v1990_v9, 0 }
 0x1ce   : > { %v6095_v20 = vshrl.u32 %v1992_v18, 5  ;;  %v1994_v29 = vand.u32 31, %v1992_v18 }
 0x1cf   : > { %v1405_v24 = vsub.s32 32, %v1404_v17  ;;  %v1407_v26 = vshll.u32 %v7612_v25, %v1404_v17  ;;  %v1410_v28 = vshll.u32 %v7608_v27, %v1404_v17  ;;  %v1413_v31 = vshll.u32 %v7610_v30, %v1404_v17 }
 0x1d0   : > { %v1416_v33 = vshll.u32 %v7615_v32, %v1404_v17  ;;  %v1419_v35 = vshll.u32 %v7605_v34, %v1404_v17  ;;  %vm1422_vm3 = vcmp.lt.s32.totalorder %v1403_v16, 1  ;;  %vm1423_vm4 = vcmp.lt.s32.totalorder %v1403_v16, 2 }
 0x1d1   : > { %v1408_v36 = vshrl.u32 %v7608_v27, %v1405_v24  ;;  %v1411_v37 = vshrl.u32 %v7610_v30, %v1405_v24  ;;  %v1414_v38 = vshrl.u32 %v7615_v32, %v1405_v24  ;;  %v1406_v39 = vshrl.u32 %v7612_v25, %v1405_v24 }
 0x1d2   : > { %v1417_v40 = vshrl.u32 %v7605_v34, %v1405_v24  ;;  %v1420_v42 = vshrl.u32 %v7603_v41, %v1405_v24  ;;  %vm1424_vm5 = vcmp.lt.s32.totalorder %v1403_v16, 3  ;;  %v1995_v46 = vsub.s32 32, %v1994_v29 }
 0x1d3   : > { %v1409_v43 = vor.u32 %v1408_v36, %v1407_v26  ;;  %v1412_v44 = vor.u32 %v1411_v37, %v1410_v28  ;;  %v1415_v45 = vor.u32 %v1414_v38, %v1413_v31  ;;  %vm1425_vm6 = vcmp.lt.s32.totalorder %v1403_v16, 4 }
 0x1d4   : > { %v1418_v51 = vor.u32 %v1417_v40, %v1416_v33  ;;  %v1421_v52 = vor.u32 %v1420_v42, %v1419_v35  ;;  %v1997_v55 = vshll.u32 %v7612_v25, %v1994_v29  ;;  %v2000_v1 = vshll.u32 %v7608_v27, %v1994_v29 }
 0x1d5   : > { %v1426_v56 = vsel %vm1422_vm3, %v1406_v39, %v1409_v43  ;;  %v1427_v57 = vsel %vm1425_vm6, %v1415_v45, 2102212464  ;;  %v1430_v59 = vsel %vm1422_vm3, %v1409_v43, %v1412_v44  ;;  %v1434_v60 = vsel %vm1422_vm3, %v1412_v44, %v1415_v45 }
 0x1d6   : > { %v1428_v61 = vsel %vm1424_vm5, %v1412_v44, %v1427_v57  ;;  %v1431_v62 = vsel %vm1425_vm6, %v1418_v51, 920167782  ;;  %v1435_v0 = vsel %vm1425_vm6, %v1421_v52, 1326507024  ;;  %v1996_v8 = vshrl.u32 %v7612_v25, %v1995_v46 }
 0x1d7   : > { %v1432_v2 = vsel %vm1424_vm5, %v1415_v45, %v1431_v62  ;;  %v1436_v5 = vsel %vm1424_vm5, %v1418_v51, %v1435_v0  ;;  %v1998_v9 = vshrl.u32 %v7608_v27, %v1995_v46  ;;  %v1429_v10 = vsel %vm1423_vm4, %v1426_v56, %v1428_v61 }
 0x1d8   : > { %v1433_v12 = vsel %vm1423_vm4, %v1430_v59, %v1432_v2  ;;  %v1437_v13 = vsel %vm1423_vm4, %v1434_v60, %v1436_v5  ;;  %v2001_v17 = vshrl.u32 %v7610_v30, %v1995_v46  ;;  %v2003_v35 = vshll.u32 %v7610_v30, %v1994_v29 }
 0x1d9   : > { %v6130_v18 = vmul.u32.u64.low %v6091_v14, %v1437_v13  ;;  %v6131_v24 = vmul.u32.u64.high %v6091_v14, %v1437_v13, %v6130_v18  ;;  %v6134_v26 = vmul.u32.u64.low %v6091_v14, %v1433_v12  ;;  %v6135_v28 = vmul.u32.u64.high %v6091_v14, %v1433_v12, %v6134_v26 }
 0x1da   : > { %v1999_v31 = vor.u32 %v1998_v9, %v1997_v55  ;;  %v2002_v33 = vor.u32 %v2001_v17, %v2000_v1  ;;  %v2004_v36 = vshrl.u32 %v7615_v32, %v1995_v46  ;;  %v1445_v16 = vmul.u32 %v6091_v14, %v1429_v10 }
 0x1db   : > { %v2006_v37 = vshll.u32 %v7615_v32, %v1994_v29  ;;  %v2007_v38 = vshrl.u32 %v7605_v34, %v1995_v46  ;;  %v2010_v39 = vshrl.u32 %v7603_v41, %v1995_v46  ;;  %v2009_v42 = vshll.u32 %v7605_v34, %v1994_v29 }
 0x1dc   : > { %v2005_v40 = vor.u32 %v2004_v36, %v2003_v35  ;;  %vm2012_vm8 = vcmp.lt.s32.totalorder %v6095_v20, 1  ;;  %vm2013_vm9 = vcmp.lt.s32.totalorder %v6095_v20, 2  ;;  %vm1447_vm10 = vc.u32 %v6131_v24, %v6134_v26 }
 0x1dd   : > { %v1448_v43 = vadd.s32 1, %v6135_v28  ;;  %v2008_v44 = vor.u32 %v2007_v38, %v2006_v37  ;;  %vm2014_vm11 = vcmp.lt.s32.totalorder %v6095_v20, 3  ;;  %v2011_v14 = vor.u32 %v2010_v39, %v2009_v42 }
 0x1de   : > { %vm2015_vm12 = vcmp.lt.s32.totalorder %v6095_v20, 4  ;;  %v2016_v45 = vsel %vm2012_vm8, %v1996_v8, %v1999_v31  ;;  %v2020_v46 = vsel %vm2012_vm8, %v1999_v31, %v2002_v33  ;;  %v2024_v55 = vsel %vm2012_vm8, %v2002_v33, %v2005_v40 }
 0x1df   : > { %v1449_v51 = vsel %vm1447_vm10, %v1448_v43, %v6135_v28  ;;  %v2017_v29 = vsel %vm2015_vm12, %v2005_v40, 2102212464  ;;  %v2021_v52 = vsel %vm2015_vm12, %v2008_v44, 920167782  ;;  %v2025_v60 = vsel %vm2015_vm12, %v2011_v14, 1326507024 }
 0x1e0   : > { %v1450_v56 = vadd.s32 %v1449_v51, %v1445_v16  ;;  %v2018_v57 = vsel %vm2014_vm11, %v2002_v33, %v2017_v29  ;;  %v2022_v59 = vsel %vm2014_vm11, %v2005_v40, %v2021_v52  ;;  %v2026_v0 = vsel %vm2014_vm11, %v2008_v44, %v2025_v60 }
 0x1e1   : > { %v2019_v61 = vsel %vm2013_vm9, %v2016_v45, %v2018_v57  ;;  %v2023_v62 = vsel %vm2013_vm9, %v2020_v46, %v2022_v59  ;;  %v1505_v1 = vsel %vm1504_vm7, %v6099_v22, 0  ;;  %v2027_v5 = vsel %vm2013_vm9, %v2024_v55, %v2026_v0 }
 0x1e2   : > { %v1451_v2 = vadd.s32 536870912, %v1450_v56  ;;  %v6163_v8 = vmul.u32.u64.low %v6097_v21, %v2023_v62  ;;  %v6164_v9 = vmul.u32.u64.high %v6097_v21, %v2023_v62, %v6163_v8  ;;  %v1506_v13 = vshrl.u32 %v1505_v1, 5 }
 0x1e3   : > { %v6168_v10 = vmul.u32.u64.low %v6097_v21, %v2027_v5  ;;  %v6169_v12 = vmul.u32.u64.high %v6097_v21, %v2027_v5, %v6168_v10  ;;  %v1507_v18 = vand.u32 31, %v1505_v1  ;;  %v6175_v22 = vshll.u32 %v1501_v19, 8 }
 0x1e4   : > { %v6171_v17 = vshrl.u32 %v1451_v2, 30  ;;  %v6179_v20 = vand.u32 8388607, %v7602_v15  ;;  %v2035_v28 = vmul.u32 %v6097_v21, %v2019_v61  ;;  %vm1525_vm13 = vcmp.lt.s32.totalorder %v1506_v13, 1 }
 0x1e5   : > { %vm1527_vm14 = vcmp.lt.s32.totalorder %v1506_v13, 3  ;;  %v5271_v31 = vadd.s32 4294967169, %v6101_v23  ;;  %v2038_v35 = vadd.s32 1, %v6164_v9  ;;  %v1508_v36 = vsub.s32 32, %v1507_v18 }
 0x1e6   : > { %v1453_v33 = vshll.u32 %v6171_v17, 30  ;;  %vm1528_vm15 = vcmp.lt.s32.totalorder %v1506_v13, 4  ;;  %vm2037_vm1 = vc.u32 %v6169_v12, %v6163_v8  ;;  %v1510_v6 = vshll.u32 %v7612_v25, %v1507_v18 }
 0x1e7   : > { %v1513_v19 = vshll.u32 %v7608_v27, %v1507_v18  ;;  %v1516_v16 = vshll.u32 %v7610_v30, %v1507_v18  ;;  %v2039_v37 = vsel %vm2037_vm1, %v2038_v35, %v6164_v9  ;;  %v1509_v23 = vshrl.u32 %v7612_v25, %v1508_v36 }
 0x1e8   : > { %v6190_v21 = vsub.s32 %v1450_v56, %v1453_v33  ;;  %v1511_v38 = vshrl.u32 %v7608_v27, %v1508_v36  ;;  %v2040_v39 = vadd.s32 %v2039_v37, %v2035_v28  ;;  %v1514_v40 = vshrl.u32 %v7610_v30, %v1508_v36 }
 0x1e9   : > { %v1517_v42 = vshrl.u32 %v7615_v32, %v1508_v36  ;;  %v1519_v43 = vshll.u32 %v7615_v32, %v1507_v18  ;;  %v1520_v45 = vshrl.u32 %v7605_v34, %v1508_v36  ;;  %v1522_v46 = vshll.u32 %v7605_v34, %v1507_v18 }
 0x1ea   : > { %v1456_v44 = vsub.s32 0, %v6190_v21  ;;  %v1512_v14 = vor.u32 %v1511_v38, %v1510_v6  ;;  %v2041_v51 = vadd.s32 536870912, %v2040_v39  ;;  %v1515_v29 = vor.u32 %v1514_v40, %v1513_v19 }
 0x1eb   : > { %v1518_v52 = vor.u32 %v1517_v42, %v1516_v16  ;;  %v1523_v55 = vshrl.u32 %v7603_v41, %v1508_v36  ;;  %v1521_v57 = vor.u32 %v1520_v45, %v1519_v43  ;;  %v2093_v60 = vadd.s32 1, %v5271_v31 }
 0x1ec   : > { %v5250_v56 = vmin.u32 %v1456_v44, %v6190_v21  ;;  %v1529_v59 = vsel %vm1525_vm13, %v1509_v23, %v1512_v14  ;;  %v6204_v61 = vshrl.u32 %v2041_v51, 30  ;;  %v1533_v1 = vsel %vm1525_vm13, %v1512_v14, %v1515_v29 }
 0x1ed   : > { %v1524_v62 = vor.u32 %v1523_v55, %v1522_v46  ;;  %v1530_v0 = vsel %vm1528_vm15, %v1518_v52, 2102212464  ;;  %v1534_v9 = vsel %vm1528_vm15, %v1521_v57, 920167782  ;;  %v1537_v10 = vsel %vm1525_vm13, %v1515_v29, %v1518_v52 }
 0x1ee   : > { %v1458_v2 = vclz %v5250_v56  ;;  %v1531_v5 = vsel %vm1527_vm14, %v1515_v29, %v1530_v0  ;;  %v2043_v18 = vshll.u32 %v6204_v61, 30  ;;  %vm1526_vm2 = vcmp.lt.s32.totalorder %v1506_v13, 2 }
 0x1ef   : > { %v1535_v28 = vsel %vm1527_vm14, %v1518_v52, %v1534_v9  ;;  %v1538_v31 = vsel %vm1528_vm15, %v1524_v62, 1326507024  ;;  %v1532_v35 = vsel %vm1526_vm2, %v1529_v59, %v1531_v5  ;;  %vm2094_vm4 = vcmp.gt.s32.totalorder %v2093_v60, 0  ;;  %v6236_v59 = vpop.permute.xlu0 %2699 }
 0x1f0   : > { %v5251_v33 = vadd.s32 4294967294, %v1458_v2  ;;  %v1536_v36 = vsel %vm1526_vm2, %v1533_v1, %v1535_v28  ;;  %v1539_v6 = vsel %vm1527_vm14, %v1521_v57, %v1538_v31  ;;  %v6215_v19 = vsub.s32 %v2040_v39, %v2043_v18 }
 0x1f1   : > { %v1540_v16 = vsel %vm1526_vm2, %v1537_v10, %v1539_v6  ;;  %v6218_v37 = vmul.u32.u64.low %v6175_v22, %v1536_v36  ;;  %v6219_v23 = vmul.u32.u64.high %v6175_v22, %v1536_v36, %v6218_v37  ;;  %v2095_v44 = vsel %vm2094_vm4, %v2093_v60, 0 }
 0x1f2   : > { %vm5252_vm3 = vcmp.lt.s32.totalorder %v5251_v33, 0  ;;  %v6223_v38 = vmul.u32.u64.low %v6175_v22, %v1540_v16  ;;  %v6224_v40 = vmul.u32.u64.high %v6175_v22, %v1540_v16, %v6223_v38  ;;  %v2046_v43 = vsub.s32 0, %v6215_v19 }
 0x1f3   : > { %v1461_v42 = vsel %vm5252_vm3, 0, %v5251_v33  ;;  %v1446_v13 = vadd.s32 %v6134_v26, %v6131_v24  ;;  %v2091_v45 = vor.u32 8388608, %v6179_v20  ;;  %v1548_v51 = vmul.u32 %v6175_v22, %v1532_v35 }
 0x1f4   : > { %v1462_v39 = vsub.s32 32, %v1461_v42  ;;  %v1466_v14 = vsub.s32 4294967266, %v1461_v42  ;;  %v5268_v46 = vmin.u32 %v2046_v43, %v6215_v19  ;;  %v1551_v29 = vadd.s32 1, %v6219_v23 }
 0x1f5   : > { %v2097_v52 = vand.u32 31, %v2095_v44  ;;  %v1463_v55 = vshll.u32 %v6190_v21, %v1461_v42  ;;  %vm1550_vm5 = vc.u32 %v6224_v40, %v6218_v37  ;;  %v2772_v22 = vadd.f32 %v6068_v53, %v6236_v59 }
 0x1f6   : > { %v1464_v56 = vshrl.u32 %v1446_v13, %v1462_v39  ;;  %v1467_v57 = vadd.s32 127, %v1466_v14  ;;  %v2048_v24 = vclz %v5268_v46  ;;  %v1552_v26 = vsel %vm1550_vm5, %v1551_v29, %v6219_v23 }
 0x1f7   : > { %v2098_v20 = vsub.s32 32, %v2097_v52  ;;  %v1553_v0 = vadd.s32 %v1552_v26, %v1548_v51  ;;  %v2036_v21 = vadd.s32 %v6163_v8, %v6169_v12  ;;  %v6244_v5 = vshll.u32 %v2091_v45, 8 }
 0x1f8   : > { %v1465_v60 = vor.u32 %v1464_v56, %v1463_v55  ;;  %v1468_v62 = vshll.u32 %v1467_v57, 23  ;;  %v5269_v1 = vadd.s32 4294967294, %v2048_v24  ;;  %v6246_v18 = vshrl.u32 %v2095_v44, 5 }
 0x1f9   : > { %v2101_v2 = vshrl.u32 %v7608_v27, %v2098_v20  ;;  %v1554_v10 = vadd.s32 536870912, %v1553_v0  ;;  %v2100_v28 = vshll.u32 %v7612_v25, %v2097_v52  ;;  %v2103_v33 = vshll.u32 %v7608_v27, %v2097_v52 }
 0x1fa   : > { %v1469_v9 = vor.u32 4788187, %v1468_v62  ;;  %v1472_v31 = vcvt.s32.f32 %v1465_v60  ;;  %vm5270_vm6 = vcmp.lt.s32.totalorder %v5269_v1, 0  ;;  %v2104_v53 = vshrl.u32 %v7610_v30, %v2098_v20 }
 0x1fb   : > { %v2051_v36 = vsel %vm5270_vm6, 0, %v5269_v1  ;;  %v6251_v8 = vshrl.u32 %v1554_v10, 30  ;;  %v2107_v12 = vshrl.u32 %v7615_v32, %v2098_v20  ;;  %v2102_v23 = vor.u32 %v2101_v2, %v2100_v28 }
 0x1fc   : > { %v1470_v35 = vand.u32 2147483647, %v1469_v9  ;;  %v2052_v6 = vsub.s32 32, %v2051_v36  ;;  %v2056_v16 = vsub.s32 4294967266, %v2051_v36  ;;  %v2106_v38 = vshll.u32 %v7610_v30, %v2097_v52 }
 0x1fd   : > { %v2053_v42 = vshll.u32 %v6215_v19, %v2051_v36  ;;  %v1556_v43 = vshll.u32 %v6251_v8, 30  ;;  %v2109_v44 = vshll.u32 %v7615_v32, %v2097_v52  ;;  %v2110_v13 = vshrl.u32 %v7605_v34, %v2098_v20 }
 0x1fe   : > { %v1473_v39 = vmul.f32 %v1472_v31, %v1470_v35  ;;  %v2054_v14 = vshrl.u32 %v2036_v21, %v2052_v6  ;;  %v2057_v45 = vadd.s32 127, %v2056_v16  ;;  %v2113_v46 = vshrl.u32 %v7603_v41, %v2098_v20 }
 0x1ff   : > { %v6260_v51 = vsub.s32 %v1553_v0, %v1556_v43  ;;  %v2105_v29 = vor.u32 %v2104_v53, %v2103_v33  ;;  %v2108_v55 = vor.u32 %v2107_v12, %v2106_v38  ;;  %v2112_v56 = vshll.u32 %v7605_v34, %v2097_v52 }
 0x200   : > { %v2055_v57 = vor.u32 %v2054_v14, %v2053_v42  ;;  %v2058_v24 = vshll.u32 %v2057_v45, 23  ;;  %v2111_v19 = vor.u32 %v2110_v13, %v2109_v44  ;;  %v6263_v26 = vmax.f32 %v2772_v22, 0.0 }
 0x201   : > { %v1559_v60 = vsub.s32 0, %v6260_v51  ;;  %v2099_v62 = vshrl.u32 %v7612_v25, %v2098_v20  ;;  %v2114_v1 = vor.u32 %v2113_v46, %v2112_v56  ;;  %vm2115_vm7 = vcmp.lt.s32.totalorder %v6246_v18, 1 }
 0x202   : > { %v1474_v21 = vxor.u32 2147483648, %v1473_v39  ;;  %v2059_v2 = vor.u32 4788187, %v2058_v24  ;;  %vm2116_vm8 = vcmp.lt.s32.totalorder %v6246_v18, 2  ;;  %vm2118_vm9 = vcmp.lt.s32.totalorder %v6246_v18, 4  ;;  %v6295_v24 = vpop.permute.xlu1 %3279 }
 0x203   : > { %v5254_v52 = vmin.u32 %v1559_v60, %v6260_v51  ;;  %vm2117_vm10 = vcmp.lt.s32.totalorder %v6246_v18, 3  ;;  %v2120_v0 = vsel %vm2118_vm9, %v2108_v55, 2102212464  ;;  %v2123_v22 = vsel %vm2115_vm7, %v2102_v23, %v2105_v29 }
 0x204   : > { %v2060_v9 = vand.u32 2147483647, %v2059_v2  ;;  %v2062_v10 = vcvt.s32.f32 %v2055_v57  ;;  %v2119_v28 = vsel %vm2115_vm7, %v2099_v62, %v2102_v23  ;;  %v2124_v31 = vsel %vm2118_vm9, %v2111_v19, 920167782 }
 0x205   : > { %v1561_v20 = vclz %v5254_v52  ;;  %v2125_v33 = vsel %vm2117_vm10, %v2108_v55, %v2124_v31  ;;  %v2127_v53 = vsel %vm2115_vm7, %v2105_v29, %v2108_v55  ;;  %v2128_v35 = vsel %vm2118_vm9, %v2114_v1, 1326507024  ;;  %v6305_v1 = vpop.f32.mrb[2].mxu1 }
 0x206   : > { %v2063_v36 = vmul.f32 %v2062_v10, %v2060_v9  ;;  %v2121_v12 = vsel %vm2117_vm10, %v2105_v29, %v2120_v0  ;;  %v2126_v6 = vsel %vm2116_vm8, %v2123_v22, %v2125_v33  ;;  %v2129_v16 = vsel %vm2117_vm10, %v2111_v19, %v2128_v35 }
 0x207   : > { %v5255_v38 = vadd.s32 4294967294, %v1561_v20  ;;  %v2130_v42 = vsel %vm2116_vm8, %v2127_v53, %v2129_v16  ;;  %v6277_v43 = vmul.u32.u64.low %v6244_v5, %v2126_v6  ;;  %v6278_v44 = vmul.u32.u64.high %v6244_v5, %v2126_v6, %v6277_v43 }
 0x208   : > { %vm1392_vm11 = vcmp.lt.s32.totalorder %v6060_v47, 0  ;;  %vm1982_vm12 = vcmp.lt.s32.totalorder %v6062_v48, 0  ;;  %v6284_v23 = vmul.u32.u64.low %v6244_v5, %v2130_v42  ;;  %v6285_v13 = vmul.u32.u64.high %v6244_v5, %v2130_v42, %v6284_v23 }
 0x209   : > { %v1475_v14 = vsel %vm1392_vm11, %v1474_v21, %v1473_v39  ;;  %vm5256_vm13 = vcmp.lt.s32.totalorder %v5255_v38, 0  ;;  %v7601_v45 = vand.u32 2147483647, %v6263_v26  ;;  %v2856_v46 = vand.u32 2139095040, %v6263_v26 }
 0x20a   : > { %v2064_v29 = vxor.u32 2147483648, %v2063_v36  ;;  %v1564_v55 = vsel %vm5256_vm13, 0, %v5255_v38  ;;  %v2122_v56 = vsel %vm2116_vm8, %v2119_v28, %v2121_v12  ;;  %v2774_v57 = vadd.f32 %v6080_v3, %v6236_v59  ;;  %v6315_v59 = vpop.f32.mrb[3].mxu1 }
 0x20b   : > { %vm6299_vm14 = vcmp.le.f32.partialorder %v1390_v50, 0.7853982  ;;  %v1549_v39 = vadd.s32 %v6218_v37, %v6224_v40  ;;  %v1565_v60 = vsub.s32 32, %v1564_v55  ;;  %v1569_v62 = vsub.s32 4294967266, %v1564_v55  ;;  %7669 = vst [vmem:[#allocation33_spill] sm:$0xff] %v6315_v59  ;;  %v6318_v52 = vpop.f32.mrb[4].mxu1 }
 0x20c   : > { %v1478_v18 = vsel %vm6299_vm14, %v6060_v47, %v1475_v14  ;;  %vm2140_vm15 = vc.u32 %v6285_v13, %v6277_v43  ;;  %v2141_v3 = vadd.s32 1, %v6278_v44  ;;  %v3352_v50 = vadd.f32 %v6086_v7, %v6295_v24  ;;  %7670 = vst [vmem:[#allocation34_spill] sm:$0xff] %v6318_v52  ;;  %v6327_v7 = vpop.f32.mrb[5].mxu1 }
 0x20d   : > { %v1567_v21 = vshrl.u32 %v1549_v39, %v1565_v60  ;;  %v1570_v37 = vadd.s32 127, %v1569_v62  ;;  %v2138_v40 = vmul.u32 %v6244_v5, %v2122_v56  ;;  %v2857_v2 = vshrl.u32 %v2856_v46, 23  ;;  %7671 = vst [vmem:[#allocation35_spill] sm:$0xff] %v6327_v7  ;;  %v6330_v33 = vpop.f32.mrb[6].mxu1 }
 0x20e   : > { %v2065_v0 = vsel %vm1982_vm12, %v2064_v29, %v2063_v36  ;;  %v2142_v22 = vsel %vm2140_vm15, %v2141_v3, %v6278_v44  ;;  %v2860_v9 = vand.u32 8388607, %v7601_v45  ;;  %v6325_v10 = vmax.f32 %v2774_v57, 0.0  ;;  %7672 = vst [vmem:[#allocation36_spill] sm:$0xff] %v6330_v33  ;;  %v6352_v57 = vpop.f32.mrb[7].mxu1 }
 0x20f   : > { %v1566_v28 = vshll.u32 %v6260_v51, %v1564_v55  ;;  %v1571_v31 = vshll.u32 %v1570_v37, 23  ;;  %v2143_v20 = vadd.s32 %v2142_v22, %v2138_v40  ;;  %v5290_v5 = vadd.s32 4294967169, %v2857_v2  ;;  %7675 = vst [vmem:[#allocation37_spill] sm:$0xff] %v6352_v57 }
 0x210   : > { %vm6334_vm1 = vcmp.le.f32.partialorder %v1980_v54, 0.7853982  ;;  %v7600_v35 = vand.u32 2147483647, %v6325_v10  ;;  %v2959_v36 = vand.u32 2139095040, %v6325_v10  ;;  %v6340_v12 = vmax.f32 %v3352_v50, 0.0 }
 0x211   : > { %v1568_v6 = vor.u32 %v1567_v21, %v1566_v28  ;;  %v1572_v16 = vor.u32 4788187, %v1571_v31  ;;  %v2144_v51 = vadd.s32 536870912, %v2143_v20  ;;  %v2863_v38 = vadd.s32 1, %v5290_v5 }
 0x212   : > { %5542 = vcosq.f32 %v1478_v18  ;;  %v2068_v42 = vsel %vm6334_vm1, %v6062_v48, %v2065_v0  ;;  %v2861_v44 = vor.u32 8388608, %v2860_v9  ;;  %v2960_v54 = vshrl.u32 %v2959_v36, 23 }
 0x213   : > { %v1573_v23 = vand.u32 2147483647, %v1572_v16  ;;  %v6345_v14 = vshrl.u32 %v2144_v51, 30  ;;  %vm2864_vm2 = vcmp.gt.s32.totalorder %v2863_v38, 0  ;;  %v6349_v46 = vand.u32 8388607, %v7600_v35 }
 0x214   : > { %5544 = vsinq.f32 %v1478_v18  ;;  %v2865_v29 = vsel %vm2864_vm2, %v2863_v38, 0  ;;  %v5294_v55 = vadd.s32 4294967169, %v2960_v54  ;;  %v3436_v56 = vand.u32 2139095040, %v6340_v12  ;;  %v6378_v54 = vpop.f32.mrb[8].mxu1 }
 0x215   : > { %5546 = vcosq.f32 %v2068_v42  ;;  %v1575_v39 = vcvt.s32.f32 %v1568_v6  ;;  %v2146_v60 = vshll.u32 %v6345_v14, 30  ;;  %v2867_v62 = vand.u32 31, %v2865_v29  ;;  %7676 = vst [vmem:[#allocation38_spill] sm:$0xff] %v6378_v54 }
 0x216   : > { %5548 = vsinq.f32 %v2068_v42  ;;  %v6357_v3 = vadd.s32 %v6277_v43, %v6285_v13  ;;  %v6359_v50 = vshll.u32 %v2861_v44, 8  ;;  %v7607_v18 = vand.u32 2147483647, %v6340_v12 }
 0x217   : > { %v1576_v21 = vmul.f32 %v1575_v39, %v1573_v23  ;;  %v6362_v37 = vsub.s32 %v2143_v20, %v2146_v60  ;;  %v2868_v40 = vsub.s32 32, %v2867_v62  ;;  %v2964_v2 = vor.u32 8388608, %v6349_v46  ;;  %v6736_v60 = vpop.permute.xlu1 %1813 }
 0x218   : > { %v2866_v0 = vshrl.u32 %v2865_v29, 5  ;;  %v2870_v22 = vshll.u32 %v7612_v25, %v2867_v62  ;;  %v2966_v9 = vadd.s32 1, %v5294_v55  ;;  %v3437_v28 = vshrl.u32 %v3436_v56, 23 }
 0x219   : > { %v2149_v31 = vsub.s32 0, %v6362_v37  ;;  %v2871_v43 = vshrl.u32 %v7608_v27, %v2868_v40  ;;  %v2873_v13 = vshll.u32 %v7608_v27, %v2867_v62  ;;  %v2876_v5 = vshll.u32 %v7610_v30, %v2867_v62 }
 0x21a   : > { %vm1495_vm3 = vcmp.lt.s32.totalorder %v6064_v49, 0  ;;  %v2874_v20 = vshrl.u32 %v7610_v30, %v2868_v40  ;;  %v2877_v36 = vshrl.u32 %v7615_v32, %v2868_v40  ;;  %v2879_v6 = vshll.u32 %v7615_v32, %v2867_v62 }
 0x21b   : > { %v2880_v16 = vshrl.u32 %v7605_v34, %v2868_v40  ;;  %v5272_v51 = vmin.u32 %v2149_v31, %v6362_v37  ;;  %v2872_v38 = vor.u32 %v2871_v43, %v2870_v22  ;;  %v2882_v42 = vshll.u32 %v7605_v34, %v2867_v62 }
 0x21c   : > { %v2883_v44 = vshrl.u32 %v7603_v41, %v2868_v40  ;;  %v6380_v23 = vpop.eup %5542  ;;  %v1577_v29 = vxor.u32 2147483648, %v1576_v21  ;;  %v2875_v55 = vor.u32 %v2874_v20, %v2873_v13  ;;  %v2878_v56 = vor.u32 %v2877_v36, %v2876_v5 }
 0x21d   : > { %v2881_v39 = vor.u32 %v2880_v16, %v2879_v6  ;;  %vm6384_vm4 = vcmp.le.f32.partialorder %v1493_v58, 0.7853982  ;;  %v2151_v31 = vclz %v5272_v51  ;;  %v2869_v22 = vshrl.u32 %v7612_v25, %v2868_v40 }
 0x21e   : > { %v2884_v62 = vor.u32 %v2883_v44, %v2882_v42  ;;  %vm2885_vm5 = vcmp.lt.s32.totalorder %v2866_v0, 1  ;;  %v6389_v43 = vpop.eup %5544  ;;  %vm2886_vm6 = vcmp.lt.s32.totalorder %v2866_v0, 2  ;;  %vm2887_vm7 = vcmp.lt.s32.totalorder %v2866_v0, 3  ;;  %v6397_v44 = vpop.f32.mrb[9].mxu1 }
 0x21f   : > { %vm2888_vm8 = vcmp.lt.s32.totalorder %v2866_v0, 4  ;;  %v2893_v4 = vsel %vm2885_vm5, %v2872_v38, %v2875_v55  ;;  %v6391_v13 = vpop.eup %5546  ;;  %v5273_v5 = vadd.s32 4294967294, %v2151_v31  ;;  %v2897_v58 = vsel %vm2885_vm5, %v2875_v55, %v2878_v56  ;;  %7679 = vst [vmem:[#allocation39_spill] sm:$0xff] %v6397_v44 }
 0x220   : > { %v2890_v20 = vsel %vm2888_vm8, %v2878_v56, 2102212464  ;;  %v2894_v36 = vsel %vm2888_vm8, %v2881_v39, 920167782  ;;  %v6393_v6 = vpop.eup %5548  ;;  %v2889_v16 = vsel %vm2885_vm5, %v2869_v22, %v2872_v38  ;;  %v2898_v42 = vsel %vm2888_vm8, %v2884_v62, 1326507024  ;;  %v6407_v38 = vpop.permute.xlu0 %2416 }
 0x221   : > { %v2891_v51 = vsel %vm2887_vm7, %v2875_v55, %v2890_v20  ;;  %v2895_v40 = vsel %vm2887_vm7, %v2878_v56, %v2894_v36  ;;  %vm5274_vm9 = vcmp.lt.s32.totalorder %v5273_v5, 0  ;;  %v2899_v45 = vsel %vm2887_vm7, %v2881_v39, %v2898_v42  ;;  %7680 = vst [vmem:[#allocation40_spill] sm:$0xff] %v6407_v38 }
 0x222   : > { %v2896_v35 = vsel %vm2886_vm6, %v2893_v4, %v2895_v40  ;;  %vm2967_vm10 = vcmp.gt.s32.totalorder %v2966_v9, 0  ;;  %v2154_v31 = vsel %vm5274_vm9, 0, %v5273_v5  ;;  %v2900_v15 = vsel %vm2886_vm6, %v2897_v58, %v2899_v45 }
 0x223   : > { %v6403_v41 = vmul.u32.u64.low %v6359_v50, %v2896_v35  ;;  %v6404_v34 = vmul.u32.u64.high %v6359_v50, %v2896_v35, %v6403_v41  ;;  %v1578_v55 = vsel %vm1495_vm3, %v1577_v29, %v1576_v21  ;;  %v2155_v56 = vsub.s32 32, %v2154_v31 }
 0x224   : > { %v2159_v22 = vsub.s32 4294967266, %v2154_v31  ;;  %v2892_v4 = vsel %vm2886_vm6, %v2889_v16, %v2891_v51  ;;  %v6413_v39 = vmul.u32.u64.low %v6359_v50, %v2900_v15  ;;  %v6414_v62 = vmul.u32.u64.high %v6359_v50, %v2900_v15, %v6413_v39  ;;  %v6436_v40 = vpop.permute.xlu0 %2495 }
 0x225   : > { %v2968_v5 = vsel %vm2967_vm10, %v2966_v9, 0  ;;  %v5308_v45 = vadd.s32 4294967169, %v3437_v28  ;;  %v2156_v20 = vshll.u32 %v6362_v37, %v2154_v31  ;;  %v2157_v35 = vshrl.u32 %v6357_v3, %v2155_v56  ;;  %7681 = vst [vmem:[#allocation41_spill] sm:$0xff] %v6436_v40 }
 0x226   : > { %v2160_v36 = vadd.s32 127, %v2159_v22  ;;  %v2970_v58 = vand.u32 31, %v2968_v5  ;;  %v6421_v21 = vsel %vm6384_vm4, %v6064_v49, %v1578_v55  ;;  %v2908_v0 = vmul.u32 %v6359_v50, %v2892_v4 }
 0x227   : > { %v2911_v29 = vadd.s32 1, %v6404_v34  ;;  %v6427_v15 = vshll.u32 %v2964_v2, 8  ;;  %v2158_v9 = vor.u32 %v2157_v35, %v2156_v20  ;;  %v2969_v37 = vshrl.u32 %v2968_v5, 5 }
 0x228   : > { %v2161_v28 = vshll.u32 %v2160_v36, 23  ;;  %v2971_v16 = vsub.s32 32, %v2970_v58  ;;  %vm2910_vm13 = vc.u32 %v6414_v62, %v6403_v41  ;;  %v2973_v3 = vshll.u32 %v7612_v25, %v2970_v58  ;;  %v4136_v25 = vld [vmem:[%s7682_s5] sm:$0xff]  ;;  %s5743_s5 = smov 125  }
 0x229   : > { %v6434_v51 = vand.u32 8388607, %v7607_v18  ;;  %v3443_v50 = vadd.s32 1, %v5308_v45  ;;  %v2912_v46 = vsel %vm2910_vm13, %v2911_v29, %v6404_v34  ;;  %v2976_v2 = vshll.u32 %v7608_v27, %v2970_v58  ;;  %5329 = vmatmul.mubr.msk.f32.vlgmr.msra.gmra.mrb[6].mxu0 %vm7621_vm0, %v4136_v25 }
 0x22a   : > { %v2162_v42 = vor.u32 4788187, %v2161_v28  ;;  %v2979_v31 = vshll.u32 %v7610_v30, %v2970_v58  ;;  %v2913_v55 = vadd.s32 %v2912_v46, %v2908_v0  ;;  %v2974_v56 = vshrl.u32 %v7608_v27, %v2971_v16 }
 0x22b   : > { %v2977_v22 = vshrl.u32 %v7610_v30, %v2971_v16  ;;  %v2980_v4 = vshrl.u32 %v7615_v32, %v2971_v16  ;;  %vm2085_vm15 = vcmp.lt.s32.totalorder %v6078_v63, 0  ;;  %v2165_v5 = vcvt.s32.f32 %v2158_v9 }
 0x22c   : > { %v2163_v39 = vand.u32 2147483647, %v2162_v42  ;;  %v2982_v45 = vshll.u32 %v7615_v32, %v2970_v58  ;;  %v7683_v20 = vmov 920167782   ;;  %v2914_v35 = vadd.s32 536870912, %v2913_v55 }
 0x22d   : > { %v2983_v34 = vshrl.u32 %v7683_v20, %v2971_v16  ;;  %v2975_v36 = vor.u32 %v2974_v56, %v2973_v3  ;;  %v2978_v29 = vor.u32 %v2977_v22, %v2976_v2  ;;  %v2981_v28 = vor.u32 %v2980_v4, %v2979_v31  ;;  %v6459_v3 = vpop.permute.xlu0 %3924 }
 0x22e   : > { %v2166_v0 = vmul.f32 %v2165_v5, %v2163_v39  ;;  %v2985_v18 = vshll.u32 %v7683_v20, %v2970_v58  ;;  %v7684_v27 = vmov 1326507024   ;;  %v7685_v40 = vand.u32 2147483647, %v6078_v63  ;;  %7689 = vst [vmem:[#allocation42_spill] sm:$0xff] %v6459_v3 }
 0x22f   : > { %v2984_v46 = vor.u32 %v2983_v34, %v2982_v45  ;;  %v2986_v30 = vshrl.u32 %v7684_v27, %v2971_v16  ;;  %v6456_v9 = vshrl.u32 %v2914_v35, 30  ;;  %v7688_v32 = vmov 683565275  }
 0x230   : > { %vm6452_vm2 = vcmp.le.f32.partialorder %v7685_v40, 0.7853982  ;;  %v2972_v44 = vshrl.u32 %v7688_v32, %v2971_v16  ;;  %vm2988_vm5 = vcmp.lt.s32.totalorder %v2969_v37, 1  ;;  %vm2991_vm6 = vcmp.lt.s32.totalorder %v2969_v37, 4 }
 0x231   : > { %v2987_v58 = vor.u32 %v2986_v30, %v2985_v18  ;;  %vm2989_vm7 = vcmp.lt.s32.totalorder %v2969_v37, 2  ;;  %vm2990_vm8 = vcmp.lt.s32.totalorder %v2969_v37, 3  ;;  %v2993_v2 = vsel %vm2991_vm6, %v2981_v28, 2102212464 }
 0x232   : > { %v2167_v31 = vxor.u32 2147483648, %v2166_v0  ;;  %v2916_v40 = vshll.u32 %v6456_v9, 30  ;;  %v2996_v56 = vsel %vm2988_vm5, %v2975_v36, %v2978_v29  ;;  %v2997_v22 = vsel %vm2991_vm6, %v2984_v46, 920167782 }
 0x233   : > { %v2992_v4 = vsel %vm2988_vm5, %v2972_v44, %v2975_v36  ;;  %v2994_v39 = vsel %vm2990_vm8, %v2978_v29, %v2993_v2  ;;  %v2998_v16 = vsel %vm2990_vm8, %v2981_v28, %v2997_v22  ;;  %v3000_v5 = vsel %vm2988_vm5, %v2978_v29, %v2981_v28  ;;  %v6482_v28 = vpop.permute.xlu0 %2527 }
 0x234   : > { %v6465_v45 = vsub.s32 %v2913_v55, %v2916_v40  ;;  %v2999_v34 = vsel %vm2989_vm7, %v2996_v56, %v2998_v16  ;;  %v3001_v25 = vsel %vm2991_vm6, %v2987_v58, 1326507024  ;;  %v3354_v30 = vadd.f32 %v6088_v11, %v6295_v24  ;;  %7690 = vst [vmem:[#allocation43_spill] sm:$0xff] %v6482_v28 }
 0x235   : > { %5550 = vcosq.f32 %v6421_v21  ;;  %v3002_v18 = vsel %vm2990_vm8, %v2984_v46, %v3001_v25  ;;  %v6473_v35 = vmul.u32.u64.low %v6427_v15, %v2999_v34  ;;  %v6474_v3 = vmul.u32.u64.high %v6427_v15, %v2999_v34, %v6473_v35 }
 0x236   : > { %v2168_v44 = vsel %vm2085_vm15, %v2167_v31, %v2166_v0  ;;  %v2919_v55 = vsub.s32 0, %v6465_v45  ;;  %v2995_v36 = vsel %vm2989_vm7, %v2992_v4, %v2994_v39  ;;  %v3003_v29 = vsel %vm2989_vm7, %v3000_v5, %v3002_v18 }
 0x237   : > { %v6485_v11 = vmul.u32.u64.low %v6427_v15, %v3003_v29  ;;  %v6486_v24 = vmul.u32.u64.high %v6427_v15, %v3003_v29, %v6485_v11  ;;  %v3441_v46 = vor.u32 8388608, %v6434_v51  ;;  %vm3444_vm9 = vcmp.gt.s32.totalorder %v3443_v50, 0  ;;  %v6513_v18 = vpop.permute.xlu0 %3980 }
 0x238   : > { %v2909_v58 = vadd.s32 %v6403_v41, %v6414_v62  ;;  %v5291_v0 = vmin.u32 %v2919_v55, %v6465_v45  ;;  %v3445_v2 = vsel %vm3444_vm9, %v3443_v50, 0  ;;  %v6492_v31 = vmax.f32 %v3354_v30, 0.0  ;;  %7692 = vst [vmem:[#allocation44_spill] sm:$0xff] %v6513_v18 }
 0x239   : > { %v6497_v37 = vsel %vm6452_vm2, %v6078_v63, %v2168_v44  ;;  %v3011_v40 = vmul.u32 %v6427_v15, %v2995_v36  ;;  %v3014_v56 = vadd.s32 1, %v6474_v3  ;;  %v3447_v22 = vand.u32 31, %v3445_v2 }
 0x23a   : > { %v2921_v51 = vclz %v5291_v0  ;;  %v6501_v4 = vshrl.u32 %v3445_v2, 5  ;;  %v6503_v39 = vshll.u32 %v3441_v46, 8  ;;  %vm3013_vm10 = vc.u32 %v6486_v24, %v6473_v35 }
 0x23b   : > { %v3448_v62 = vsub.s32 32, %v3447_v22  ;;  %v3015_v15 = vsel %vm3013_vm10, %v3014_v56, %v6474_v3  ;;  %v3450_v34 = vshll.u32 %v7688_v32, %v3447_v22  ;;  %v7691_v25 = vmov 2475754826  }
 0x23c   : > { %v5292_v5 = vadd.s32 4294967294, %v2921_v51  ;;  %v3453_v30 = vshll.u32 %v7691_v25, %v3447_v22  ;;  %v3016_v44 = vadd.s32 %v3015_v15, %v3011_v40  ;;  %v7693_v36 = vmov 2131351028  }
 0x23d   : > { %v3451_v55 = vshrl.u32 %v7691_v25, %v3448_v62  ;;  %v3454_v29 = vshrl.u32 %v7693_v36, %v3448_v62  ;;  %v3456_v11 = vshll.u32 %v7693_v36, %v3447_v22  ;;  %v3449_v46 = vshrl.u32 %v7688_v32, %v3448_v62 }
 0x23e   : > { %vm5293_vm13 = vcmp.lt.s32.totalorder %v5292_v5, 0  ;;  %v7694_v0 = vmov 2102212464   ;;  %v3460_v3 = vshrl.u32 %v7683_v20, %v3448_v62  ;;  %v3017_v50 = vadd.s32 536870912, %v3016_v44 }
 0x23f   : > { %v3457_v2 = vshrl.u32 %v7694_v0, %v3448_v62  ;;  %v6521_v56 = vpop.eup %5550  ;;  %v2924_v51 = vsel %vm5293_vm13, 0, %v5292_v5  ;;  %v3452_v41 = vor.u32 %v3451_v55, %v3450_v34  ;;  %v3459_v40 = vshll.u32 %v7694_v0, %v3447_v22  ;;  %v6530_v5 = vpop.permute.xlu0 %2583 }
 0x240   : > { %v2925_v15 = vsub.s32 32, %v2924_v51  ;;  %v2929_v16 = vsub.s32 4294967266, %v2924_v51  ;;  %v3455_v18 = vor.u32 %v3454_v29, %v3453_v30  ;;  %v6524_v57 = vshrl.u32 %v3017_v50, 30 }
 0x241   : > { %v3458_v28 = vor.u32 %v3457_v2, %v3456_v11  ;;  %v3461_v54 = vor.u32 %v3460_v3, %v3459_v40  ;;  %v3462_v38 = vshll.u32 %v7683_v20, %v3447_v22  ;;  %v3463_v33 = vshrl.u32 %v7684_v27, %v3448_v62 }
 0x242   : > { %v2926_v7 = vshll.u32 %v6465_v45, %v2924_v51  ;;  %v2927_v59 = vshrl.u32 %v2909_v58, %v2925_v15  ;;  %v2930_v52 = vadd.s32 127, %v2929_v16  ;;  %vm3465_vm5 = vcmp.lt.s32.totalorder %v6501_v4, 1 }
 0x243   : > { %v3019_v34 = vshll.u32 %v6524_v57, 30  ;;  %v3464_v55 = vor.u32 %v3463_v33, %v3462_v38  ;;  %vm3466_vm6 = vcmp.lt.s32.totalorder %v6501_v4, 2  ;;  %vm3468_vm7 = vcmp.lt.s32.totalorder %v6501_v4, 4  ;;  %v6557_v51 = vpop.permute.xlu0 %4012 }
 0x244   : > { %v2928_v50 = vor.u32 %v2927_v59, %v2926_v7  ;;  %v2931_v30 = vshll.u32 %v2930_v52, 23  ;;  %vm3467_vm8 = vcmp.lt.s32.totalorder %v6501_v4, 3  ;;  %v3470_v45 = vsel %vm3468_vm7, %v3458_v28, 2102212464 }
 0x245   : > { %v6538_v58 = vsub.s32 %v3016_v44, %v3019_v34  ;;  %v3469_v22 = vsel %vm3465_vm5, %v3449_v46, %v3452_v41  ;;  %v3473_v62 = vsel %vm3465_vm5, %v3452_v41, %v3455_v18  ;;  %v3474_v33 = vsel %vm3468_vm7, %v3461_v54, 920167782 }
 0x246   : > { %v2932_v38 = vor.u32 4788187, %v2931_v30  ;;  %v2935_v16 = vcvt.s32.f32 %v2928_v50  ;;  %v3471_v59 = vsel %vm3467_vm8, %v3455_v18, %v3470_v45  ;;  %v3475_v52 = vsel %vm3467_vm8, %v3458_v28, %v3474_v33 }
 0x247   : > { %v3022_v7 = vsub.s32 0, %v6538_v58  ;;  %v3476_v29 = vsel %vm3466_vm6, %v3473_v62, %v3475_v52  ;;  %v3477_v44 = vsel %vm3465_vm5, %v3455_v18, %v3458_v28  ;;  %v3478_v11 = vsel %vm3468_vm7, %v3464_v55, 1326507024 }
 0x248   : > { %v2933_v46 = vand.u32 2147483647, %v2932_v38  ;;  %v3479_v41 = vsel %vm3467_vm8, %v3461_v54, %v3478_v11  ;;  %v6554_v2 = vmul.u32.u64.low %v6503_v39, %v3476_v29  ;;  %v6555_v3 = vmul.u32.u64.high %v6503_v39, %v3476_v29, %v6554_v2 }
 0x249   : > { %5552 = vsinq.f32 %v6421_v21  ;;  %v5295_v40 = vmin.u32 %v3022_v7, %v6538_v58  ;;  %v3472_v15 = vsel %vm3466_vm6, %v3469_v22, %v3471_v59  ;;  %v3480_v28 = vsel %vm3466_vm6, %v3477_v44, %v3479_v41  ;;  %v6592_v44 = vpop.permute.xlu0 %2615 }
 0x24a   : > { %v2936_v18 = vmul.f32 %v2935_v16, %v2933_v46  ;;  %v6566_v34 = vmul.u32.u64.low %v6503_v39, %v3480_v28  ;;  %v6567_v54 = vmul.u32.u64.high %v6503_v39, %v3480_v28, %v6566_v34  ;;  %v7695_v55 = vand.u32 2139095040, %v6492_v31 }
 0x24b   : > { %5554 = vcosq.f32 %v6497_v37  ;;  %v7696_v21 = vand.u32 2147483647, %v6263_v26  ;;  %v3024_v45 = vclz %v5295_v40  ;;  %v7699_v4 = vsub.s32 4, %v6171_v17 }
 0x24c   : > { %v3540_v50 = vshrl.u32 %v7695_v55, 23  ;;  %v2937_v62 = vxor.u32 2147483648, %v2936_v18  ;;  %v3491_v33 = vadd.s32 1, %v6555_v3  ;;  %v7700_v16 = vand.u32 2147483647, %v6492_v31 }
 0x24d   : > { %vm6574_vm9 = vcmp.le.f32.partialorder %v7696_v21, 0.7853982  ;;  %v1477_v22 = vsel %vm1392_vm11, %v7699_v4, %v6171_v17  ;;  %5556 = vsinq.f32 %v6497_v37  ;;  %vm7622_vm10 = vcmp.lt.s32.totalorder %v6263_v26, 0 }
 0x24e   : > { %v5312_v38 = vadd.s32 4294967169, %v3540_v50  ;;  %v3543_v59 = vand.u32 8388607, %v7700_v16  ;;  %v5296_v52 = vadd.s32 4294967294, %v3024_v45  ;;  %v3488_v7 = vmul.u32 %v6503_v39, %v3472_v15 }
 0x24f   : > { %v2938_v29 = vsel %vm7622_vm10, %v2937_v62, %v2936_v18  ;;  %vm3490_vm13 = vc.u32 %v6567_v54, %v6554_v2  ;;  %v6596_v11 = vsel %vm6299_vm14, 0, %v1477_v22  ;;  %v3012_v46 = vadd.s32 %v6473_v35, %v6486_v24 }
 0x250   : > { %v3546_v17 = vadd.s32 1, %v5312_v38  ;;  %v2941_v37 = vsel %vm6574_vm9, %v6263_v26, %v2938_v29  ;;  %vm5297_vm11 = vcmp.lt.s32.totalorder %v5296_v52, 0  ;;  %v3492_v39 = vsel %vm3490_vm13, %v3491_v33, %v6555_v3  ;;  %v6620_v38 = vpop.permute.xlu0 %4068 }
 0x251   : > { %v3027_v41 = vsel %vm5297_vm11, 0, %v5296_v52  ;;  %v3493_v40 = vadd.s32 %v3492_v39, %v3488_v7  ;;  %v3544_v15 = vor.u32 8388608, %v3543_v59  ;;  %v6605_v19 = vand.u32 3, %v6596_v11 }
 0x252   : > { %vm3547_vm5 = vcmp.gt.s32.totalorder %v3546_v17, 0  ;;  %v3028_v28 = vsub.s32 32, %v3027_v41  ;;  %v3032_v18 = vsub.s32 4294967266, %v3027_v41  ;;  %5558 = vcosq.f32 %v2941_v37 }
 0x253   : > { %v6609_v55 = vadd.s32 %v6554_v2, %v6567_v54  ;;  %v3494_v50 = vadd.s32 536870912, %v3493_v40  ;;  %v3548_v35 = vsel %vm3547_vm5, %v3546_v17, 0  ;;  %v6611_v24 = vpop.eup %5552  ;;  %v3029_v3 = vshll.u32 %v6538_v58, %v3027_v41 }
 0x254   : > { %v3030_v21 = vshrl.u32 %v3012_v46, %v3028_v28  ;;  %v3033_v45 = vadd.s32 127, %v3032_v18  ;;  %v3550_v4 = vand.u32 31, %v3548_v35  ;;  %5560 = vsinq.f32 %v2941_v37 }
 0x255   : > { %v6614_v22 = vshrl.u32 %v3494_v50, 30  ;;  %v6616_v62 = vshrl.u32 %v3548_v35, 5  ;;  %v6618_v33 = vshll.u32 %v3544_v15, 8  ;;  %v6622_v2 = vpop.eup %5554  ;;  %vm2958_vm14 = vcmp.lt.s32.totalorder %v6325_v10, 0 }
 0x256   : > { %v3031_v54 = vor.u32 %v3030_v21, %v3029_v3  ;;  %v3034_v16 = vshll.u32 %v3033_v45, 23  ;;  %v3551_v59 = vsub.s32 32, %v3550_v4  ;;  %v3553_v52 = vshll.u32 %v7688_v32, %v3550_v4 }
 0x257   : > { %v3496_v58 = vshll.u32 %v6614_v22, 30  ;;  %v3556_v7 = vshll.u32 %v7691_v25, %v3550_v4  ;;  %v3559_v29 = vshll.u32 %v7693_v36, %v3550_v4  ;;  %v3562_v17 = vshll.u32 %v7694_v0, %v3550_v4  ;;  %v6629_v37 = vpop.eup %5556 }
 0x258   : > { %v3035_v46 = vor.u32 4788187, %v3034_v16  ;;  %v3038_v39 = vcvt.s32.f32 %v3031_v54  ;;  %v3552_v41 = vshrl.u32 %v7688_v32, %v3551_v59  ;;  %v3554_v15 = vshrl.u32 %v7691_v25, %v3551_v59 }
 0x259   : > { %v6633_v28 = vsub.s32 %v3493_v40, %v3496_v58  ;;  %v3557_v18 = vshrl.u32 %v7693_v36, %v3551_v59  ;;  %v3560_v50 = vshrl.u32 %v7694_v0, %v3551_v59  ;;  %v3563_v35 = vshrl.u32 %v7683_v20, %v3551_v59  ;;  %v6642_v58 = vpop.permute.xlu0 %2671 }
 0x25a   : > { %v3036_v3 = vand.u32 2147483647, %v3035_v46  ;;  %v3555_v21 = vor.u32 %v3554_v15, %v3553_v52  ;;  %v3565_v45 = vshll.u32 %v7683_v20, %v3550_v4  ;;  %v3566_v54 = vshrl.u32 %v7684_v27, %v3551_v59 }
 0x25b   : > { %v3499_v32 = vsub.s32 0, %v6633_v28  ;;  %v3558_v16 = vor.u32 %v3557_v18, %v3556_v7  ;;  %v3561_v25 = vor.u32 %v3560_v50, %v3559_v29  ;;  %v3564_v40 = vor.u32 %v3563_v35, %v3562_v17 }
 0x25c   : > { %v3039_v36 = vmul.f32 %v3038_v39, %v3036_v3  ;;  %v3567_v34 = vor.u32 %v3566_v54, %v3565_v45  ;;  %vm3568_vm6 = vcmp.lt.s32.totalorder %v6616_v62, 1  ;;  %vm3569_vm7 = vcmp.lt.s32.totalorder %v6616_v62, 2  ;;  %v6647_v0 = vpop.eup %5558 }
 0x25d   : > { %vm1484_vm8 = vcmp.lt.s32.totalorder %v6605_v19, 2  ;;  %v5309_v20 = vmin.u32 %v3499_v32, %v6633_v28  ;;  %vm3570_vm13 = vcmp.lt.s32.totalorder %v6616_v62, 3  ;;  %vm3571_vm11 = vcmp.lt.s32.totalorder %v6616_v62, 4  ;;  %v6677_v54 = vpop.permute.xlu0 %4100 }
 0x25e   : > { %v3572_v27 = vsel %vm3568_vm6, %v3552_v41, %v3555_v21  ;;  %vm1482_vm5 = vweird.f32 %v6060_v47  ;;  %v3040_v4 = vxor.u32 2147483648, %v3039_v36  ;;  %v3573_v59 = vsel %vm3571_vm11, %v3561_v25, 2102212464  ;;  %v6657_v29 = vpop.eup %5560 }
 0x25f   : > { %v3576_v52 = vsel %vm3568_vm6, %v3555_v21, %v3558_v16  ;;  %v3577_v7 = vsel %vm3571_vm11, %v3564_v40, 920167782  ;;  %v7701_v17 = vand.u32 2147483647, %v6325_v10  ;;  %v3501_v39 = vclz %v5309_v20 }
 0x260   : > { %v3574_v41 = vsel %vm3570_vm13, %v3558_v16, %v3573_v59  ;;  %v3578_v15 = vsel %vm3570_vm13, %v3561_v25, %v3577_v7  ;;  %v3580_v18 = vsel %vm3568_vm6, %v3558_v16, %v3561_v25  ;;  %v3581_v35 = vsel %vm3571_vm11, %v3567_v34, 1326507024 }
 0x261   : > { %vm6661_vm0 = vcmp.le.f32.partialorder %v7701_v17, 0.7853982  ;;  %v3579_v50 = vsel %vm3569_vm7, %v3576_v52, %v3578_v15  ;;  %vm1485_vm10 = vcmp.eq.s32.totalorder %v6605_v19, 0  ;;  %v1489_v3 = vxor.u32 2147483648, %v6380_v23 }
 0x262   : > { %v5310_v21 = vadd.s32 4294967294, %v3501_v39  ;;  %v3582_v45 = vsel %vm3570_vm13, %v3564_v40, %v3581_v35  ;;  %v7704_v32 = vxor.u32 2147483648, %v6389_v43  ;;  %vm1488_vm6 = vcmp.eq.s32.totalorder %v6605_v19, 2 }
 0x263   : > { %v3575_v16 = vsel %vm3569_vm7, %v3572_v27, %v3574_v41  ;;  %v3583_v34 = vsel %vm3569_vm7, %v3580_v18, %v3582_v45  ;;  %v6688_v25 = vmul.u32.u64.low %v6618_v33, %v3579_v50  ;;  %v6689_v59 = vmul.u32.u64.high %v6618_v33, %v3579_v50, %v6688_v25 }
 0x264   : > { %v1487_v20 = vsel %vm1485_vm10, %v6380_v23, %v7704_v32  ;;  %v3041_v40 = vsel %vm2958_vm14, %v3040_v4, %v3039_v36  ;;  %vm5311_vm13 = vcmp.lt.s32.totalorder %v5310_v21, 0  ;;  %v1490_v39 = vsel %vm1488_vm6, %v1489_v3, %v6389_v43  ;;  %v6711_v32 = vpop.permute.xlu0 %1598 }
 0x265   : > { %v6695_v52 = vmul.u32.u64.low %v6618_v33, %v3583_v34  ;;  %v6696_v7 = vmul.u32.u64.high %v6618_v33, %v3583_v34, %v6695_v52  ;;  %v3504_v17 = vsel %vm5311_vm13, 0, %v5310_v21  ;;  %v1696_v27 = vadd.s32 3, %v6596_v11 }
 0x266   : > { %v1579_v62 = vsub.s32 4, %v6251_v8  ;;  %v3505_v41 = vsub.s32 32, %v3504_v17  ;;  %v3509_v15 = vsub.s32 4294967266, %v3504_v17  ;;  %v3591_v18 = vmul.u32 %v6618_v33, %v3575_v16 }
 0x267   : > { %v1491_v50 = vsel %vm1484_vm8, %v1487_v20, %v1490_v39  ;;  %v3506_v36 = vshll.u32 %v6633_v28, %v3504_v17  ;;  %v3594_v4 = vadd.s32 1, %v6689_v59  ;;  %v1697_v21 = vand.u32 3, %v1696_v27 }
 0x268   : > { %v1492_v35 = vsel %vm1482_vm5, nan, %v1491_v50  ;;  %v3507_v45 = vshrl.u32 %v6609_v55, %v3505_v41  ;;  %v3510_v11 = vadd.s32 127, %v3509_v15  ;;  %vm3593_vm10 = vc.u32 %v6696_v7, %v6688_v25  ;;  %v6803_v42 = vpop.permute.xlu0 %2188 }
 0x269   : > { %v1580_v19 = vsel %vm1495_vm3, %v1579_v62, %v6251_v8  ;;  %v3044_v33 = vsel %vm6661_vm0, %v6325_v10, %v3041_v40  ;;  %v3595_v28 = vsel %vm3593_vm10, %v3594_v4, %v6689_v59  ;;  %v1601_v20 = vmul.f32 %v6711_v32, %v1492_v35 }
 0x26a   : > { %vm1699_vm7 = vcmp.eq.s32.totalorder %v1697_v21, 0  ;;  %v3508_v55 = vor.u32 %v3507_v45, %v3506_v36  ;;  %v3511_v16 = vshll.u32 %v3510_v11, 23  ;;  %v3596_v34 = vadd.s32 %v3595_v28, %v3591_v18 }
 0x26b   : > { %v7705_v52 = vxor.u32 2147483648, %v6389_v43  ;;  %vm3435_vm8 = vcmp.lt.s32.totalorder %v6340_v12, 0  ;;  %vm1698_vm11 = vcmp.lt.s32.totalorder %v1697_v21, 2  ;;  %vm1702_vm3 = vcmp.eq.s32.totalorder %v1697_v21, 2 }
 0x26c   : > { %v1582_v8 = vsel %vm6384_vm4, 0, %v1580_v19  ;;  %v1589_v40 = vxor.u32 2147483648, %v6611_v24  ;;  %v7706_v59 = vand.u32 2147483647, %v6340_v12  ;;  %v3512_v27 = vor.u32 4788187, %v3511_v16 }
 0x26d   : > { %v1701_v17 = vsel %vm1699_vm7, %v6380_v23, %v7705_v52  ;;  %v3515_v62 = vcvt.s32.f32 %v3508_v55  ;;  %v3597_v41 = vadd.s32 536870912, %v3596_v34  ;;  %v1704_v23 = vsel %vm1702_vm3, %v1489_v3, %v6389_v43 }
 0x26e   : > { %vm6730_vm6 = vcmp.le.f32.partialorder %v7706_v59, 0.7853982  ;;  %v1705_v15 = vsel %vm1698_vm11, %v1701_v17, %v1704_v23  ;;  %v1586_v18 = vand.u32 3, %v1582_v8  ;;  %v1592_v50 = vxor.u32 2147483648, %v6521_v56 }
 0x26f   : > { %v1800_v36 = vadd.s32 3, %v1582_v8  ;;  %v3513_v4 = vand.u32 2147483647, %v3512_v27  ;;  %v6738_v35 = vshrl.u32 %v3597_v41, 30  ;;  %v1706_v21 = vsel %vm1482_vm5, nan, %v1705_v15 }
 0x270   : > { %v2066_v45 = vsub.s32 4, %v6204_v61  ;;  %v1816_v11 = vmul.f32 %v6736_v60, %v1706_v21  ;;  %vm1587_vm4 = vcmp.lt.s32.totalorder %v1586_v18, 2  ;;  %vm1588_vm13 = vcmp.eq.s32.totalorder %v1586_v18, 0 }
 0x271   : > { %vm1591_vm10 = vcmp.eq.s32.totalorder %v1586_v18, 2  ;;  %v3516_v43 = vmul.f32 %v3515_v62, %v3513_v4  ;;  %v3599_v3 = vshll.u32 %v6738_v35, 30  ;;  %v1590_v19 = vsel %vm1588_vm13, %v6521_v56, %v1589_v40 }
 0x272   : > { %v1593_v28 = vsel %vm1591_vm10, %v1592_v50, %v6611_v24  ;;  %v1818_v55 = vadd.f32 %v1816_v11, %v1601_v20  ;;  %v1801_v52 = vand.u32 3, %v1800_v36  ;;  %v2067_v47 = vsel %vm1982_vm12, %v2066_v45, %v6204_v61 }
 0x273   : > { %v1594_v16 = vsel %vm1587_vm4, %v1590_v19, %v1593_v28  ;;  %v3517_v17 = vxor.u32 2147483648, %v3516_v43  ;;  %v6750_v8 = vsub.s32 %v3596_v34, %v3599_v3  ;;  %vm1585_vm5 = vweird.f32 %v6064_v49 }
 0x274   : > { %v2069_v59 = vsel %vm6334_vm1, 0, %v2067_v47  ;;  %5562 = vcosq.f32 %v3044_v33  ;;  %v6756_v27 = vmul.f32 %v1818_v55, %v6305_v1  ;;  %v1595_v20 = vsel %vm1585_vm5, nan, %v1594_v16 }
 0x275   : > { %vm1803_vm7 = vcmp.eq.s32.totalorder %v1801_v52, 0  ;;  %v3518_v62 = vsel %vm3435_vm8, %v3517_v17, %v3516_v43  ;;  %v3602_v61 = vsub.s32 0, %v6750_v8  ;;  %vm1806_vm12 = vcmp.eq.s32.totalorder %v1801_v52, 2 }
 0x276   : > { %v1805_v34 = vsel %vm1803_vm7, %v6521_v56, %v1589_v40  ;;  %v3521_v53 = vsel %vm6730_vm6, %v6340_v12, %v3518_v62  ;;  %vm1802_vm1 = vcmp.lt.s32.totalorder %v1801_v52, 2  ;;  %v1808_v1 = vsel %vm1806_vm12, %v1592_v50, %v6611_v24  ;;  %2475 = vrot.lane.b32.xlu0 %v6756_v27, %s5738_s6  ;;  %2430 = vrot.lane.b32.xlu1 %v6756_v27, %s5739_s4 }
 0x277   : > { %v2073_v41 = vand.u32 3, %v2069_v59  ;;  %5564 = vsinq.f32 %v3044_v33  ;;  %v5313_v56 = vmin.u32 %v3602_v61, %v6750_v8  ;;  %v1809_v40 = vsel %vm1802_vm1, %v1805_v34, %v1808_v1 }
 0x278   : > { %v2076_v23 = vxor.u32 2147483648, %v6393_v6  ;;  %5566 = vcosq.f32 %v3521_v53  ;;  %v3592_v15 = vadd.s32 %v6688_v25, %v6696_v7  ;;  %v6777_v24 = vmul.f32 %v6711_v32, %v1595_v20 }
 0x279   : > { %v1810_v18 = vsel %vm1585_vm5, nan, %v1809_v40  ;;  %5568 = vsinq.f32 %v3521_v53  ;;  %v3604_v50 = vclz %v5313_v56  ;;  %vm2072_vm11 = vweird.f32 %v6062_v48 }
 0x27a   : > { %vm2075_vm3 = vcmp.eq.s32.totalorder %v2073_v41, 0  ;;  %v2079_v36 = vxor.u32 2147483648, %v6391_v13  ;;  %v2286_v4 = vadd.s32 3, %v2069_v59  ;;  %v2169_v21 = vsub.s32 4, %v6345_v14 }
 0x27b   : > { %v2077_v33 = vsel %vm2075_vm3, %v6391_v13, %v2076_v23  ;;  %v5314_v45 = vadd.s32 4294967294, %v3604_v50  ;;  %v6786_v25 = vmul.f32 %v6736_v60, %v1810_v18  ;;  %vm2074_vm4 = vcmp.lt.s32.totalorder %v2073_v41, 2 }
 0x27c   : > { %vm2078_vm13 = vcmp.eq.s32.totalorder %v2073_v41, 2  ;;  %v2287_v7 = vand.u32 3, %v2286_v4  ;;  %v2170_v11 = vsel %vm2085_vm15, %v2169_v21, %v6345_v14  ;;  %v2179_v43 = vxor.u32 2147483648, %v6629_v37 }
 0x27d   : > { %v2080_v49 = vsel %vm2078_vm13, %v2079_v36, %v6393_v6  ;;  %vm5315_vm10 = vcmp.lt.s32.totalorder %v5314_v45, 0  ;;  %v2172_v19 = vsel %vm6452_vm2, 0, %v2170_v11  ;;  %vm2175_vm5 = vweird.f32 %v6078_v63 }
 0x27e   : > { %v2081_v3 = vsel %vm2074_vm4, %v2077_v33, %v2080_v49  ;;  %v2182_v28 = vxor.u32 2147483648, %v6622_v2  ;;  %v6797_v55 = vpop.eup %5562  ;;  %v3607_v16 = vsel %vm5315_vm10, 0, %v5314_v45  ;;  %vm2288_vm7 = vcmp.lt.s32.totalorder %v2287_v7, 2 }
 0x27f   : > { %v2082_v52 = vsel %vm2072_vm11, nan, %v2081_v3  ;;  %v2939_v14 = vsub.s32 4, %v6456_v9  ;;  %v3608_v47 = vsub.s32 32, %v3607_v16  ;;  %v3609_v17 = vshll.u32 %v6750_v8, %v3607_v16  ;;  %v6812_v8 = vpop.permute.xlu1 %2403 }
 0x280   : > { %v3612_v59 = vsub.s32 4294967266, %v3607_v16  ;;  %vm2289_vm15 = vcmp.eq.s32.totalorder %v2287_v7, 0  ;;  %vm2292_vm2 = vcmp.eq.s32.totalorder %v2287_v7, 2  ;;  %v2176_v62 = vand.u32 3, %v2172_v19 }
 0x281   : > { %v2291_v20 = vsel %vm2289_vm15, %v6391_v13, %v2076_v23  ;;  %v2390_v61 = vadd.s32 3, %v2172_v19  ;;  %v6806_v34 = vpop.eup %5564  ;;  %v3610_v53 = vshrl.u32 %v3592_v15, %v3608_v47  ;;  %v2191_v41 = vmul.f32 %v6803_v42, %v2082_v52 }
 0x282   : > { %v3613_v1 = vadd.s32 127, %v3612_v59  ;;  %v2294_v56 = vsel %vm2292_vm2, %v2079_v36, %v6393_v6  ;;  %v6810_v40 = vpop.eup %5566  ;;  %vm2178_vm12 = vcmp.eq.s32.totalorder %v2176_v62, 0  ;;  %vm2181_vm1 = vcmp.eq.s32.totalorder %v2176_v62, 2 }
 0x283   : > { %v2295_v18 = vsel %vm2288_vm7, %v2291_v20, %v2294_v56  ;;  %vm7709_vm3 = vcmp.lt.s32.totalorder %v6263_v26, 0  ;;  %v6818_v23 = vpop.eup %5568  ;;  %v3611_v15 = vor.u32 %v3610_v53, %v3609_v17  ;;  %v2180_v6 = vsel %vm2178_vm12, %v6622_v2, %v2179_v43  ;;  %v6831_v52 = vpop.permute.xlu1 %2452 }
 0x284   : > { %v2940_v13 = vsel %vm7709_vm3, %v2939_v14, %v6456_v9  ;;  %v3614_v50 = vshll.u32 %v3613_v1, 23  ;;  %v2296_v33 = vsel %vm2072_vm11, nan, %v2295_v18  ;;  %vm2177_vm4 = vcmp.lt.s32.totalorder %v2176_v62, 2  ;;  %v7710_v14 = vld [vmem:[#allocation34_spill] sm:$0xff] }
 0x285   : > { %v2406_v36 = vmul.f32 %v6812_v8, %v2296_v33  ;;  %v2183_v4 = vsel %vm2181_vm1, %v2182_v28, %v6629_v37  ;;  %v2391_v21 = vand.u32 3, %v2390_v61  ;;  %v3618_v49 = vcvt.s32.f32 %v3611_v15 }
 0x286   : > { %v3615_v45 = vor.u32 4788187, %v3614_v50  ;;  %v2184_v7 = vsel %vm2177_vm4, %v2180_v6, %v2183_v4  ;;  %v2942_v9 = vsel %vm6574_vm9, 0, %v2940_v13  ;;  %v2949_v59 = vxor.u32 2147483648, %v6657_v29 }
 0x287   : > { %v2408_v11 = vadd.f32 %v2406_v36, %v2191_v41  ;;  %v2185_v3 = vsel %vm2175_vm5, nan, %v2184_v7  ;;  %vm2392_vm13 = vcmp.lt.s32.totalorder %v2391_v21, 2  ;;  %vm2393_vm11 = vcmp.eq.s32.totalorder %v2391_v21, 0  ;;  %v6858_v50 = vpop.permute.xlu1 %3893 }
 0x288   : > { %v3616_v48 = vand.u32 2147483647, %v3615_v45  ;;  %v2192_v19 = vmul.f32 %v6803_v42, %v2185_v3  ;;  %v2395_v16 = vsel %vm2393_vm11, %v6622_v2, %v2179_v43  ;;  %vm2396_vm10 = vcmp.eq.s32.totalorder %v2391_v21, 2 }
 0x289   : > { %v6834_v47 = vmul.f32 %v2408_v11, %v7710_v14  ;;  %v2398_v30 = vsel %vm2396_vm10, %v2182_v28, %v6629_v37  ;;  %v2946_v17 = vand.u32 3, %v2942_v9  ;;  %v2952_v61 = vxor.u32 2147483648, %v6647_v0 }
 0x28a   : > { %v3619_v20 = vmul.f32 %v3618_v49, %v3616_v48  ;;  %v2399_v62 = vsel %vm2392_vm13, %v2395_v16, %v2398_v30  ;;  %v3154_v53 = vadd.s32 3, %v2942_v9  ;;  %vm3538_vm2 = vcmp.lt.s32.totalorder %v6492_v31, 0 }
 0x28b   : > { %v2400_v1 = vsel %vm2175_vm5, nan, %v2399_v62  ;;  %vm2947_vm9 = vcmp.lt.s32.totalorder %v2946_v17, 2  ;;  %vm2948_vm7 = vcmp.eq.s32.totalorder %v2946_v17, 0  ;;  %vm2951_vm15 = vcmp.eq.s32.totalorder %v2946_v17, 2  ;;  %2488 = vrot.lane.b32.xlu0 %v6834_v47, %s5738_s6  ;;  %2445 = vrot.lane.b32.xlu1 %v6834_v47, %s5739_s4  ;;  %v6881_v11 = vpop.permute.xlu1 %2423 }
 0x28c   : > { %v3620_v2 = vxor.u32 2147483648, %v3619_v20  ;;  %v2407_v37 = vmul.f32 %v6812_v8, %v2400_v1  ;;  %v2950_v43 = vsel %vm2948_vm7, %v6647_v0, %v2949_v59  ;;  %v2953_v28 = vsel %vm2951_vm15, %v2952_v61, %v6657_v29 }
 0x28d   : > { %v2954_v63 = vsel %vm2947_vm9, %v2950_v43, %v2953_v28  ;;  %v3155_v41 = vand.u32 3, %v3154_v53  ;;  %v3042_v56 = vsub.s32 4, %v6524_v57  ;;  %v7711_v18 = vand.u32 2147483647, %v6492_v31 }
 0x28e   : > { %v3621_v15 = vsel %vm3538_vm2, %v3620_v2, %v3619_v20  ;;  %v1819_v6 = vadd.f32 %v6786_v25, %v6777_v24  ;;  %vm2945_vm12 = vweird.f32 %v6263_v26  ;;  %v2409_v36 = vadd.f32 %v2407_v37, %v2192_v19  ;;  %v7714_v19 = vld [vmem:[#allocation33_spill] sm:$0xff] }
 0x28f   : > { %vm6852_vm5 = vcmp.le.f32.partialorder %v7711_v18, 0.7853982  ;;  %vm3157_vm1 = vcmp.eq.s32.totalorder %v3155_v41, 0  ;;  %2563 = vrot.lane.b32.xlu0 %v6756_v27, %s5740_s10  ;;  %2519 = vrot.lane.b32.xlu1 %v6756_v27, %s5741_s15  ;;  %v2955_v4 = vsel %vm2945_vm12, nan, %v2954_v63  ;;  %vm3160_vm3 = vcmp.eq.s32.totalorder %v3155_v41, 2  ;;  %v6914_v1 = vpop.permute.xlu1 %2483 }
 0x290   : > { %v3624_v33 = vsel %vm6852_vm5, %v6492_v31, %v3621_v15  ;;  %v3159_v21 = vsel %vm3157_vm1, %v6647_v0, %v2949_v59  ;;  %vm3156_vm4 = vcmp.lt.s32.totalorder %v3155_v41, 2  ;;  %v3162_v24 = vsel %vm3160_vm3, %v2952_v61, %v6657_v29  ;;  %v7715_v59 = vld [vmem:[#allocation35_spill] sm:$0xff] }
 0x291   : > { %5570 = vsinq.f32 %v3624_v33  ;;  %v3043_v25 = vsel %vm2958_vm14, %v3042_v56, %v6524_v57  ;;  %v3163_v45 = vsel %vm3156_vm4, %v3159_v21, %v3162_v24  ;;  %v3052_v7 = vxor.u32 2147483648, %v6806_v34  ;;  %v7716_v21 = vld [vmem:[#allocation36_spill] sm:$0xff] }
 0x292   : > { %v3045_v49 = vsel %vm6661_vm0, 0, %v3043_v25  ;;  %v3519_v9 = vsub.s32 4, %v6614_v22  ;;  %v3164_v0 = vsel %vm2945_vm12, nan, %v3163_v45  ;;  %v3055_v29 = vxor.u32 2147483648, %v6797_v55 }
 0x293   : > { %v3049_v3 = vand.u32 3, %v3045_v49  ;;  %v3258_v48 = vadd.s32 3, %v3045_v49  ;;  %2576 = vrot.lane.b32.xlu0 %v6834_v47, %s5740_s10  ;;  %2532 = vrot.lane.b32.xlu1 %v6834_v47, %s5741_s15  ;;  %5572 = vcosq.f32 %v3624_v33  ;;  %v3059_v57 = vmul.f32 %v2955_v4, %v6711_v32  ;;  %v3860_v49 = vpop.permute.xlu1 %3859 }
 0x294   : > { %v3269_v46 = vmul.f32 %v3164_v0, %v6736_v60  ;;  %v3520_v26 = vsel %vm3435_vm8, %v3519_v9, %v6614_v22  ;;  %v6896_v16 = vmul.f32 %v1819_v6, %v7714_v19  ;;  %vm3048_vm0 = vweird.f32 %v6325_v10  ;;  %v7717_v10 = vld [vmem:[#allocation40_spill] sm:$0xff] }
 0x295   : > { %v3259_v14 = vand.u32 3, %v3258_v48  ;;  %vm3051_vm14 = vcmp.eq.s32.totalorder %v3049_v3, 0  ;;  %vm3054_vm13 = vcmp.eq.s32.totalorder %v3049_v3, 2  ;;  %v3522_v30 = vsel %vm6730_vm6, 0, %v3520_v26 }
 0x296   : > { %v3622_v17 = vsub.s32 4, %v6738_v35  ;;  %v6903_v20 = vmul.f32 %v2409_v36, %v7715_v59  ;;  %v3053_v62 = vsel %vm3051_vm14, %v6797_v55, %v3052_v7  ;;  %v3056_v22 = vsel %vm3054_vm13, %v3055_v29, %v6806_v34 }
 0x297   : > { %vm3525_vm8 = vweird.f32 %v6340_v12  ;;  %2607 = vrot.lane.b32.xlu0 %v6756_v27, %s5742_s26  ;;  %2477 = vrot.lane.b32.xlu1 %v6896_v16, %s5738_s6  ;;  %v3271_v39 = vadd.f32 %v3269_v46, %v3059_v57  ;;  %vm3050_vm6 = vcmp.lt.s32.totalorder %v3049_v3, 2  ;;  %v3529_v61 = vxor.u32 2147483648, %v6818_v23 }
 0x298   : > { %v3532_v53 = vxor.u32 2147483648, %v6810_v40  ;;  %vm3261_vm11 = vcmp.eq.s32.totalorder %v3259_v14, 0  ;;  %vm3264_vm10 = vcmp.eq.s32.totalorder %v3259_v14, 2  ;;  %v3526_v2 = vand.u32 3, %v3522_v30 }
 0x299   : > { %v3734_v37 = vadd.s32 3, %v3522_v30  ;;  %v3057_v43 = vsel %vm3050_vm6, %v3053_v62, %v3056_v22  ;;  %v3263_v28 = vsel %vm3261_vm11, %v6797_v55, %v3052_v7  ;;  %v3266_v63 = vsel %vm3264_vm10, %v3055_v29, %v6806_v34 }
 0x29a   : > { %v3623_v41 = vsel %vm3538_vm2, %v3622_v17, %v6738_v35  ;;  %vm3260_vm9 = vcmp.lt.s32.totalorder %v3259_v14, 2  ;;  %vm3527_vm7 = vcmp.lt.s32.totalorder %v3526_v2, 2  ;;  %vm3528_vm15 = vcmp.eq.s32.totalorder %v3526_v2, 0 }
 0x29b   : > { %v6921_v56 = vpop.eup %5570  ;;  %vm3531_vm12 = vcmp.eq.s32.totalorder %v3526_v2, 2  ;;  %2620 = vrot.lane.b32.xlu0 %v6834_v47, %s5742_s26  ;;  %2490 = vrot.lane.b32.xlu1 %v6903_v20, %s5738_s6  ;;  %v3530_v55 = vsel %vm3528_vm15, %v6810_v40, %v3529_v61  ;;  %v3735_v18 = vand.u32 3, %v3734_v37  ;;  %v3625_v35 = vsel %vm6852_vm5, 0, %v3623_v41  ;;  %s5744_s6 = smov 112  }
 0x29c   : > { %v3533_v34 = vsel %vm3531_vm12, %v3532_v53, %v6818_v23  ;;  %v3267_v15 = vsel %vm3260_vm9, %v3263_v28, %v3266_v63  ;;  %v3629_v6 = vand.u32 3, %v3625_v35  ;;  %v3632_v36 = vxor.u32 2147483648, %v6921_v56 }
 0x29d   : > { %v3534_v33 = vsel %vm3527_vm7, %v3530_v55, %v3533_v34  ;;  %v5573_v4 = vpop.eup %5572  ;;  %v6933_v24 = vmul.f32 %v3271_v39, %v7716_v21  ;;  %vm3737_vm2 = vcmp.eq.s32.totalorder %v3735_v18, 0  ;;  %vm3740_vm1 = vcmp.eq.s32.totalorder %v3735_v18, 2  ;;  %v3867_v39 = vpop.permute.xlu1 %3866 }
 0x29e   : > { %v3535_v25 = vsel %vm3525_vm8, nan, %v3534_v33  ;;  %v3058_v45 = vsel %vm3048_vm0, nan, %v3057_v43  ;;  %vm3736_vm3 = vcmp.lt.s32.totalorder %v3735_v18, 2  ;;  %v3739_v13 = vsel %vm3737_vm2, %v6810_v40, %v3529_v61 }
 0x29f   : > { %v3742_v7 = vsel %vm3740_vm1, %v3532_v53, %v6818_v23  ;;  %2651 = vrot.lane.b32.xlu0 %v6756_v27, %s5743_s5  ;;  %v3268_v9 = vsel %vm3048_vm0, nan, %v3267_v15  ;;  %v3639_v0 = vmul.f32 %v3535_v25, %v6803_v42  ;;  %vm3631_vm5 = vcmp.eq.s32.totalorder %v3629_v6, 0  ;;  %2565 = vrot.lane.b32.xlu1 %v6896_v16, %s5740_s10  ;;  %v7720_v15 = vld [vmem:[#allocation39_spill] sm:$0xff] }
 0x2a0   : > { %v3743_v3 = vsel %vm3736_vm3, %v3739_v13, %v3742_v7  ;;  %vm3630_vm4 = vcmp.lt.s32.totalorder %v3629_v6, 2  ;;  %v3633_v40 = vsel %vm3631_vm5, %v5573_v4, %v3632_v36  ;;  %v3635_v23 = vxor.u32 2147483648, %v5573_v4 }
 0x2a1   : > { %v3744_v29 = vsel %vm3525_vm8, nan, %v3743_v3  ;;  %vm3634_vm14 = vcmp.eq.s32.totalorder %v3629_v6, 2  ;;  %v3838_v57 = vadd.s32 3, %v3625_v35  ;;  %v2420_v46 = vmul.f32 %v7717_v10, %v6896_v16 }
 0x2a2   : > { %v3849_v48 = vmul.f32 %v3744_v29, %v6812_v8  ;;  %v3636_v26 = vsel %vm3634_vm14, %v3635_v23, %v6921_v56  ;;  %v2426_v19 = vmul.f32 %v6881_v11, %v6834_v47  ;;  %v2427_v12 = vmul.f32 %v6881_v11, %v6903_v20  ;;  %v7718_v11 = vld [vmem:[#allocation38_spill] sm:$0xff] }
 0x2a3   : > { %2664 = vrot.lane.b32.xlu0 %v6834_v47, %s5743_s5  ;;  %v2419_v14 = vmul.f32 %v7717_v10, %v6756_v27  ;;  %v3060_v30 = vmul.f32 %v3058_v45, %v6711_v32  ;;  %v3637_v59 = vsel %vm3630_vm4, %v3633_v40, %v3636_v26  ;;  %v3839_v62 = vand.u32 3, %v3838_v57  ;;  %2578 = vrot.lane.b32.xlu1 %v6903_v20, %s5740_s10  ;;  %s5746_s10 = smov 96   ;;  %v7028_v45 = vpop.permute.xlu0 %2440 }
 0x2a4   : > { %v3851_v17 = vadd.f32 %v3849_v48, %v3639_v0  ;;  %v3270_v22 = vmul.f32 %v3268_v9, %v6736_v60  ;;  %vm3628_vm0 = vweird.f32 %v6492_v31  ;;  %v6967_v47 = vadd.f32 %v2427_v12, %v2420_v46 }
 0x2a5   : > { %v6969_v61 = vadd.f32 %v2426_v19, %v2419_v14  ;;  %v3638_v32 = vsel %vm3628_vm0, nan, %v3637_v59  ;;  %vm3841_vm13 = vcmp.eq.s32.totalorder %v3839_v62, 0  ;;  %vm3844_vm8 = vcmp.eq.s32.totalorder %v3839_v62, 2 }
 0x2a6   : > { %v3853_v53 = vmul.f32 %v3851_v17, %v7718_v11  ;;  %v3843_v27 = vsel %vm3841_vm13, %v5573_v4, %v3632_v36  ;;  %v3862_v60 = vmul.f32 %v3860_v49, %v6933_v24  ;;  %vm3840_vm6 = vcmp.lt.s32.totalorder %v3839_v62, 2 }
 0x2a7   : > { %2432 = vrot.lane.b32.xlu0 %v6896_v16, %s5739_s4  ;;  %v3846_v2 = vsel %vm3844_vm8, %v3635_v23, %v6921_v56  ;;  %2609 = vrot.lane.b32.xlu1 %v6896_v16, %s5742_s26  ;;  %v3272_v43 = vadd.f32 %v3270_v22, %v3060_v30  ;;  %v3640_v28 = vmul.f32 %v3638_v32, %v6803_v42  ;;  %v7719_v56 = vld [vmem:[#allocation37_spill] sm:$0xff]  ;;  %v2434_v29 = vlaneseq }
 0x2a8   : > { %v3869_v37 = vmul.f32 %v3867_v39, %v3853_v53  ;;  %v3847_v63 = vsel %vm3840_vm6, %v3843_v27, %v3846_v2  ;;  %vm7739_vm13 = vcmask 64512   ;;  %vm4328_vm6 = vcmask 1041408  }
 0x2a9   : > { %v3848_v41 = vsel %vm3628_vm0, nan, %v3847_v63  ;;  %v3274_v18 = vmul.f32 %v3272_v43, %v7719_v56  ;;  %v7038_v48 = vand.u32 127, %v2434_v29  ;;  %v2462_v56 = vshrl.u32 %v2434_v29, 7 }
 0x2aa   : > { %v6983_v55 = vadd.f32 %v3869_v37, %v3862_v60  ;;  %v3850_v34 = vmul.f32 %v3848_v41, %v6812_v8  ;;  %vm5750_vm0 = vmmov 0  }
 0x2ab   : > { %2447 = vrot.lane.b32.xlu0 %v6903_v20, %s5739_s4  ;;  %2622 = vrot.lane.b32.xlu1 %v6903_v20, %s5742_s26  ;;  %v3863_v31 = vmul.f32 %v3860_v49, %v3274_v18  ;;  %s5745_s4 = smov 48   ;;  %s5747_s26 = smov 32   ;;  %vm2479_vm11 = vcmp.lt.s32.totalorder %v7038_v48, 2  ;;  %vm2567_vm10 = vcmp.lt.s32.totalorder %v7038_v48, 127  ;;  %vm2611_vm9 = vcmp.lt.s32.totalorder %v7038_v48, 126 }
 0x2ac   : > { %v3852_v35 = vadd.f32 %v3850_v34, %v3640_v28  ;;  %vm2436_vm7 = vcmp.lt.s32.totalorder %v7038_v48, 3  ;;  %vm2523_vm15 = vcmp.lt.s32.totalorder %v7038_v48, 1  ;;  %vm2655_vm12 = vcmp.lt.s32.totalorder %v7038_v48, 125 }
 0x2ad   : > { %vm3920_vm2 = vcmp.lt.s32.totalorder %v7038_v48, 32  ;;  %vm3877_vm1 = vcmp.lt.s32.totalorder %v7038_v48, 48  ;;  %vm3964_vm3 = vcmp.lt.s32.totalorder %v7038_v48, 16  ;;  %vm4008_vm5 = vcmp.lt.s32.totalorder %v7038_v48, 112 }
 0x2ae   : > { %v3854_v33 = vmul.f32 %v3852_v35, %v7720_v15  ;;  %vm4052_vm4 = vcmp.lt.s32.totalorder %v7038_v48, 96  ;;  %vm4096_vm14 = vcmp.lt.s32.totalorder %v7038_v48, 80 }
 0x2af   : > { %2521 = vrot.lane.b32.xlu0 %v6896_v16, %s5741_s15  ;;  %2653 = vrot.lane.b32.xlu1 %v6896_v16, %s5743_s5  ;;  %v7009_v16 = vpop.permute.xlu1 %3936 }
 0x2b0   : > { %v3870_v42 = vmul.f32 %v3867_v39, %v3854_v33 }
 0x2b2   : > { %v6996_v8 = vadd.f32 %v3870_v42, %v3863_v31 }
 0x2b3   : > { %2534 = vrot.lane.b32.xlu0 %v6903_v20, %s5741_s15  ;;  %2666 = vrot.lane.b32.xlu1 %v6903_v20, %s5743_s5  ;;  %v7011_v20 = vpop.permute.xlu1 %2539  ;;  %s5749_s15 = smov 80   ;;  %s7724_s5 = sld [smem:[#allocation18_spill]] }
 0x2b7   : > { %4004 = vrot.lane.b32.xlu0 %v6933_v24, %s5744_s6  ;;  %3873 = vrot.lane.b32.xlu1 %v6933_v24, %s5745_s4  ;;  %v7016_v6 = vpop.permute.xlu1 %3968 }
 0x2bb   : > { %4048 = vrot.lane.b32.xlu0 %v6933_v24, %s5746_s10  ;;  %3916 = vrot.lane.b32.xlu1 %v6933_v24, %s5747_s26  ;;  %v2572_v36 = vpop.permute.xlu1 %2571 }
 0x2bf   : > { %3918 = vrot.lane.b32.xlu0 %v3274_v18, %s5747_s26  ;;  %3960 = vrot.lane.b32.xlu1 %v6933_v24, %s5748_s8  ;;  %v7020_v4 = vpop.permute.xlu1 %4024 }
 0x2c3   : > { %3886 = vrot.lane.b32.xlu0 %v3853_v53, %s5745_s4  ;;  %3875 = vrot.lane.b32.xlu1 %v3274_v18, %s5745_s4  ;;  %v7022_v21 = vpop.permute.xlu1 %2627 }
 0x2c7   : > { %3973 = vrot.lane.b32.xlu0 %v3853_v53, %s5748_s8  ;;  %3962 = vrot.lane.b32.xlu1 %v3274_v18, %s5748_s8  ;;  %v7025_v25 = vpop.permute.xlu1 %4056 }
 0x2cb   : > { %4017 = vrot.lane.b32.xlu0 %v3853_v53, %s5744_s6  ;;  %4006 = vrot.lane.b32.xlu1 %v3274_v18, %s5744_s6  ;;  %v7030_v49 = vpop.permute.xlu1 %2659 }
 0x2cf   : > { %4061 = vrot.lane.b32.xlu0 %v3853_v53, %s5746_s10  ;;  %4050 = vrot.lane.b32.xlu1 %v3274_v18, %s5746_s10  ;;  %v7034_v13 = vpop.permute.xlu1 %4112 }
 0x2d3   : > { %3931 = vrot.lane.b32.xlu0 %v3854_v33, %s5747_s26  ;;  %3929 = vrot.lane.b32.xlu1 %v3853_v53, %s5747_s26  ;;  %s7741_s26 = sld [smem:[#allocation22_spill]] }
 0x2d7   : > { %4092 = vrot.lane.b32.xlu0 %v6933_v24, %s5749_s15  ;;  %3888 = vrot.lane.b32.xlu1 %v3854_v33, %s5745_s4  ;;  %v7032_v24 = vpop.permute.xlu0 %3881  ;;  %s7737_s4 = sld [smem:[#allocation20_spill]] }
 0x2db   : > { %4105 = vrot.lane.b32.xlu0 %v3853_v53, %s5749_s15  ;;  %4094 = vrot.lane.b32.xlu1 %v3274_v18, %s5749_s15  ;;  %v7721_v53 = vld [vmem:[#allocation41_spill] sm:$0xff] }
 0x2df   : > { %3975 = vrot.lane.b32.xlu1 %v3854_v33, %s5748_s8  ;;  %s7722_s8 = sld [smem:[#allocation17_spill]] }
 0x2e3   : > { %4019 = vrot.lane.b32.xlu1 %v3854_v33, %s5744_s6  ;;  %s7736_s6 = sld [smem:[#allocation19_spill]] }
 0x2e7   : > { %4063 = vrot.lane.b32.xlu1 %v3854_v33, %s5746_s10  ;;  %s7740_s10 = sld [smem:[#allocation21_spill]] }
 0x2e8   : > { %v2476_v7 = vpop.permute.xlu0 %2475  ;;  %v2431_v9 = vpop.permute.xlu1 %2430 }
 0x2eb   : > { %4107 = vrot.lane.b32.xlu1 %v3854_v33, %s5749_s15  ;;  %s7742_s15 = sld [smem:[#allocation23_spill]] }
 0x2fc   : > { %v7043_v46 = vpop.f32.mrb[6].mxu0 }
 0x2fd   : > { %v2489_v0 = vpop.permute.xlu0 %2488  ;;  %v2446_v3 = vpop.permute.xlu1 %2445 }
 0x2fe   : > { %v7045_v26 = vpop.f32.mrb[7].mxu0 }
 0x301   : > { %v2564_v40 = vpop.permute.xlu0 %2563  ;;  %v7036_v23 = vpop.permute.xlu1 %2519 }
 0x305   : > { %v2577_v57 = vpop.permute.xlu0 %2576  ;;  %v7040_v10 = vpop.permute.xlu1 %2532 }
 0x309   : > { %v2608_v19 = vpop.permute.xlu0 %2607  ;;  %v2478_v12 = vpop.permute.xlu1 %2477 }
 0x30a   : > { %v2480_v14 = vsel %vm2479_vm11, %v2476_v7, %v2478_v12  ;;  %v2481_v30 = vsel %vm2479_vm11, %v2478_v12, %v2476_v7  ;;  %v2459_v12 = vld [vmem:[%s7722_s8] ss:$8 sm:$0x3] }
 0x30b   : > { %v2486_v39 = vmul.f32 %v6914_v1, %v2481_v30  ;;  %v2487_v11 = vmul.f32 %v6914_v1, %v2480_v14  ;;  %v7071_v14 = vsub.s32 1, %v2462_v56 }
 0x30d   : > { %v2621_v17 = vpop.permute.xlu0 %2620  ;;  %v2491_v59 = vpop.permute.xlu1 %2490 }
 0x30e   : > { %v2492_v62 = vsel %vm2479_vm11, %v2489_v0, %v2491_v59  ;;  %v2493_v22 = vsel %vm2479_vm11, %v2491_v59, %v2489_v0  ;;  %v5283_v59 = vld [vmem:[%s7722_s8 + $0x1] ss:$8 sm:$0x3]  ;;  %vm4324_vm11 = vcmask 15360  }
 0x30f   : > { %v2498_v32 = vmul.f32 %v7721_v53, %v2493_v22  ;;  %v2499_v27 = vmul.f32 %v7721_v53, %v2492_v62 }
 0x311   : > { %v2500_v60 = vadd.f32 %v2498_v32, %v2486_v39  ;;  %v2501_v2 = vadd.f32 %v2499_v27, %v2487_v11  ;;  %v7052_v37 = vpop.permute.xlu0 %2651  ;;  %v2566_v43 = vpop.permute.xlu1 %2565  ;;  %v2468_v39 = vrot.slane %v2459_v12, %v7071_v14 }
 0x312   : > { %v2568_v28 = vsel %vm2567_vm10, %v2564_v40, %v2566_v43  ;;  %v2569_v63 = vsel %vm2567_vm10, %v2566_v43, %v2564_v40 }
 0x313   : > { %v2574_v35 = vmul.f32 %v2572_v36, %v2568_v28  ;;  %v2575_v15 = vmul.f32 %v2572_v36, %v2569_v63  ;;  %v7069_v36 = vsub.s32 0, %v2462_v56  ;;  %v2512_v63 = vrot.slane %v5283_v59, %v7071_v14 }
 0x315   : > { %v7054_v41 = vpop.permute.xlu0 %2664  ;;  %v2579_v34 = vpop.permute.xlu1 %2578  ;;  %v2464_v22 = vrot.slane %v2459_v12, %v7069_v36  ;;  %v2508_v28 = vrot.slane %v5283_v59, %v7069_v36 }
 0x316   : > { %v2580_v18 = vsel %vm2567_vm10, %v2577_v57, %v2579_v34  ;;  %v2581_v1 = vsel %vm2567_vm10, %v2579_v34, %v2577_v57  ;;  %vm7751_vm10 = vmmov %vm7739_vm13 }
 0x317   : > { %v2586_v33 = vmul.f32 %v6530_v5, %v2580_v18  ;;  %v2587_v31 = vmul.f32 %v6530_v5, %v2581_v1 }
 0x319   : > { %v2433_v42 = vpop.permute.xlu0 %2432  ;;  %v7060_v7 = vadd.f32 %v2586_v33, %v2574_v35  ;;  %v7062_v0 = vadd.f32 %v2587_v31, %v2575_v15  ;;  %v2610_v40 = vpop.permute.xlu1 %2609 }
 0x31a   : > { %v2612_v29 = vsel %vm2611_vm9, %v2608_v19, %v2610_v40  ;;  %v2613_v57 = vsel %vm2611_vm9, %v2610_v40, %v2608_v19  ;;  %v2437_v5 = vsel %vm2436_vm7, %v2431_v9, %v2433_v42  ;;  %v2438_v30 = vsel %vm2436_vm7, %v2433_v42, %v2431_v9 }
 0x31b   : > { %v2443_v32 = vmul.f32 %v7028_v45, %v2438_v30  ;;  %v2444_v27 = vmul.f32 %v7028_v45, %v2437_v5  ;;  %v2515_v42 = vmul.f32 %v2508_v28, %v2500_v60  ;;  %v2516_v40 = vmul.f32 %v2512_v63, %v2501_v2 }
 0x31c   : > { %v2618_v28 = vmul.f32 %v6592_v44, %v2612_v29  ;;  %v2619_v63 = vmul.f32 %v6592_v44, %v2613_v57 }
 0x31d   : > { %v2448_v62 = vpop.permute.xlu0 %2447  ;;  %v2623_v53 = vpop.permute.xlu1 %2622 }
 0x31e   : > { %v2449_v19 = vsel %vm2436_vm7, %v2446_v3, %v2448_v62  ;;  %v2450_v11 = vsel %vm2436_vm7, %v2448_v62, %v2446_v3  ;;  %v5284_v3 = vld [vmem:[%s7722_s8 + $0x2] ss:$8 sm:$0x3]  ;;  %v2624_v1 = vsel %vm2611_vm9, %v2621_v17, %v2623_v53  ;;  %v2625_v45 = vsel %vm2611_vm9, %v2623_v53, %v2621_v17  ;;  %v5285_v17 = vld [vmem:[%s7722_s8 + $0x4] ss:$8 sm:$0x3]  ;;  %vm7753_vm9 = vmmov %vm7751_vm10 }
 0x31f   : > { %v2455_v9 = vmul.f32 %v6831_v52, %v2450_v11  ;;  %v2456_v43 = vmul.f32 %v6831_v52, %v2449_v19  ;;  %v2552_v12 = vrot.slane %v5284_v3, %v7069_v36  ;;  %v2556_v5 = vrot.slane %v5284_v3, %v7071_v14  ;;  %v7723_v19 = vld [vmem:[#allocation43_spill] sm:$0xff]  ;;  %vm7754_vm7 = vmmov %vm7753_vm9 }
 0x320   : > { %v2630_v62 = vmul.f32 %v7022_v21, %v2624_v1 }
 0x321   : > { %v2457_v34 = vadd.f32 %v2455_v9, %v2443_v32  ;;  %v2458_v56 = vadd.f32 %v2456_v43, %v2444_v27  ;;  %v2522_v18 = vpop.permute.xlu0 %2521  ;;  %v7096_v35 = vpop.permute.xlu1 %2653  ;;  %v2596_v9 = vrot.slane %v5285_v17, %v7069_v36  ;;  %v2600_v43 = vrot.slane %v5285_v17, %v7071_v14 }
 0x322   : > { %v2524_v33 = vsel %vm2523_vm15, %v7036_v23, %v2522_v18  ;;  %v2525_v31 = vsel %vm2523_vm15, %v2522_v18, %v7036_v23 }
 0x323   : > { %v2471_v52 = vmul.f32 %v2464_v22, %v2457_v34  ;;  %v2472_v15 = vmul.f32 %v2468_v39, %v2458_v56  ;;  %v2631_v22 = vmul.f32 %v7022_v21, %v2625_v45  ;;  %v2530_v11 = vmul.f32 %v7723_v19, %v2525_v31 }
 0x324   : > { %v2531_v23 = vmul.f32 %v7723_v19, %v2524_v33  ;;  %v2632_v45 = vadd.f32 %v2630_v62, %v2618_v28  ;;  %v2603_v33 = vmul.f32 %v2596_v9, %v7060_v7  ;;  %v2604_v31 = vmul.f32 %v2600_v43, %v7062_v0  ;;  %v7164_v9 = vld [vmem:[%s7724_s5 + $0x2] ss:$8 sm:$0x3]  ;;  %v7167_v43 = vld [vmem:[%s7724_s5 + $0x4] ss:$8 sm:$0x3] }
 0x325   : > { %v2473_v30 = vadd.f32 %v2471_v52, %v6969_v61  ;;  %v2474_v59 = vadd.f32 %v2472_v15, %v6967_v47  ;;  %v2535_v39 = vpop.permute.xlu0 %2534  ;;  %v7119_v61 = vpop.permute.xlu1 %2666  ;;  %v5286_v47 = vld [vmem:[%s7722_s8 + $0x5] ss:$8 sm:$0x3]  ;;  %v2633_v52 = vadd.f32 %v2631_v22, %v2619_v63 }
 0x326   : > { %v2536_v60 = vsel %vm2523_vm15, %v7040_v10, %v2535_v39  ;;  %v2537_v2 = vsel %vm2523_vm15, %v2535_v39, %v7040_v10  ;;  %v2640_v18 = vrot.slane %v5286_v47, %v7069_v36  ;;  %v2644_v3 = vrot.slane %v5286_v47, %v7071_v14  ;;  %v7175_v63 = vld [vmem:[%s7724_s5 + $0x5] ss:$8 sm:$0x3]  ;;  %vm7755_vm15 = vmmov %vm7754_vm7 }
 0x327   : > { %v2517_v53 = vadd.f32 %v2515_v42, %v2473_v30  ;;  %v2518_v32 = vadd.f32 %v2516_v40, %v2474_v59  ;;  %v2542_v21 = vmul.f32 %v7011_v20, %v2537_v2  ;;  %v2543_v27 = vmul.f32 %v7011_v20, %v2536_v60  ;;  %v7149_v2 = vld [vmem:[%s7722_s8 + $0x6] ss:$8 sm:$0x3] }
 0x328   : > { %v2647_v40 = vmul.f32 %v2640_v18, %v2632_v45  ;;  %v2648_v17 = vmul.f32 %v2644_v3, %v2633_v52  ;;  %v7186_v45 = vld [vmem:[%s7724_s5 + $0x6] ss:$8 sm:$0x3]  ;;  %v2669_v28 = vsel %vm2655_vm12, %v7119_v61, %v7054_v41  ;;  %v7732_v48 = vrot.slane %v7149_v2, %v7069_v36 }
 0x329   : > { %v2544_v34 = vadd.f32 %v2542_v21, %v2530_v11  ;;  %v2545_v56 = vadd.f32 %v2543_v27, %v2531_v23  ;;  %v7128_v10 = vpop.permute.xlu0 %4004  ;;  %v3874_v1 = vpop.permute.xlu1 %3873  ;;  %v7159_v21 = vld [vmem:[%s7724_s5] ss:$8 sm:$0x3]  ;;  %v2668_v27 = vsel %vm2655_vm12, %v7054_v41, %v7119_v61 }
 0x32a   : > { %v3905_v18 = vrot.slane %v7159_v21, %v7069_v36  ;;  %v3909_v3 = vrot.slane %v7159_v21, %v7071_v14 }
 0x32b   : > { %v2559_v20 = vmul.f32 %v2552_v12, %v2544_v34  ;;  %v2560_v15 = vmul.f32 %v2556_v5, %v2545_v56 }
 0x32d   : > { %v2561_v29 = vadd.f32 %v2559_v20, %v2517_v53  ;;  %v2562_v42 = vadd.f32 %v2560_v15, %v2518_v32  ;;  %v7134_v44 = vpop.permute.xlu0 %4048  ;;  %v3917_v57 = vpop.permute.xlu1 %3916  ;;  %v7156_v53 = vld [vmem:[%s7724_s5 + $0x1] ss:$8 sm:$0x3]  ;;  %v3993_v20 = vrot.slane %v7164_v9, %v7069_v36  ;;  %s7745_s5 = sld [smem:[#allocation26_spill]] }
 0x32e   : > { %v3949_v34 = vrot.slane %v7156_v53, %v7069_v36  ;;  %v3953_v56 = vrot.slane %v7156_v53, %v7071_v14  ;;  %v7727_v53 = vrot.slane %v7164_v9, %v7071_v14 }
 0x32f   : > { %v2605_v30 = vadd.f32 %v2603_v33, %v2561_v29  ;;  %v2606_v59 = vadd.f32 %v2604_v31, %v2562_v42  ;;  %v7725_v33 = vld [vmem:[#allocation42_spill] sm:$0xff] }
 0x331   : > { %v3919_v39 = vpop.permute.xlu0 %3918  ;;  %v7136_v62 = vadd.f32 %v2647_v40, %v2605_v30  ;;  %v7138_v12 = vadd.f32 %v2648_v17, %v2606_v59  ;;  %v3961_v7 = vpop.permute.xlu1 %3960 }
 0x335   : > { %v3887_v0 = vpop.permute.xlu0 %3886  ;;  %v3876_v5 = vpop.permute.xlu1 %3875 }
 0x336   : > { %v3878_v59 = vsel %vm3877_vm1, %v3874_v1, %v3876_v5  ;;  %v3879_v21 = vsel %vm3877_vm1, %v3876_v5, %v3874_v1 }
 0x337   : > { %v3885_v17 = vmul.f32 %v7032_v24, %v3878_v59  ;;  %v2675_v59 = vmul.f32 %v6642_v58, %v2669_v28 }
 0x339   : > { %v7140_v22 = vpop.permute.xlu0 %3973  ;;  %v3963_v19 = vpop.permute.xlu1 %3962 }
 0x33d   : > { %v7142_v11 = vpop.permute.xlu1 %4006  ;;  %v7144_v23 = vpop.permute.xlu0 %4017 }
 0x341   : > { %v7146_v60 = vpop.permute.xlu1 %4050  ;;  %v7153_v47 = vpop.permute.xlu0 %4061 }
 0x345   : > { %v3930_v32 = vpop.permute.xlu1 %3929  ;;  %v3932_v29 = vpop.permute.xlu0 %3931 }
 0x346   : > { %v3933_v30 = vsel %vm3920_vm2, %v3930_v32, %v3932_v29 }
 0x349   : > { %v3889_v52 = vpop.permute.xlu1 %3888 }
 0x34a   : > { %v3890_v42 = vsel %vm3877_vm1, %v3887_v0, %v3889_v52  ;;  %v3891_v40 = vsel %vm3877_vm1, %v3889_v52, %v3887_v0  ;;  %v2656_v0 = vsel %vm2655_vm12, %v7052_v37, %v7096_v35  ;;  %v2657_v52 = vsel %vm2655_vm12, %v7096_v35, %v7052_v37  ;;  %vm7756_vm12 = vmmov %vm7754_vm7 }
 0x34b   : > { %v3896_v1 = vmul.f32 %v6858_v50, %v3891_v40  ;;  %v3897_v5 = vmul.f32 %v6858_v50, %v3890_v42  ;;  %v3934_v37 = vsel %vm3920_vm2, %v3932_v29, %v3930_v32  ;;  %v3921_v50 = vsel %vm3920_vm2, %v3917_v57, %v3919_v39 }
 0x34c   : > { %v3922_v42 = vsel %vm3920_vm2, %v3919_v39, %v3917_v57  ;;  %v3884_v40 = vmul.f32 %v7032_v24, %v3879_v21  ;;  %v2662_v41 = vmul.f32 %v7030_v49, %v2656_v0  ;;  %v2663_v61 = vmul.f32 %v7030_v49, %v2657_v52 }
 0x34d   : > { %v4095_v35 = vpop.permute.xlu1 %4094  ;;  %v3965_v32 = vsel %vm3964_vm3, %v3961_v7, %v3963_v19  ;;  %v3966_v29 = vsel %vm3964_vm3, %v3963_v19, %v3961_v7  ;;  %v3939_v31 = vmul.f32 %v7009_v16, %v3934_v37  ;;  %v3940_v57 = vmul.f32 %v7009_v16, %v3933_v30 }
 0x34e   : > { %v3898_v39 = vadd.f32 %v3896_v1, %v3884_v40  ;;  %v3899_v21 = vadd.f32 %v3897_v5, %v3885_v17  ;;  %v2674_v24 = vmul.f32 %v6642_v58, %v2668_v27  ;;  %v3927_v0 = vmul.f32 %v7725_v33, %v3922_v42 }
 0x34f   : > { %v3928_v49 = vmul.f32 %v7725_v33, %v3921_v50  ;;  %v4009_v7 = vsel %vm4008_vm5, %v7128_v10, %v7142_v11  ;;  %v4010_v16 = vsel %vm4008_vm5, %v7142_v11, %v7128_v10  ;;  %v3971_v27 = vmul.f32 %v7016_v6, %v3966_v29  ;;  %v7726_v33 = vld [vmem:[#allocation44_spill] sm:$0xff] }
 0x350   : > { %v3972_v28 = vmul.f32 %v7016_v6, %v3965_v32  ;;  %v3941_v1 = vadd.f32 %v3939_v31, %v3927_v0  ;;  %v3912_v37 = vmul.f32 %v3905_v18, %v3898_v39  ;;  %v3913_v10 = vmul.f32 %v3909_v3, %v3899_v21  ;;  %v4093_v3 = vpop.permute.xlu0 %4092 }
 0x351   : > { %v3976_v52 = vpop.permute.xlu1 %3975  ;;  %v3942_v5 = vadd.f32 %v3940_v57, %v3928_v49  ;;  %v2676_v11 = vadd.f32 %v2674_v24, %v2662_v41  ;;  %v2677_v50 = vadd.f32 %v2675_v59, %v2663_v61  ;;  %v4015_v42 = vmul.f32 %v6557_v51, %v4009_v7 }
 0x352   : > { %v3977_v19 = vsel %vm3964_vm3, %v7140_v22, %v3976_v52  ;;  %v3978_v58 = vsel %vm3964_vm3, %v3976_v52, %v7140_v22  ;;  %v4016_v40 = vmul.f32 %v6557_v51, %v4010_v16  ;;  %v4053_v18 = vsel %vm4052_vm4, %v7134_v44, %v7146_v60 }
 0x353   : > { %v3983_v17 = vmul.f32 %v7726_v33, %v3978_v58  ;;  %v3984_v30 = vmul.f32 %v7726_v33, %v3977_v19  ;;  %v4054_v51 = vsel %vm4052_vm4, %v7146_v60, %v7134_v44  ;;  %v3956_v32 = vmul.f32 %v3949_v34, %v3941_v1 }
 0x354   : > { %v3915_v29 = vadd.f32 %v3913_v10, %v6996_v8  ;;  %v4097_v44 = vsel %vm4096_vm14, %v4093_v3, %v4095_v35  ;;  %v4098_v60 = vsel %vm4096_vm14, %v4095_v35, %v4093_v3  ;;  %v4059_v35 = vmul.f32 %v7025_v25, %v4053_v18  ;;  %v4106_v7 = vpop.permute.xlu0 %4105 }
 0x355   : > { %v4020_v15 = vpop.permute.xlu1 %4019  ;;  %v3985_v22 = vadd.f32 %v3983_v17, %v3971_v27  ;;  %v3986_v52 = vadd.f32 %v3984_v30, %v3972_v28  ;;  %v4060_v21 = vmul.f32 %v7025_v25, %v4054_v51  ;;  %v4103_v59 = vmul.f32 %v6677_v54, %v4097_v44 }
 0x356   : > { %v4021_v6 = vsel %vm4008_vm5, %v7144_v23, %v4020_v15  ;;  %v4022_v31 = vsel %vm4008_vm5, %v4020_v15, %v7144_v23  ;;  %v3957_v23 = vmul.f32 %v3953_v56, %v3942_v5  ;;  %v3914_v15 = vadd.f32 %v3912_v37, %v6983_v55 }
 0x357   : > { %v4027_v41 = vmul.f32 %v7020_v4, %v4021_v6  ;;  %v4028_v61 = vmul.f32 %v7020_v4, %v4022_v31  ;;  %v4000_v34 = vmul.f32 %v3993_v20, %v3985_v22  ;;  %v4001_v56 = vmul.f32 %v7727_v53, %v3986_v52 }
 0x358   : > { %v4104_v9 = vmul.f32 %v6677_v54, %v4098_v60  ;;  %v3958_v0 = vadd.f32 %v3956_v32, %v3914_v15  ;;  %v3959_v49 = vadd.f32 %v3957_v23, %v3915_v29  ;;  %v7728_v16 = vrot.slane %v7167_v43, %v7069_v36  ;;  %v4220_v60 = vld [vmem:[%s7736_s6] sm:$0x3]  ;;  %s7743_s6 = sld [smem:[#allocation24_spill]] }
 0x359   : > { %v4029_v57 = vadd.f32 %v4027_v41, %v4015_v42  ;;  %v4030_v4 = vadd.f32 %v4028_v61, %v4016_v40  ;;  %v4064_v39 = vpop.permute.xlu1 %4063  ;;  %v7730_v30 = vrot.slane %v7175_v63, %v7069_v36  ;;  %v7731_v5 = vrot.slane %v7175_v63, %v7071_v14 }
 0x35a   : > { %v4065_v55 = vsel %vm4052_vm4, %v7153_v47, %v4064_v39  ;;  %v4066_v8 = vsel %vm4052_vm4, %v4064_v39, %v7153_v47  ;;  %v7729_v47 = vrot.slane %v7167_v43, %v7071_v14  ;;  %v4002_v33 = vadd.f32 %v4000_v34, %v3958_v0 }
 0x35b   : > { %v4071_v24 = vmul.f32 %v6620_v38, %v4065_v55  ;;  %v4072_v20 = vmul.f32 %v6620_v38, %v4066_v8  ;;  %v4044_v19 = vmul.f32 %v7728_v16, %v4029_v57  ;;  %v4003_v38 = vadd.f32 %v4001_v56, %v3959_v49  ;;  %v4221_v57 = vld [vmem:[%s7737_s4] sm:$0x3]  ;;  %s7744_s4 = sld [smem:[#allocation25_spill]] }
 0x35c   : > { %v4045_v58 = vmul.f32 %v7729_v47, %v4030_v4  ;;  %v2691_v6 = vmul.f32 %v7732_v48, %v2676_v11  ;;  %v7733_v31 = vrot.slane %v7149_v2, %v7071_v14  ;;  %v7734_v63 = vrot.slane %v7186_v45, %v7069_v36 }
 0x35d   : > { %v4073_v25 = vadd.f32 %v4071_v24, %v4059_v35  ;;  %v4074_v27 = vadd.f32 %v4072_v20, %v4060_v21  ;;  %v4108_v28 = vpop.permute.xlu1 %4107  ;;  %v4046_v42 = vadd.f32 %v4044_v19, %v4002_v33  ;;  %v7735_v3 = vrot.slane %v7186_v45, %v7071_v14 }
 0x35e   : > { %v4109_v17 = vsel %vm4096_vm14, %v4106_v7, %v4108_v28  ;;  %v4110_v54 = vsel %vm4096_vm14, %v4108_v28, %v4106_v7  ;;  %v4047_v40 = vadd.f32 %v4045_v58, %v4003_v38  ;;  %v2692_v18 = vmul.f32 %v7733_v31, %v2677_v50  ;;  %v4478_v31 = vld [vmem:[%s7745_s5] sm:$0xff]  ;;  %s7750_s5 = sld [smem:[#allocation27_spill]] }
 0x35f   : > { %v4088_v1 = vmul.f32 %v7730_v30, %v4073_v25  ;;  %v4089_v43 = vmul.f32 %v7731_v5, %v4074_v27  ;;  %v4115_v37 = vmul.f32 %v7034_v13, %v4109_v17  ;;  %v4116_v10 = vmul.f32 %v7034_v13, %v4110_v54  ;;  %v4402_v5 = vld [vmem:[%s7741_s26] sm:$0xff]  ;;  %s7747_s26 = sld [smem:[#allocation29_spill]] }
 0x360   : > { %v7351_v32 = vadd.f32 %v2691_v6, %v7136_v62  ;;  %v7356_v2 = vadd.f32 %v2692_v18, %v7138_v12  ;;  %v7738_v15 = vmov 0.0   ;;  %v4699_v12 = vld [vmem:[%s5945_s21 + $0x10] sm:$0xff] }
 0x361   : > { %v4117_v22 = vadd.f32 %v4115_v37, %v4103_v59  ;;  %v4118_v52 = vadd.f32 %v4116_v10, %v4104_v9  ;;  %v4090_v41 = vadd.f32 %v4088_v1, %v4046_v42  ;;  %v4091_v61 = vadd.f32 %v4089_v43, %v4047_v40  ;;  %5360 = vmatprep.mubr.msk.f32.mxu1 %vm5750_vm0, %v7738_v15  ;;  %v4322_v1 = vld [vmem:[%s7740_s10] sm:$0xff]  ;;  %s7746_s10 = sld [smem:[#allocation28_spill]] }
 0x362   : > { %5365 = vmatprep.mubr.msk.f32.mxu0 %vm5750_vm0, %v7738_v15  ;;  %v4477_v43 = vld [vmem:[%s7742_s15] sm:$0xff]  ;;  %s7748_s15 = sld [smem:[#allocation30_spill]] }
 0x363   : > { %v4132_v51 = vmul.f32 %v7734_v63, %v4117_v22  ;;  %v4133_v13 = vmul.f32 %v7735_v3, %v4118_v52  ;;  %v4323_v37 = vld [vmem:[%s7743_s6] sm:$0xff]  ;;  %s7752_s6 = sld [smem:[#allocation31_spill]] }
 0x364   : > { %v4403_v10 = vld [vmem:[%s7744_s4] sm:$0xff] }
 0x365   : > { %v7353_v23 = vadd.f32 %v4132_v51, %v4090_v41  ;;  %v7358_v11 = vadd.f32 %v4133_v13, %v4091_v61 }
 0x367   : > { %v4211_v36 = vadd.f32 %v7353_v23, %v7351_v32  ;;  %v4212_v14 = vadd.f32 %v7358_v11, %v7356_v2 }
 0x369   : > { %v4213_v45 = vadd.f32 %v4211_v36, %v7043_v46  ;;  %v4214_v62 = vadd.f32 %v4212_v14, %v7045_v26 }
 0x36b   : > { %v4215_v50 = vadd.f32 %v4214_v62, %v4213_v45 }
 0x36d   : > { %4216 = vadd.xlane.f32.xlu0 %v4215_v50 }
 0x383   : > { %4713 = vperm.xlu0 %5540, %v4699_v12  }
 0x3fa   : > { %v4217_v29 = vpop.xlane.xlu0 %4216 }
 0x3fb   : > { %v4219_v44 = vmul.f32 0.00390625, %v4217_v29 }
 0x3fd   : > { %5359 = vmatpush3.msra.mxu1 %v4219_v44 }
 0x3fe   : > { %5361 = vmatmul.mubr.msk.f32.vlgmr.msra.gmra.mrb[10].mxu1 %vm7739_vm13, %v4220_v60  ;;  %5368 = vmatprep.subr.mxu1 %v7738_v15 }
 0x3ff   : > { %5370 = vmatprep.mubr.msk.f32.mxu1 %vm5750_vm0, %v7738_v15 }
 0x4d1   : > { %v4291_v4 = vpop.f32.mrb[10].mxu1 }
 0x4d2   : > { %v4292_v39 = vadd.f32 %v4291_v4, %v4221_v57  ;;  %v5362_v34 = vpop.f32.mrb[11].mxu1 }
 0x4d4   : > { %v4296_v53 = vmul.f32 0.70710677, %v4292_v39  ;;  %v4295_v17 = vmul.f32 0.5, %v4292_v39 }
 0x4d6   : > { %v4297_v56 = vand.u32 2147483647, %v4296_v53  ;;  %vm4317_vm8 = vcmp.ge.f32.partialorder %v4296_v53, 0.0  ;;  %v4595_v53 = vld [vmem:[%s7746_s10] sm:$0xff]  ;;  %s5349_s10 = sshll.u32 %s5983_s0, 8  ;;  %s5751_s0 = smov [#allocation2]  }
 0x4d8   : > { %v4298_v55 = vmul.f32 0.3275911, %v4297_v56  ;;  %v4311_v35 = vmul.f32 %v4297_v56, %v4297_v56  ;;  %v4677_v56 = vld [vmem:[%s7747_s26] sm:$0xff] }
 0x4da   : > { %v4299_v8 = vadd.f32 1.0, %v4298_v55  ;;  %v4312_v24 = vsub.f32 0.0, %v4311_v35  ;;  %v4685_v55 = vld [vmem:[%s7748_s15] sm:$0xff]  ;;  %v4698_v35 = vld [vmem:[%s5945_s21 + $0x8] sm:$0xff] }
 0x4dc   : > { %5574 = vrcp.f32 %v4299_v8  ;;  %v4313_v9 = vmul.f32 1.442695, %v4312_v24  ;;  %v4697_v8 = vld [vmem:[%s5945_s21] sm:$0xff] }
 0x4dd   : > { %v5116_v24 = vld [vmem:[%s7749_s3] sm:$0xff] }
 0x4de   : > { %5576 = vpow2.f32 %v4313_v9 }
 0x4e6   : > { %v5575_v21 = vpop.eup %5574 }
 0x4e7   : > { %v4302_v20 = vmul.f32 1.0614054, %v5575_v21 }
 0x4e8   : > { %v5577_v25 = vpop.eup %5576 }
 0x4e9   : > { %v4303_v59 = vadd.f32 -1.4531521, %v4302_v20 }
 0x4eb   : > { %v4304_v0 = vmul.f32 %v5575_v21, %v4303_v59 }
 0x4ed   : > { %v4305_v49 = vadd.f32 1.4214138, %v4304_v0 }
 0x4ef   : > { %v4306_v7 = vmul.f32 %v5575_v21, %v4305_v49 }
 0x4f1   : > { %v4307_v16 = vadd.f32 -0.28449672, %v4306_v7 }
 0x4f3   : > { %v4308_v19 = vmul.f32 %v5575_v21, %v4307_v16 }
 0x4f5   : > { %v4309_v47 = vadd.f32 0.2548296, %v4308_v19 }
 0x4f7   : > { %v4310_v58 = vmul.f32 %v5575_v21, %v4309_v47  ;;  %v4700_v21 = vld [vmem:[%s5945_s21 + $0x18] sm:$0xff] }
 0x4f9   : > { %v4315_v27 = vmul.f32 %v5577_v25, %v4310_v58 }
 0x4fb   : > { %v4316_v28 = vsub.f32 1.0, %v4315_v27 }
 0x4fd   : > { %v4318_v33 = vsub.f32 0.0, %v4316_v28 }
 0x4ff   : > { %v4319_v38 = vsel %vm4317_vm8, %v4316_v28, %v4318_v33  ;;  %v4594_v33 = vld [vmem:[%s7750_s5] sm:$0xff]  ;;  %vm5039_vm8 = vcmask 261120   ;;  %s7556_s5 = scalar_lea.hbm %s5960_s24, %s5349_s10 }
 0x500   : > { %v4320_v54 = vadd.f32 1.0, %v4319_v38 }
 0x502   : > { %v4321_v30 = vmul.f32 %v4320_v54, %v4295_v17  ;;  %v5618_v17 = vld [vmem:[%s6031_s16] sm:$0xff]  ;;  %v5619_v54 = vld [vmem:[%s6031_s16 + $0x8] sm:$0xff]  ;;  %s1201_s16 = sand.u32 1, %s5674_s1  }
 0x503   : > { %s5244_s4 = sshll.u32 %s1201_s16, 4  ;;  %s5127_s3 = scalar_lea.sflag [#allocation3], %s1201_s16 }
 0x504   : > { %5364 = vmatpush3.msk.msra.mxu0 %vm4328_vm6, %v4321_v30  ;;  %5369 = vmatpush3.msk.msra.mxu1 %vm4328_vm6, %v4321_v30  ;;  %s1203_s26 = scalar_lea.vmem [#allocation2], %s5244_s4  ;;  %s5624_s4 = sshll.u32 %s5751_s0, 4  ;;  %s5625_s4 = int_to_ptr.vmem [resolvable:$false] %s5624_s4 }
 0x505   : > { %5366 = vmatmul.mubr.msk.f32.vlgmr.msra.gmra.mrb[8].mxu0 %vm4324_vm11, %v4322_v1  ;;  %5371 = vmatmul.mubr.msk.f32.vlgmr.msra.gmra.mrb[12].mxu1 %vm4324_vm11, %v4402_v5  ;;  %s5141_s15 = sshll.u32 %s1203_s26, 4  ;;  %s5626_s8 = scalar_lea.vmem %s5625_s4, 512  ;;  %s7558_s15 = int_to_ptr.vmem [resolvable:$true] %s5141_s15 }
 0x506   : > { %5373 = vmatprep.subr.mxu0 %v7738_v15  ;;  %5375 = vmatprep.mubr.msk.f32.mxu0 %vm5750_vm0, %v7738_v15  ;;  %p5627_p0 = scmp.lt.s32.totalorder %s7558_s15, %s5625_s4 }
 0x507   : > { %5374 = vmatpush3.msk.msra.mxu0 %vm4328_vm6, %v4321_v30  ;;  %4668 = vmatprep.mubr.f32.mxu1 %v7738_v15 }
 0x509   : > { %5376 = vmatmul.mubr.msk.f32.vlgmr.msra.gmra.mrb[10].mxu0 %vm4324_vm11, %v4477_v43 }
 0x50a   : > { %4797 = vmatprep.mubr.f32.mxu0 %v7738_v15 }
 0x5d8   : > { %v4398_v42 = vpop.f32.mrb[8].mxu0  ;;  %v4473_v40 = vpop.f32.mrb[12].mxu1 }
 0x5d9   : > { %v4399_v22 = vadd.f32 %v4398_v42, %v4323_v37  ;;  %v4474_v52 = vadd.f32 %v4473_v40, %v4403_v10  ;;  %v5367_v48 = vpop.f32.mrb[9].mxu0  ;;  %v5372_v6 = vpop.f32.mrb[13].mxu1  ;;  %v4693_v42 = vld [vmem:[%s7752_s6] sm:$0xff]  ;;  %v4694_v40 = vld [vmem:[%s7752_s6 + $0x8] sm:$0xff] }
 0x5db   : > { %v4552_v18 = vmax.f32 %v4399_v22, %v4474_v52 }
 0x5dc   : > { %v4548_v63 = vpop.f32.mrb[10].mxu0 }
 0x5dd   : > { %v4549_v51 = vadd.f32 %v4548_v63, %v4478_v31  ;;  %v5377_v3 = vpop.f32.mrb[11].mxu0 }
 0x5df   : > { %v4553_v13 = vmax.f32 %v4552_v18, %v4549_v51 }
 0x5e1   : > { %v4554_v41 = vsub.f32 %v4399_v22, %v4553_v13  ;;  %v4557_v61 = vsub.f32 %v4474_v52, %v4553_v13  ;;  %v4560_v36 = vsub.f32 %v4549_v51, %v4553_v13  ;;  %v4695_v22 = vld [vmem:[%s7752_s6 + $0x10] sm:$0xff]  ;;  %v4696_v52 = vld [vmem:[%s7752_s6 + $0x18] sm:$0xff]  ;;  %s5620_s6 = scalar_lea.vmem %s7558_s15, 256 }
 0x5e2   : > { %p5621_p11 = scmp.ne.s32.totalorder %s7558_s15, %s5620_s6  ;;  %p5628_p1 = scmp.lt.s32.totalorder %s5626_s8, %s5620_s6 }
 0x5e3   : > { %v4555_v14 = vmul.f32 1.442695, %v4554_v41  ;;  %v4558_v45 = vmul.f32 1.442695, %v4557_v61  ;;  %v4561_v62 = vmul.f32 1.442695, %v4560_v36 }
 0x5e4   : > { %p5622_p12 = pnand %p5621_p11, %p6000_p5  ;;  %p5629_p2 = por %p5628_p1, %p5627_p0 }
 0x5e5   : > { %5578 = vpow2.f32 %v4555_v14 }
 0x5e6   : > { %5580 = vpow2.f32 %v4558_v45  ;;  %p5623_p13 = pneg %p5622_p12 }
 0x5e7   : > { %5582 = vpow2.f32 %v4561_v62 }
 0x5e8   : > { %p5630_p3 = pnand %p5629_p2, %p5623_p13 }
 0x5ef   : > { %v5579_v50 = vpop.eup %5578 }
 0x5f0   : > { %v5581_v12 = vpop.eup %5580 }
 0x5f1   : > { %v4563_v29 = vadd.f32 %v5581_v12, %v5579_v50  ;;  %v5583_v44 = vpop.eup %5582 }
 0x5f3   : > { %v4564_v60 = vadd.f32 %v5583_v44, %v4563_v29 }
 0x5f5   : > { %5584 = vrcp.f32 %v4564_v60 }
 0x5ff   : > { %v5585_v57 = vpop.eup %5584 }
 0x600   : > { %v4566_v4 = vmul.f32 %v5585_v57, %v5579_v50  ;;  %v4574_v39 = vmul.f32 %v5585_v57, %v5581_v12  ;;  %v4584_v34 = vmul.f32 %v5585_v57, %v5583_v44 }
 0x602   : > { %4569 = vperm.xlu1 %5541, %v4566_v4  }
 0x606   : > { %4577 = vperm.xlu1 %5541, %v4574_v39  }
 0x60a   : > { %4587 = vperm.xlu1 %5541, %v4584_v34  }
 0x60e   : > { %4598 = vperm.xlu1 %5541, %v4595_v53  }
 0x612   : > { %4680 = vperm.xlu1 %5541, %v4677_v56   ;;  %v4714_v56 = vpop.permute.xlu0 %4713 }
 0x616   : > { %4688 = vperm.xlu1 %5541, %v4685_v55  }
 0x61a   : > { %4703 = vperm.xlu1 %5541, %v4697_v8  }
 0x61e   : > { %4708 = vperm.xlu1 %5541, %v4698_v35  }
 0x622   : > { %4718 = vperm.xlu1 %5541, %v4700_v21  }
 0x626   : > { %5119 = vperm.xlu1 %5541, %v5116_v24  }
 0x681   : > { %v4570_v20 = vpop.permute.xlu1 %4569 }
 0x682   : > { %v4572_v49 = vmul.f32 %v4570_v20, %v7351_v32  ;;  %v4573_v7 = vmul.f32 %v4570_v20, %v7356_v2 }
 0x685   : > { %v4578_v59 = vpop.permute.xlu1 %4577 }
 0x686   : > { %v4580_v9 = vmul.f32 %v4578_v59, %v7353_v23  ;;  %v4581_v0 = vmul.f32 %v4578_v59, %v7358_v11 }
 0x688   : > { %v4582_v19 = vadd.f32 %v4580_v9, %v4572_v49  ;;  %v4583_v47 = vadd.f32 %v4581_v0, %v4573_v7 }
 0x689   : > { %v4588_v16 = vpop.permute.xlu1 %4587 }
 0x68a   : > { %v4590_v58 = vmul.f32 %v4588_v16, %v7043_v46  ;;  %v4591_v25 = vmul.f32 %v4588_v16, %v7045_v26 }
 0x68c   : > { %v4592_v27 = vadd.f32 %v4590_v58, %v4582_v19  ;;  %v4593_v28 = vadd.f32 %v4591_v25, %v4583_v47 }
 0x68d   : > { %v4599_v32 = vpop.permute.xlu1 %4598 }
 0x68e   : > { %4604 = vmatprep.subr.mxu1 %v4593_v28 }
 0x68f   : > { %4605 = vmatpush1.msra.mxu1 %v4592_v27 }
 0x690   : > { %5337 = vmatmul.mubr.msk.f32.vlgmr.msra.gmra.mrb[14].mxu1 %vm7751_vm10, %v4594_v33 }
 0x691   : > { %5107 = vmatprep.mubr.f32.mxu1 %v7738_v15  ;;  %v4681_v2 = vpop.permute.xlu1 %4680 }
 0x695   : > { %v4689_v43 = vpop.permute.xlu1 %4688 }
 0x699   : > { %v4704_v48 = vpop.permute.xlu1 %4703 }
 0x69d   : > { %v4709_v3 = vpop.permute.xlu1 %4708 }
 0x6a1   : > { %v4719_v7 = vpop.permute.xlu1 %4718 }
 0x763   : > { %v4670_v23 = vpop.f32.mrb[14].mxu1 }
 0x764   : > { %v4671_v11 = vadd.f32 %v4670_v23, %v4599_v32  ;;  %v4672_v38 = vpop.f32.mrb[15].mxu1 }
 0x765   : > { %v4673_v46 = vadd.f32 %v4672_v38, %v4599_v32 }
 0x766   : > { %v7405_v26 = vadd.f32 %v5618_v17, %v4671_v11 }
 0x767   : > { %v7408_v30 = vadd.f32 %v5619_v54, %v4673_v46 }
 0x768   : > { %v4683_v1 = vmul.f32 %v4681_v2, %v7405_v26 }
 0x769   : > { %v4684_v5 = vmul.f32 %v4681_v2, %v7408_v30 }
 0x76a   : > { %v4691_v10 = vadd.f32 %v4689_v43, %v4683_v1 }
 0x76b   : > { %v4692_v37 = vadd.f32 %v4689_v43, %v4684_v5 }
 0x76d   : > { %4733 = vmatprep.subr.mxu0 %v4692_v37 }
 0x76e   : > { %4734 = vmatpush1.msra.mxu0 %v4691_v10 }
 0x76f   : > { %5338 = vmatmul.mubr.msk.f32.vlgmr.msra.gmra.mrb[12].mxu0 %vm7753_vm9, %v4693_v42 }
 0x770   : > { %4803 = vmatprep.mubr.f32.mxu0 %v7738_v15 }
 0x773   : > { %5339 = vmatmul.mubr.msk.f32.gmra.mrb[14].mxu0 %vm7754_vm7, %v4694_v40 }
 0x774   : > { %4809 = vmatprep.mubr.f32.mxu0 %v7738_v15 }
 0x777   : > { %5340 = vmatmul.mubr.msk.f32.gmra.mrb[16].mxu0 %vm7755_vm15, %v4695_v22 }
 0x778   : > { %4815 = vmatprep.mubr.f32.mxu0 %v7738_v15 }
 0x77b   : > { %5341 = vmatmul.mubr.msk.f32.gmra.mrb[18].mxu0 %vm7756_vm12, %v4696_v52 }
 0x842   : > { %v4799_v6 = vpop.f32.mrb[12].mxu0 }
 0x843   : > { %v4800_v31 = vadd.f32 %v4799_v6, %v4704_v48  ;;  %v4801_v18 = vpop.f32.mrb[13].mxu0 }
 0x844   : > { %v4802_v63 = vadd.f32 %v4801_v18, %v4704_v48 }
 0x845   : > { %v7423_v51 = vmul.f32 0.70710677, %v4800_v31  ;;  %v7457_v32 = vmul.f32 0.5, %v4800_v31 }
 0x846   : > { %v7425_v13 = vmul.f32 0.70710677, %v4802_v63  ;;  %v4805_v41 = vpop.f32.mrb[14].mxu0  ;;  %v7462_v38 = vmul.f32 0.5, %v4802_v63 }
 0x847   : > { %v4838_v61 = vand.u32 2147483647, %v7423_v51  ;;  %v7428_v36 = vadd.f32 %v4805_v41, %v4709_v3  ;;  %v4807_v14 = vpop.f32.mrb[15].mxu0  ;;  %vm4998_vm2 = vcmp.ge.f32.partialorder %v7423_v51, 0.0 }
 0x848   : > { %v4839_v15 = vand.u32 2147483647, %v7425_v13  ;;  %v7431_v45 = vadd.f32 %v4807_v14, %v4709_v3  ;;  %vm4999_vm1 = vcmp.ge.f32.partialorder %v7425_v13, 0.0 }
 0x849   : > { %v4846_v62 = vmul.f32 0.3275911, %v4838_v61  ;;  %v7434_v50 = vmul.f32 0.70710677, %v7428_v36  ;;  %v4950_v35 = vmul.f32 %v4838_v61, %v4838_v61 }
 0x84a   : > { %v4847_v12 = vmul.f32 0.3275911, %v4839_v15  ;;  %v7437_v29 = vmul.f32 0.70710677, %v7431_v45  ;;  %v4811_v44 = vpop.f32.mrb[16].mxu0  ;;  %v4951_v0 = vmul.f32 %v4839_v15, %v4839_v15 }
 0x84b   : > { %v4854_v60 = vadd.f32 1.0, %v4846_v62  ;;  %v4840_v57 = vand.u32 2147483647, %v7434_v50  ;;  %v4813_v4 = vpop.f32.mrb[17].mxu0  ;;  %v7441_v24 = vadd.f32 %v4811_v44, %v4714_v56  ;;  %v4958_v47 = vsub.f32 0.0, %v4950_v35 }
 0x84c   : > { %v4855_v39 = vadd.f32 1.0, %v4847_v12  ;;  %v4841_v34 = vand.u32 2147483647, %v7437_v29  ;;  %v7443_v9 = vadd.f32 %v4813_v4, %v4714_v56  ;;  %v4959_v23 = vsub.f32 0.0, %v4951_v0 }
 0x84d   : > { %5586 = vrcp.f32 %v4854_v60  ;;  %v4848_v53 = vmul.f32 0.3275911, %v4840_v57  ;;  %v7446_v49 = vmul.f32 0.70710677, %v7441_v24  ;;  %v4952_v16 = vmul.f32 %v4840_v57, %v4840_v57 }
 0x84e   : > { %5588 = vrcp.f32 %v4855_v39  ;;  %v4849_v55 = vmul.f32 0.3275911, %v4841_v34  ;;  %v4817_v8 = vpop.f32.mrb[18].mxu0  ;;  %v7449_v19 = vmul.f32 0.70710677, %v7443_v9  ;;  %v4953_v58 = vmul.f32 %v4841_v34, %v4841_v34 }
 0x84f   : > { %v4856_v21 = vadd.f32 1.0, %v4848_v53  ;;  %v4819_v20 = vpop.f32.mrb[19].mxu0  ;;  %v4842_v25 = vand.u32 2147483647, %v7446_v49  ;;  %v7452_v27 = vadd.f32 %v4817_v8, %v4719_v7  ;;  %v4960_v46 = vsub.f32 0.0, %v4952_v16 }
 0x850   : > { %v4857_v59 = vadd.f32 1.0, %v4849_v55  ;;  %v4843_v28 = vand.u32 2147483647, %v7449_v19  ;;  %v7455_v33 = vadd.f32 %v4819_v20, %v4719_v7  ;;  %v4966_v5 = vmul.f32 1.442695, %v4958_v47 }
 0x851   : > { %5590 = vrcp.f32 %v4856_v21  ;;  %v4850_v2 = vmul.f32 0.3275911, %v4842_v25  ;;  %v7460_v11 = vmul.f32 0.70710677, %v7452_v27  ;;  %v4961_v43 = vsub.f32 0.0, %v4953_v58 }
 0x852   : > { %5592 = vrcp.f32 %v4857_v59  ;;  %v4851_v17 = vmul.f32 0.3275911, %v4843_v28  ;;  %v7465_v54 = vmul.f32 0.70710677, %v7455_v33  ;;  %v4954_v22 = vmul.f32 %v4842_v25, %v4842_v25 }
 0x853   : > { %v4858_v37 = vadd.f32 1.0, %v4850_v2  ;;  %v4844_v10 = vand.u32 2147483647, %v7460_v11  ;;  %v4968_v31 = vmul.f32 1.442695, %v4959_v23  ;;  %v4955_v41 = vmul.f32 %v4843_v28, %v4843_v28 }
 0x854   : > { %v4859_v52 = vadd.f32 1.0, %v4851_v17  ;;  %v4845_v48 = vand.u32 2147483647, %v7465_v54  ;;  %v4970_v3 = vmul.f32 1.442695, %v4960_v46  ;;  %v4962_v39 = vsub.f32 0.0, %v4954_v22 }
 0x855   : > { %5594 = vrcp.f32 %v4858_v37  ;;  %v4852_v18 = vmul.f32 0.3275911, %v4844_v10  ;;  %v4956_v62 = vmul.f32 %v4844_v10, %v4844_v10  ;;  %v4972_v4 = vmul.f32 1.442695, %v4961_v43 }
 0x856   : > { %5596 = vrcp.f32 %v4859_v52  ;;  %v4853_v12 = vmul.f32 0.3275911, %v4845_v48  ;;  %v4963_v35 = vsub.f32 0.0, %v4955_v41  ;;  %v4974_v16 = vmul.f32 1.442695, %v4962_v39 }
 0x857   : > { %v7467_v1 = vpop.eup %5586  ;;  %v4860_v15 = vadd.f32 1.0, %v4852_v18  ;;  %v4964_v59 = vsub.f32 0.0, %v4956_v62  ;;  %v7487_v58 = vmul.f32 0.5, %v7428_v36  ;;  %v4957_v28 = vmul.f32 %v4845_v48, %v4845_v48 }
 0x858   : > { %v7470_v42 = vpop.eup %5588  ;;  %v4878_v40 = vmul.f32 1.0614054, %v7467_v1  ;;  %v4861_v56 = vadd.f32 1.0, %v4853_v12  ;;  %v4976_v46 = vmul.f32 1.442695, %v4963_v35  ;;  %vm5000_vm3 = vcmp.ge.f32.partialorder %v7434_v50, 0.0 }
 0x859   : > { %v4879_v6 = vmul.f32 1.0614054, %v7470_v42  ;;  %5598 = vrcp.f32 %v4860_v15  ;;  %v4978_v37 = vmul.f32 1.442695, %v4964_v59  ;;  %vm5001_vm5 = vcmp.ge.f32.partialorder %v7437_v29, 0.0 }
 0x85a   : > { %v4886_v63 = vadd.f32 -1.4531521, %v4878_v40  ;;  %5600 = vpow2.f32 %v4966_v5  ;;  %vm5002_vm4 = vcmp.ge.f32.partialorder %v7446_v49, 0.0  ;;  %vm5004_vm14 = vcmp.ge.f32.partialorder %v7460_v11, 0.0 }
 0x85b   : > { %v7475_v61 = vpop.eup %5590  ;;  %v4887_v14 = vadd.f32 -1.4531521, %v4879_v6  ;;  %5602 = vrcp.f32 %v4861_v56  ;;  %vm5003_vm0 = vcmp.ge.f32.partialorder %v7449_v19, 0.0  ;;  %vm5005_vm13 = vcmp.ge.f32.partialorder %v7465_v54, 0.0 }
 0x85c   : > { %v7477_v44 = vpop.eup %5592  ;;  %v4894_v60 = vmul.f32 %v7467_v1, %v4886_v63  ;;  %v4880_v57 = vmul.f32 1.0614054, %v7475_v61  ;;  %5604 = vpow2.f32 %v4968_v31  ;;  %v4965_v31 = vsub.f32 0.0, %v4957_v28 }
 0x85d   : > { %v4895_v34 = vmul.f32 %v7470_v42, %v4887_v14  ;;  %v4881_v53 = vmul.f32 1.0614054, %v7477_v44  ;;  %5606 = vpow2.f32 %v4970_v3  ;;  %v4829_v19 = vmul.f32 0.5, %v7455_v33  ;;  %v5120_v33 = vpop.permute.xlu1 %5119 }
 0x85e   : > { %v4902_v55 = vadd.f32 1.4214138, %v4894_v60  ;;  %v4888_v8 = vadd.f32 -1.4531521, %v4880_v57  ;;  %5608 = vpow2.f32 %v4972_v4 }
 0x85f   : > { %v4903_v21 = vadd.f32 1.4214138, %v4895_v34  ;;  %v4889_v20 = vadd.f32 -1.4531521, %v4881_v53  ;;  %v7490_v17 = vpop.eup %5594  ;;  %5610 = vpow2.f32 %v4974_v16 }
 0x860   : > { %v4910_v0 = vmul.f32 %v7467_v1, %v4902_v55  ;;  %v4896_v7 = vmul.f32 %v7475_v61, %v4888_v8  ;;  %v7492_v10 = vpop.eup %5596  ;;  %v4882_v22 = vmul.f32 1.0614054, %v7490_v17  ;;  %5612 = vpow2.f32 %v4976_v46 }
 0x861   : > { %v4911_v47 = vmul.f32 %v7470_v42, %v4903_v21  ;;  %v4897_v25 = vmul.f32 %v7477_v44, %v4889_v20  ;;  %v4883_v6 = vmul.f32 1.0614054, %v7492_v10  ;;  %5614 = vpow2.f32 %v4978_v37 }
 0x862   : > { %v4918_v23 = vadd.f32 -0.28449672, %v4910_v0  ;;  %v4904_v2 = vadd.f32 1.4214138, %v4896_v7  ;;  %v4890_v3 = vadd.f32 -1.4531521, %v4882_v22 }
 0x863   : > { %v4919_v5 = vadd.f32 -0.28449672, %v4911_v47  ;;  %v4905_v43 = vadd.f32 1.4214138, %v4897_v25  ;;  %v7500_v41 = vpop.eup %5598  ;;  %v4891_v62 = vadd.f32 -1.4531521, %v4883_v6 }
 0x864   : > { %v4926_v40 = vmul.f32 %v7467_v1, %v4918_v23  ;;  %v4912_v36 = vmul.f32 %v7475_v61, %v4904_v2  ;;  %v5601_v12 = vpop.eup %5600  ;;  %v4898_v4 = vmul.f32 %v7490_v17, %v4890_v3  ;;  %v4884_v39 = vmul.f32 1.0614054, %v7500_v41 }
 0x865   : > { %v4927_v52 = vmul.f32 %v7470_v42, %v4919_v5  ;;  %v4913_v48 = vmul.f32 %v7477_v44, %v4905_v43  ;;  %v7508_v34 = vpop.eup %5602  ;;  %v4899_v55 = vmul.f32 %v7492_v10, %v4891_v62  ;;  %v4980_v8 = vmul.f32 1.442695, %v4965_v31 }
 0x866   : > { %v4934_v18 = vadd.f32 0.2548296, %v4926_v40  ;;  %v4920_v63 = vadd.f32 -0.28449672, %v4912_v36  ;;  %v5605_v35 = vpop.eup %5604  ;;  %v4906_v20 = vadd.f32 1.4214138, %v4898_v4 }
 0x867   : > { %v4935_v14 = vadd.f32 0.2548296, %v4927_v52  ;;  %v4921_v15 = vadd.f32 -0.28449672, %v4913_v48  ;;  %v4892_v59 = vadd.f32 -1.4531521, %v4884_v39  ;;  %v5607_v25 = vpop.eup %5606  ;;  %5616 = vpow2.f32 %v4980_v8 }
 0x868   : > { %v4942_v60 = vmul.f32 %v7467_v1, %v4934_v18  ;;  %v4928_v57 = vmul.f32 %v7475_v61, %v4920_v63  ;;  %v4907_v16 = vadd.f32 1.4214138, %v4899_v55  ;;  %v4885_v47 = vmul.f32 1.0614054, %v7508_v34  ;;  %v5609_v46 = vpop.eup %5608 }
 0x869   : > { %v4943_v53 = vmul.f32 %v7470_v42, %v4935_v14  ;;  %v4929_v56 = vmul.f32 %v7477_v44, %v4921_v15  ;;  %v4914_v23 = vmul.f32 %v7490_v17, %v4906_v20  ;;  %v4900_v2 = vmul.f32 %v7500_v41, %v4892_v59  ;;  %v5611_v36 = vpop.eup %5610 }
 0x86a   : > { %v4982_v21 = vmul.f32 %v5601_v12, %v4942_v60  ;;  %v4936_v1 = vadd.f32 0.2548296, %v4928_v57  ;;  %v4915_v37 = vmul.f32 %v7492_v10, %v4907_v16  ;;  %v4893_v40 = vadd.f32 -1.4531521, %v4885_v47  ;;  %v5613_v3 = vpop.eup %5612 }
 0x86b   : > { %v4983_v0 = vmul.f32 %v5605_v35, %v4943_v53  ;;  %v4937_v7 = vadd.f32 0.2548296, %v4929_v56  ;;  %v4922_v48 = vadd.f32 -0.28449672, %v4914_v23  ;;  %v4908_v6 = vadd.f32 1.4214138, %v4900_v2  ;;  %v5615_v12 = vpop.eup %5614 }
 0x86c   : > { %v4990_v28 = vsub.f32 1.0, %v4982_v21  ;;  %v4944_v42 = vmul.f32 %v7475_v61, %v4936_v1  ;;  %v4923_v63 = vadd.f32 -0.28449672, %v4915_v37  ;;  %v4901_v61 = vmul.f32 %v7508_v34, %v4893_v40 }
 0x86d   : > { %v4991_v5 = vsub.f32 1.0, %v4983_v0  ;;  %v4945_v43 = vmul.f32 %v7477_v44, %v4937_v7  ;;  %v4930_v44 = vmul.f32 %v7490_v17, %v4922_v48  ;;  %v4916_v62 = vmul.f32 %v7500_v41, %v4908_v6 }
 0x86e   : > { %v5006_v22 = vsub.f32 0.0, %v4990_v28  ;;  %v4984_v52 = vmul.f32 %v5607_v25, %v4944_v42  ;;  %v4931_v4 = vmul.f32 %v7492_v10, %v4923_v63  ;;  %v4909_v21 = vadd.f32 1.4214138, %v4901_v61 }
 0x86f   : > { %v5007_v31 = vsub.f32 0.0, %v4991_v5  ;;  %v4985_v18 = vmul.f32 %v5609_v46, %v4945_v43  ;;  %v4938_v53 = vadd.f32 0.2548296, %v4930_v44  ;;  %v4924_v56 = vadd.f32 -0.28449672, %v4916_v62 }
 0x870   : > { %v5014_v14 = vsel %vm4998_vm2, %v4990_v28, %v5006_v22  ;;  %v4992_v15 = vsub.f32 1.0, %v4984_v52  ;;  %v4939_v35 = vadd.f32 0.2548296, %v4931_v4  ;;  %v4917_v16 = vmul.f32 %v7508_v34, %v4909_v21 }
 0x871   : > { %v5015_v60 = vsel %vm4999_vm1, %v4991_v5, %v5007_v31  ;;  %v4993_v57 = vsub.f32 1.0, %v4985_v18  ;;  %v5022_v51 = vadd.f32 1.0, %v5014_v14  ;;  %v4946_v13 = vmul.f32 %v7490_v17, %v4938_v53  ;;  %v5617_v52 = vpop.eup %5616  ;;  %v5038_v53 = vld [vmem:[%s5950_s30] sm:$0xff] }
 0x872   : > { %v5008_v39 = vsub.f32 0.0, %v4992_v15  ;;  %v5023_v1 = vadd.f32 1.0, %v5015_v60  ;;  %v4932_v59 = vmul.f32 %v7500_v41, %v4924_v56  ;;  %v4947_v7 = vmul.f32 %v7492_v10, %v4939_v35 }
 0x873   : > { %v5009_v55 = vsub.f32 0.0, %v4993_v57  ;;  %v4825_v8 = vmul.f32 0.5, %v7431_v45  ;;  %v4986_v25 = vmul.f32 %v5611_v36, %v4946_v13  ;;  %v5030_v42 = vmul.f32 %v5022_v51, %v7457_v32 }
 0x874   : > { %v5016_v20 = vsel %vm5000_vm3, %v4992_v15, %v5008_v39  ;;  %v4940_v28 = vadd.f32 0.2548296, %v4932_v59  ;;  %v4987_v23 = vmul.f32 %v5613_v3, %v4947_v7  ;;  %v4925_v2 = vadd.f32 -0.28449672, %v4917_v16 }
 0x875   : > { %v5024_v0 = vadd.f32 1.0, %v5016_v20  ;;  %v5017_v29 = vsel %vm5001_vm5, %v4993_v57, %v5009_v55  ;;  %v5031_v17 = vmul.f32 %v5023_v1, %v7462_v38  ;;  %v4994_v5 = vsub.f32 1.0, %v4986_v25 }
 0x876   : > { %v5025_v47 = vadd.f32 1.0, %v5017_v29  ;;  %v4948_v43 = vmul.f32 %v7500_v41, %v4940_v28  ;;  %v4995_v37 = vsub.f32 1.0, %v4987_v23  ;;  %v4933_v40 = vmul.f32 %v7508_v34, %v4925_v2 }
 0x877   : > { %v5032_v50 = vmul.f32 %v5024_v0, %v7487_v58  ;;  %v5010_v45 = vsub.f32 0.0, %v4994_v5  ;;  %v4826_v63 = vmul.f32 0.5, %v7441_v24  ;;  %v4828_v3 = vmul.f32 0.5, %v7452_v27 }
 0x878   : > { %v5033_v46 = vmul.f32 %v5025_v47, %v4825_v8  ;;  %v4988_v22 = vmul.f32 %v5615_v12, %v4948_v43  ;;  %v4941_v32 = vadd.f32 0.2548296, %v4933_v40  ;;  %v5011_v6 = vsub.f32 0.0, %v4995_v37 }
 0x879   : > { %v5380_v10 = vpack.c.bf16 %v5032_v50, %v5030_v42  ;;  %v5018_v58 = vsel %vm5002_vm4, %v4994_v5, %v5010_v45  ;;  %v4827_v24 = vmul.f32 0.5, %v7443_v9 }
 0x87a   : > { %v5378_v36 = vpack.c.bf16 %v5033_v46, %v5031_v17  ;;  %v4996_v48 = vsub.f32 1.0, %v4988_v22  ;;  %v4949_v38 = vmul.f32 %v7508_v34, %v4941_v32  ;;  %v5026_v41 = vadd.f32 1.0, %v5018_v58 }
 0x87b   : > { %v5019_v49 = vsel %vm5003_vm0, %v4995_v37, %v5011_v6 }
 0x87c   : > { %5379 = vmatprep.subr.bf16.mxu1 %v5378_v36  ;;  %v5012_v31 = vsub.f32 0.0, %v4996_v48  ;;  %v4989_v18 = vmul.f32 %v5617_v52, %v4949_v38  ;;  %v5034_v44 = vmul.f32 %v5026_v41, %v4826_v63  ;;  %v5027_v12 = vadd.f32 1.0, %v5019_v49 }
 0x87d   : > { %5381 = vmatpush1.bf16.msra.mxu1 %v5380_v10 }
 0x87e   : > { %v5020_v61 = vsel %vm5004_vm14, %v4996_v48, %v5012_v31  ;;  %v4997_v15 = vsub.f32 1.0, %v4989_v18  ;;  %v5035_v4 = vmul.f32 %v5027_v12, %v4827_v24 }
 0x87f   : > { %v5028_v14 = vadd.f32 1.0, %v5020_v61 }
 0x880   : > { %v5013_v34 = vsub.f32 0.0, %v4997_v15 }
 0x881   : > { %v5036_v62 = vmul.f32 %v5028_v14, %v4828_v3 }
 0x882   : > { %v5021_v60 = vsel %vm5005_vm13, %v4997_v15, %v5013_v34 }
 0x883   : > { %v5384_v11 = vpack.c.bf16 %v5036_v62, %v5034_v44  ;;  %v5029_v57 = vadd.f32 1.0, %v5021_v60 }
 0x885   : > { %v5037_v27 = vmul.f32 %v5029_v57, %v4829_v19 }
 0x887   : > { %v5382_v39 = vpack.c.bf16 %v5037_v27, %v5035_v4 }
 0x889   : > { %5383 = vmatprep.subr.bf16.mxu1 %v5382_v39 }
 0x88a   : > { %5385 = vmatpush1.bf16.msra.mxu1 %v5384_v11 }
 0x88d   : > { %5342 = vmatmul.mubr.msk.f32.vlgmr.msra.gmra.mrb[16].mxu1 %vm5039_vm8, %v5038_v53 }
 0x960   : > { %v5109_v54 = vpop.f32.mrb[16].mxu1 }
 0x961   : > { %v5114_v56 = vadd.f32 %v5109_v54, %v7405_v26  ;;  %v5111_v9 = vpop.f32.mrb[17].mxu1 }
 0x962   : > { %v5115_v51 = vadd.f32 %v5111_v9, %v7408_v30 }
 0x963   : > { %v5122_v55 = vadd.f32 %v5120_v33, %v5114_v56 }
 0x964   : > { %v5123_v35 = vadd.f32 %v5120_v33, %v5115_v51 }
 0x965   : > { %5124 = vst [vmem:[%s1203_s26] sm:$0xff] %v5122_v55 }
 0x966   : > { %5125 = vst [vmem:[%s1203_s26 + $0x8] sm:$0xff] %v5123_v35 }
 0x967   : > { %5633 = shalt.err (!%p5630_p3)
}
 0x968   : > { %s5634_s16 = scalar_lea.hbm %s7556_s5, 256  ;;  %s5638_s10 = scalar_lea.hbm %s5960_s24, 512 }
 0x969   : > { %p5635_p4 = scmp.ne.s32.totalorder %s7556_s5, %s5634_s16  ;;  %p5639_p9 = scmp.lt.u32.totalorder %s7556_s5, %s5960_s24 }
 0x96a   : > { %p5640_p10 = scmp.lt.u32.totalorder %s5638_s10, %s5634_s16  ;;  %p5642_p12 = scmp.lt.u32.totalorder %s5634_s16, %s7556_s5 }
 0x96b   : > { %p5636_p7 = pnand %p5635_p4, %p6000_p5 }
 0x96c   : > { %p5641_p11 = por %p5640_p10, %p5639_p9 }
 0x96d   : > { %p5637_p8 = pneg %p5636_p7 }
 0x96e   : > { %p5643_p0 = por %p5642_p12, %p5641_p11 }
 0x970   : > { %p5644_p13 = pnand %p5643_p0, %p5637_p8 }
 0x972   : > { %5647 = shalt.err (!%p5644_p13)
}
 0x973   : > { %5418 = dma.vmem_to_hbm [thread:$0]  (%p6000_p5), %s7558_s15, 256, %s7556_s5, %s5127_s3  }
 0x974 PF: > { %p5424_p1 = scmp.ge.s32.totalorder %s5682_s7, 2  ;;  %s5153_s8 = sand.u32 1, %s5670_s28  }
 0x975   : > { %s5154_s6 = scalar_lea.sflag [#allocation3], %s5153_s8 }
 0x976   : > { %p5421_p2 = pnand %p5424_p1, %p6004_p6 }
 0x978   : > { %5665 = dma.done.wait (!%p5421_p2), %s5154_s6, 256  }
 0x979   : > { %5667 = vsyncadd (!%p5421_p2), %s5154_s6, 4294967040  ;;  %p91_p3 = scmp.ge.s32.totalorder %s5987_s11, 4   ;;  %s7757_s28 = smov %s5674_s1 }
 0x97a   : > { %s7758_s1 = smov %s5678_s2  ;;  %s7759_s2 = smov %s5998_s18 }
 0x97b   : > { %s7760_s7 = smov %s5987_s11  ;;  %93 = sbr.rel (!%p91_p3) target bundleno = 79 (0x4f), region = 265 }
 0x982   :  { %5159 = vsyncpa [#allocation3], 1 }
 0x983   :  { %5161 = vsyncpa [#allocation3 + $0x1], 1 }

</bundles_post_ra>
